<compile_context>
chip_gen: v7x
topology: tpu7x:2x2x1
jax: 0.10.0
libtpu: 0.0.40
codegen_flags: <defaults>
</compile_context>

<pallas_src>
import functools

import jax
import jax.numpy as jnp
from jax.experimental import pallas as pl
from jax.experimental.pallas import tpu as pltpu


def _h2gcn_kernel(a1_ref, a2_ref, x_ref, o_ref, acc1_ref, acc2_ref):
    """Grid = (rows, reduction). Output block resident across the k axis."""
    k = pl.program_id(1)

    @pl.when(k == 0)
    def _init():
        acc1_ref[...] = jnp.zeros_like(acc1_ref)
        acc2_ref[...] = jnp.zeros_like(acc2_ref)

    x_blk = x_ref[...]  # shared by both matmuls
    acc1_ref[...] += jnp.dot(a1_ref[...], x_blk,
                             preferred_element_type=jnp.float32)
    acc2_ref[...] += jnp.dot(a2_ref[...], x_blk,
                             preferred_element_type=jnp.float32)

    @pl.when(k == pl.num_programs(1) - 1)
    def _finalize():
        # Fused concat: write the two halves of the [tm, 2F] output block.
        f = o_ref.shape[-1] // 2
        o_ref[:, :f] = acc1_ref[...].astype(o_ref.dtype)
        o_ref[:, f:] = acc2_ref[...].astype(o_ref.dtype)


def _pick_tile(dim, preferred):
    """Largest multiple-of-128 tile <= preferred that divides dim (or dim)."""
    t = min(preferred, dim)
    if dim % t == 0:
        return t
    t -= t % 128
    while t >= 128:
        if dim % t == 0:
            return t
        t -= 128
    return dim


# Scoped-VMEM budget target (safe on v5e/v6e/v7x once vmem_limit_bytes is set).
_VMEM_BUDGET = 48 * 1024 * 1024
_VMEM_LIMIT = 64 * 1024 * 1024


def _vmem_estimate(tm, tk, f, in_itemsize, out_itemsize):
    adj = 2 * 2 * tm * tk * in_itemsize        # two adjacencies, double-buffered
    xb = 2 * tk * f * in_itemsize              # x tile, double-buffered
    ob = 2 * tm * 2 * f * out_itemsize         # [tm, 2F] output, double-buffered
    acc = 2 * tm * f * 4                       # two f32 accumulators
    return adj + xb + ob + acc


@functools.partial(jax.jit, static_argnames=("tm", "tk", "compute_dtype"))
def h2gcn_conv(x, adj_t, adj_t2, *, tm=512, tk=512, compute_dtype=jnp.bfloat16):
    """Pallas implementation of H2GCNConv.forward.

    x:      [N, F] node features
    adj_t:  [N, N] 1-hop (normalized) adjacency (dense)
    adj_t2: [N, N] 2-hop (normalized) adjacency (dense)
    returns [N, 2F] = concat(adj_t @ x, adj_t2 @ x, axis=1)
    """
    N, F = x.shape
    assert adj_t.shape == (N, N) and adj_t2.shape == (N, N)

    out_dtype = x.dtype
    if compute_dtype is not None:
        x = x.astype(compute_dtype)
        adj_t = adj_t.astype(compute_dtype)
        adj_t2 = adj_t2.astype(compute_dtype)

    in_itemsize = jnp.dtype(x.dtype).itemsize
    out_itemsize = jnp.dtype(out_dtype).itemsize

    tm = _pick_tile(N, tm)
    tk = _pick_tile(N, tk)
    # Shrink tiles until the double-buffered working set fits the VMEM budget
    # (matters on v7x, which has 64 MiB of VMEM per TensorCore).
    while (_vmem_estimate(tm, tk, F, in_itemsize, out_itemsize) > _VMEM_BUDGET
           and (tm > 128 or tk > 128)):
        if tm >= tk and tm > 128:
            tm = _pick_tile(N, max(tm // 2, 128))
        else:
            tk = _pick_tile(N, max(tk // 2, 128))
    assert N % tm == 0 and N % tk == 0, (
        "N must be divisible by the chosen tiles; pad the graph to a multiple "
        "of 128 nodes.")
    # TODO(synk): feature dim is kept whole (tn == F); extremely wide feature
    #             matrices would additionally need feature tiling.

    grid = (N // tm, N // tk)

    cost = pl.CostEstimate(
        flops=4 * N * N * F,  # two N x N x F matmuls, 2 flops per MAC
        transcendentals=0,
        bytes_accessed=(2 * N * N * in_itemsize            # adjacencies, read once
                        + (N // tm) * N * F * in_itemsize  # x re-read per row tile
                        + N * 2 * F * out_itemsize),       # output written once
    )

    out = pl.pallas_call(
        _h2gcn_kernel,
        out_shape=jax.ShapeDtypeStruct((N, 2 * F), out_dtype),
        grid_spec=pltpu.PrefetchScalarGridSpec(
            num_scalar_prefetch=0,
            grid=grid,
            in_specs=[
                pl.BlockSpec((tm, tk), lambda i, k: (i, k)),   # adj_t
                pl.BlockSpec((tm, tk), lambda i, k: (i, k)),   # adj_t2
                pl.BlockSpec((tk, F), lambda i, k: (k, 0)),    # x (full feature dim)
            ],
            out_specs=pl.BlockSpec((tm, 2 * F), lambda i, k: (i, 0)),
            scratch_shapes=[
                pltpu.VMEM((tm, F), jnp.float32),
                pltpu.VMEM((tm, F), jnp.float32),
            ],
        ),
        compiler_params=pltpu.CompilerParams(
            dimension_semantics=("parallel", "arbitrary"),
            vmem_limit_bytes=_VMEM_LIMIT,
        ),
        cost_estimate=cost,
    )(adj_t, adj_t2, x)

    return out


if __name__ == "__main__":
    key = jax.random.PRNGKey(0)
    k_x, k_a = jax.random.split(key)

    N, F = 1024, 256  # small graph: 1024 nodes, 256 features
    x = jax.random.normal(k_x, (N, F), dtype=jnp.float32)

    # Deterministic synthetic adjacency: sparse-ish Bernoulli pattern,
    # symmetrized, self-loops, row-normalized (typical GCN preprocessing).
    mask = (jax.random.uniform(k_a, (N, N)) < 0.05).astype(jnp.float32)
    adj = jnp.maximum(mask, mask.T) + jnp.eye(N, dtype=jnp.float32)
    deg = jnp.sum(adj, axis=1, keepdims=True)
    adj_t = adj / deg
    # NOTE: the module interface takes adj_t2 as an input; for large graphs the
    # caller should compute adj_t @ (adj_t @ x) instead of densifying adj_t2.
    adj_t2 = adj_t @ adj_t  # 2-hop adjacency

    # Reference (pure JAX, f32).
    ref = jnp.concatenate([adj_t @ x, adj_t2 @ x], axis=1)

    # Exact-path check: f32 streaming end-to-end.
    out_f32 = h2gcn_conv(x, adj_t, adj_t2, compute_dtype=None)
    jax.block_until_ready(out_f32)
    assert out_f32.shape == (N, 2 * F)
    assert jnp.allclose(out_f32, ref, atol=1e-4, rtol=1e-4)

    # Fast path (default): bf16 streaming of adjacency/features, f32 accumulation.
    out = h2gcn_conv(x, adj_t, adj_t2)
    jax.block_until_ready(out)
    assert out.shape == (N, 2 * F)
    assert out.dtype == x.dtype
    assert jnp.allclose(out, ref, atol=2e-2, rtol=2e-2)

    print("KERNEL_OK")
</pallas_src>

<mosaic_0001>
module attributes {stable_mosaic.version = 11 : i64} {
  func.func @_h2gcn_kernel(%arg0: i32, %arg1: i32, %arg2: memref<512x512xf32, #tpu.memory_space<vmem>>, %arg3: memref<512x512xf32, #tpu.memory_space<vmem>>, %arg4: memref<512x256xf32, #tpu.memory_space<vmem>>, %arg5: memref<512x512xf32, #tpu.memory_space<vmem>>, %arg6: memref<512x256xf32, #tpu.memory_space<vmem>>, %arg7: memref<512x256xf32, #tpu.memory_space<vmem>>) attributes {dimension_semantics = [#tpu.dimension_semantics<parallel>, #tpu.dimension_semantics<arbitrary>], iteration_bounds = array<i64: 2, 2>, scalar_prefetch = 0 : i64, scratch_operands = 2 : i64, tpu.core_type = #tpu.core_type<tc>, window_params = [{transform_indices = @transform_0, window_bounds = array<i64: 512, 512>}, {transform_indices = @transform_1, window_bounds = array<i64: 512, 512>}, {transform_indices = @transform_2, window_bounds = array<i64: 512, 256>}, {transform_indices = @transform_3, window_bounds = array<i64: 512, 512>}]} {
    %c0_i32 = arith.constant 0 : i32
    %0 = arith.cmpi eq, %arg1, %c0_i32 : i32
    %1 = arith.extui %0 : i1 to i32
    %c0_i32_0 = arith.constant 0 : i32
    %2 = arith.cmpi ne, %1, %c0_i32_0 : i32
    scf.if %2 {
      %cst_16 = arith.constant 0.000000e+00 : f32
      %17 = vector.broadcast %cst_16 : f32 to vector<512x256xf32>
      %c0_17 = arith.constant 0 : index
      %c0_18 = arith.constant 0 : index
      %18 = vector.load %arg6[%c0_17, %c0_18] : memref<512x256xf32, #tpu.memory_space<vmem>>, vector<512x256xf32>
      tpu.vector_store %arg6[%c0_17, %c0_18], %17 {strides = array<i32>} : memref<512x256xf32, #tpu.memory_space<vmem>>, vector<512x256xf32>,
      %cst_19 = arith.constant 0.000000e+00 : f32
      %19 = vector.broadcast %cst_19 : f32 to vector<512x256xf32>
      %c0_20 = arith.constant 0 : index
      %c0_21 = arith.constant 0 : index
      %20 = vector.load %arg7[%c0_20, %c0_21] : memref<512x256xf32, #tpu.memory_space<vmem>>, vector<512x256xf32>
      tpu.vector_store %arg7[%c0_20, %c0_21], %19 {strides = array<i32>} : memref<512x256xf32, #tpu.memory_space<vmem>>, vector<512x256xf32>,
    } else {
    }
    %c0 = arith.constant 0 : index
    %c0_1 = arith.constant 0 : index
    %3 = vector.load %arg4[%c0, %c0_1] : memref<512x256xf32, #tpu.memory_space<vmem>>, vector<512x256xf32>
    %c0_2 = arith.constant 0 : index
    %c0_3 = arith.constant 0 : index
    %4 = vector.load %arg6[%c0_2, %c0_3] : memref<512x256xf32, #tpu.memory_space<vmem>>, vector<512x256xf32>
    %c0_4 = arith.constant 0 : index
    %c0_5 = arith.constant 0 : index
    %5 = vector.load %arg2[%c0_4, %c0_5] : memref<512x512xf32, #tpu.memory_space<vmem>>, vector<512x512xf32>
    %cst = arith.constant dense<0.000000e+00> : vector<512x256xf32>
    %6 = tpu.matmul %5, %3, %cst {dimension_numbers = #tpu.dot_dimension_numbers<[1], [0], [0], [1], [0, 0, 1, 1], [], []>} : vector<512x512xf32>, vector<512x256xf32>, vector<512x256xf32> -> vector<512x256xf32>
    %7 = arith.addf %4, %6 : vector<512x256xf32>
    %c0_6 = arith.constant 0 : index
    %c0_7 = arith.constant 0 : index
    %8 = vector.load %arg6[%c0_6, %c0_7] : memref<512x256xf32, #tpu.memory_space<vmem>>, vector<512x256xf32>
    tpu.vector_store %arg6[%c0_6, %c0_7], %7 {strides = array<i32>} : memref<512x256xf32, #tpu.memory_space<vmem>>, vector<512x256xf32>,
    %c0_8 = arith.constant 0 : index
    %c0_9 = arith.constant 0 : index
    %9 = vector.load %arg7[%c0_8, %c0_9] : memref<512x256xf32, #tpu.memory_space<vmem>>, vector<512x256xf32>
    %c0_10 = arith.constant 0 : index
    %c0_11 = arith.constant 0 : index
    %10 = vector.load %arg3[%c0_10, %c0_11] : memref<512x512xf32, #tpu.memory_space<vmem>>, vector<512x512xf32>
    %cst_12 = arith.constant dense<0.000000e+00> : vector<512x256xf32>
    %11 = tpu.matmul %10, %3, %cst_12 {dimension_numbers = #tpu.dot_dimension_numbers<[1], [0], [0], [1], [0, 0, 1, 1], [], []>} : vector<512x512xf32>, vector<512x256xf32>, vector<512x256xf32> -> vector<512x256xf32>
    %12 = arith.addf %9, %11 : vector<512x256xf32>
    %c0_13 = arith.constant 0 : index
    %c0_14 = arith.constant 0 : index
    %13 = vector.load %arg7[%c0_13, %c0_14] : memref<512x256xf32, #tpu.memory_space<vmem>>, vector<512x256xf32>
    tpu.vector_store %arg7[%c0_13, %c0_14], %12 {strides = array<i32>} : memref<512x256xf32, #tpu.memory_space<vmem>>, vector<512x256xf32>,
    %c1_i32 = arith.constant 1 : i32
    %14 = arith.cmpi eq, %arg1, %c1_i32 : i32
    %15 = arith.extui %14 : i1 to i32
    %c0_i32_15 = arith.constant 0 : i32
    %16 = arith.cmpi ne, %15, %c0_i32_15 : i32
    scf.if %16 {
      %c0_16 = arith.constant 0 : index
      %c0_17 = arith.constant 0 : index
      %17 = vector.load %arg6[%c0_16, %c0_17] : memref<512x256xf32, #tpu.memory_space<vmem>>, vector<512x256xf32>
      %c0_18 = arith.constant 0 : index
      %c0_19 = arith.constant 0 : index
      %18 = vector.load %arg5[%c0_18, %c0_19] : memref<512x512xf32, #tpu.memory_space<vmem>>, vector<512x256xf32>
      tpu.vector_store %arg5[%c0_18, %c0_19], %17 {strides = array<i32>} : memref<512x512xf32, #tpu.memory_space<vmem>>, vector<512x256xf32>,
      %c0_20 = arith.constant 0 : index
      %c0_21 = arith.constant 0 : index
      %19 = vector.load %arg7[%c0_20, %c0_21] : memref<512x256xf32, #tpu.memory_space<vmem>>, vector<512x256xf32>
      %c0_22 = arith.constant 0 : index
      %c256 = arith.constant 256 : index
      %20 = vector.load %arg5[%c0_22, %c256] : memref<512x512xf32, #tpu.memory_space<vmem>>, vector<512x256xf32>
      tpu.vector_store %arg5[%c0_22, %c256], %19 {strides = array<i32>} : memref<512x512xf32, #tpu.memory_space<vmem>>, vector<512x256xf32>,
    } else {
    }
    return
  }
  func.func @transform_0(%arg0: i32, %arg1: i32) -> (i32, i32) {
    %c0_i32 = arith.constant 0 : i32
    return %arg0, %arg1 : i32, i32
  }
  func.func @transform_1(%arg0: i32, %arg1: i32) -> (i32, i32) {
    %c0_i32 = arith.constant 0 : i32
    return %arg0, %arg1 : i32, i32
  }
  func.func @transform_2(%arg0: i32, %arg1: i32) -> (i32, i32) {
    %c0_i32 = arith.constant 0 : i32
    %c0_i32_0 = arith.constant 0 : i32
    return %arg1, %c0_i32 : i32, i32
  }
  func.func @transform_3(%arg0: i32, %arg1: i32) -> (i32, i32) {
    %c0_i32 = arith.constant 0 : i32
    %c0_i32_0 = arith.constant 0 : i32
    return %arg0, %c0_i32 : i32, i32
  }
}

</mosaic_0001>

<bundles_post_ra>
// kernel: h2gcn_conv.1
= control target key start
LH: loop header
LB: loop body
LE: loop exit
PB: predicated region body
PF: predicated region fallthrough
CT: control target
= control target key end

     0   :  { %s6957_s0 = inlined_call_operand.hbm [shape: f32[1024,1024], index: 0, kind: input, shape index: {}]   ;;  %s6958_s1 = inlined_call_operand.hbm [shape: f32[1024,1024], index: 1, kind: input, shape index: {}]   ;;  %s6959_s2 = inlined_call_operand.hbm [shape: f32[1024,256], index: 2, kind: input, shape index: {}]   ;;  %s6960_s3 = inlined_call_operand.hbm [shape: f32[1024,512], index: 3, kind: output, shape index: {}]  }
   0x1   :  { %6980 = sst [smem:[#allocation24_spill]] %s6958_s1 }
   0x2   :  { %6981 = sst [smem:[#allocation25_spill]] %s6960_s3 }
   0x3   :  { %8 = vsyncpa [#allocation5], 0 }
   0x4   :  { %10 = vsyncpa [#allocation5 + $0x1], 0 }
   0x5   :  { %11 = vsyncpa [#allocation8], 0 }
   0x6   :  { %13 = vsyncpa [#allocation8 + $0x1], 0 }
   0x7   :  { %14 = vsyncpa [#allocation6], 0 }
   0x8   :  { %16 = vsyncpa [#allocation6 + $0x1], 0  ;;  %s5394_s12 = smov 0   ;;  %s5396_s13 = smov 0  }
   0x9   :  { %s5398_s14 = smov 0   ;;  %s5400_s15 = smov 0  }
   0xa   :  { %s5402_s16 = smov 0   ;;  %s5404_s17 = smov 0  }
   0xb   :  { %s5406_s18 = smov 0   ;;  %s5408_s19 = smov 0  }
   0xc   :  { %s5410_s20 = smov 0   ;;  %s5412_s21 = smov 0  }
   0xd   :  { %s5414_s22 = smov 0   ;;  %s5416_s23 = smov 0  }
   0xe   :  { %s5418_s24 = smov 0   ;;  %s5420_s25 = smov 0  }
   0xf LB: > { %6982 = sst [smem:[#allocation15_spill]] %s5308_s12  ;;  %s5463_s26 = sadd.s32 4294967295, %s5360_s25   ;;  %s5360_s25 = sphi %s5420_s25, %s22_s25   ;;  %s5356_s24 = sphi %s5418_s24, %s7024_s24   ;;  %s5352_s23 = sphi %s5416_s23, %s7034_s23   ;;  %s5348_s22 = sphi %s5414_s22, %s7022_s22   ;;  %s5344_s21 = sphi %s5412_s21, %s7033_s21   ;;  %s5340_s20 = sphi %s5410_s20, %s7032_s20   ;;  %s5336_s19 = sphi %s5408_s19, %s7031_s19   ;;  %s5332_s18 = sphi %s5406_s18, %s7030_s18   ;;  %s5328_s17 = sphi %s5404_s17, %s7029_s17   ;;  %s5324_s16 = sphi %s5402_s16, %s7028_s16   ;;  %s5320_s15 = sphi %s5400_s15, %s7027_s15   ;;  %s5316_s14 = sphi %s5398_s14, %s7020_s14   ;;  %s5312_s13 = sphi %s5396_s13, %s7026_s13   ;;  %s5308_s12 = sphi %s5394_s12, %s7025_s12  }
  0x10   : > { %6983 = sst [smem:[#allocation16_spill]] %s5316_s14  ;;  %s4424_s27 = sadd.s32 4294967294, %s5360_s25  }
  0x11   : > { %6984 = sst [smem:[#allocation17_spill]] %s5356_s24  ;;  %s31_s28 = sadd.s32 1, %s5352_s23 }
  0x12   : > { %s34_s29 = sadd.s32 1, %s5356_s24  ;;  %p32_p0 = scmp.ge.s32.totalorder %s31_s28, 2 }
  0x13   : > { %s43_s30 = sadd.s32 1, %s5340_s20  ;;  %p50_p1 = scmp.ne.s32.totalorder %s5340_s20, %s5336_s19 }
  0x14   : > { %p6972_p2 = scmp.eq.s32.totalorder %s5360_s25, 0  ;;  %s7036_s28 = smov (%p32_p0, %s31_s28), 0 }
  0x15   : > { %6985 = sst [smem:[#allocation18_spill]] %s7036_s28  ;;  %s7038_s29 = smov (!%p32_p0, %s34_s29), %s5356_s24 }
  0x16   : > { %s5477_s4 = ssub.s32 %s5352_s23, %s7036_s28  ;;  %p5481_p3 = por %p6972_p2, %p50_p1 }
  0x17   : > { %p36_p4 = scmp.ge.s32.totalorder %s7038_s29, 2  ;;  %p56_p5 = scmp.ne.s32.totalorder %s5336_s19, %s5332_s18 }
  0x18   : > { %p6971_p6 = scmp.eq.s32.totalorder %s5463_s26, 0  ;;  %s123_s7 = sadd.s32 1, %s5316_s14 }
  0x19   : > { %s7040_s29 = smov (%p36_p4, %s7038_s29), 0  ;;  %p133_p9 = scmp.ne.s32.totalorder %s5316_s14, %s5312_s13 }
  0x1a   : > { %6987 = sst [smem:[#allocation19_spill]] %s7040_s29  ;;  %p5492_p8 = por %p6971_p6, %p56_p5 }
  0x1b   : > { %s38_s8 = ssub.s32 %s5356_s24, %s7040_s29  ;;  %p134_p12 = scmp.eq.s32.totalorder %s5463_s26, 3 }
  0x1c   : > { %s6988_s6 = scalar_select %p5492_p8, 1, 0 }
  0x1d   : > { %s40_s9 = sor.u32 %s5477_s4, %s38_s8  ;;  %p121_p10 = scmp.eq.s32.totalorder %s38_s8, 0 }
  0x1e   : > { %p41_p11 = scmp.eq.s32.totalorder %s40_s9, 0  ;;  %p5509_p13 = por %p134_p12, %p133_p9 }
  0x1f   : > { %s5504_s10 = scalar_select %p121_p10, %s5316_s14, %s123_s7  }
  0x20   : > { %s5507_s11 = scalar_select %p41_p11, %s5340_s20, %s43_s30  }
  0x21   : > { %6989 = sst [smem:[#allocation20_spill]] %s5504_s10  ;;  %p139_p0 = scmp.ne.s32.totalorder %s5312_s13, %s5308_s12 }
  0x22   : > { %6990 = sst [smem:[#allocation21_spill]] %s5507_s11  ;;  %p140_p1 = scmp.eq.s32.totalorder %s4424_s27, 3 }
  0x23   : > { %s6991_s18 = scalar_select %p5509_p13, 1, 0 }
  0x24   : > { %p6970_p4 = scmp.lt.s32.totalorder %s5360_s25, 4  ;;  %s6963_s29 = sand.u32 1, %s5340_s20  }
  0x25   : > { %6992 = sst [smem:[#allocation22_spill]] %s6991_s18  ;;  %p5517_p5 = por %p140_p1, %p139_p0 }
  0x26   : > { %s5523_s8 = sshll.u32 %s6963_s29, 11  ;;  %s4429_s7 = sshll.u32 %s5352_s23, 2 }
  0x27   : > { %s6993_s28 = scalar_select %p5517_p5, 1, 0 }
  0x28   : > { %s4454_s30 = sshll.u32 %s5356_s24, 9  ;;  %p5533_p9 = pnand %p6970_p4, %p5481_p3 }
  0x29   : > { %6994 = sst [smem:[#allocation23_spill]] %s6993_s28  ;;  %s5527_s9 = sadd.s32 %s4454_s30, %s4429_s7 }
  0x2a   : > { %s6967_s11 = sshll.u32 %s5527_s9, 7  ;;  %s184_s10 = sand.u32 1, %s5360_s25  }
  0x2b   : > { %s6996_s1 = sld [smem:[#allocation24_spill]]  ;;  %s188_s5 = scalar_lea.vmem [#allocation7], %s5523_s8 }
  0x2c   : > { %s198_s7 = sshll.u32 %s188_s5, 4  ;;  %s5550_s30 = scalar_lea.sflag [#allocation8], %s184_s10  ;;  %s5547_s7 = int_to_ptr.vmem [resolvable:$true] %s198_s7 }
  0x2d   : > { %p5118_p11 = pneg %p5533_p9 }
  0x31   : > { %s5544_s28 = scalar_lea.hbm %s6996_s1, %s6967_s11  ;;  %s5121_s11 = scalar_lea.hbm %s6996_s1, 131072 }
  0x32   : > { %s5116_s24 = scalar_lea.hbm %s5544_s28, 32768  ;;  %p5122_p1 = scmp.lt.u32.totalorder %s5544_s28, %s6996_s1 }
  0x33   : > { %p5117_p10 = scmp.ne.s32.totalorder %s5544_s28, %s5116_s24  ;;  %p5123_p4 = scmp.lt.u32.totalorder %s5121_s11, %s5116_s24 }
  0x34   : > { %p5125_p2 = scmp.lt.u32.totalorder %s5116_s24, %s5544_s28 }
  0x35   : > { %p5119_p12 = pnand %p5118_p11, %p5117_p10  ;;  %p5124_p6 = por %p5123_p4, %p5122_p1 }
  0x37   : > { %p5120_p0 = pneg %p5119_p12  ;;  %p5126_p7 = por %p5125_p2, %p5124_p6 }
  0x39   : > { %p5127_p3 = pnand %p5126_p7, %p5120_p0 }
  0x3b   : > { %5130 = shalt.err (!%p5127_p3)
}
  0x3c   : > { %s5131_s10 = scalar_lea.vmem %s5547_s7, 32768  ;;  %s5362_s5 = smov [#allocation7]  }
  0x3d   : > { %p5132_p10 = scmp.ne.s32.totalorder %s5547_s7, %s5131_s10  ;;  %s5136_s14 = sshll.u32 %s5362_s5, 4  ;;  %s5137_s14 = int_to_ptr.vmem [resolvable:$false] %s5136_s14 }
  0x3e   : > { %s5138_s3 = scalar_lea.vmem %s5137_s14, 65536  ;;  %p5139_p13 = scmp.lt.s32.totalorder %s5547_s7, %s5137_s14 }
  0x3f   : > { %p5134_p12 = pnand %p5132_p10, %p5118_p11  ;;  %p5140_p4 = scmp.lt.s32.totalorder %s5138_s3, %s5131_s10 }
  0x41   : > { %p5135_p5 = pneg %p5134_p12  ;;  %p5141_p1 = por %p5140_p4, %p5139_p13 }
  0x43   : > { %p5142_p2 = pnand %p5141_p1, %p5135_p5 }
  0x45   : > { %5145 = shalt.err (!%p5142_p2)
}
  0x46   : > { %s6976_s12 = smov 1024   ;;  %s6977_s24 = smov 512  }
  0x47   : > { %s5365_s11 = smov 32   ;;  %p228_p6 = scmp.lt.s32.totalorder %s5360_s25, 5 }
  0x48   : > { %4986 = dma.hbm_to_vmem [thread:$0]  (!%p5533_p9), %s5544_s28, 32768, %s5547_s7, %s5550_s30, %s6976_s12, %s6977_s24, %s5365_s11  }
  0x49   : > { %p6997_p7 = scmp.ge.s32.totalorder %s5360_s25, 1  ;;  %s6999_s10 = sshll.u32 %s5527_s9, 7 }
  0x4a   : > { %s5593_s3 = scalar_lea.hbm %s6957_s0, %s6999_s10  ;;  %s164_s1 = scalar_lea.vmem [#allocation4], %s5523_s8 }
  0x4b   : > { %p5584_p13 = pnand %p6997_p7, %p228_p6  ;;  %s174_s18 = sshll.u32 %s164_s1, 4  ;;  %s5596_s18 = int_to_ptr.vmem [resolvable:$true] %s174_s18 }
  0x4c   : > { %s7000_s28 = sand.u32 1, %s5340_s20   ;;  %s5146_s12 = scalar_lea.hbm %s5593_s3, 32768 }
  0x4d   : > { %s5600_s7 = scalar_lea.sflag [#allocation5], %s7000_s28  ;;  %p5147_p5 = scmp.ne.s32.totalorder %s5593_s3, %s5146_s12 }
  0x4e   : > { %s5151_s5 = scalar_lea.hbm %s6957_s0, 131072  ;;  %p5152_p10 = scmp.lt.u32.totalorder %s5593_s3, %s6957_s0 }
  0x4f   : > { %p5149_p3 = pnand %p5147_p5, %p5118_p11  ;;  %p5153_p12 = scmp.lt.u32.totalorder %s5151_s5, %s5146_s12 }
  0x50   : > { %p5155_p1 = scmp.lt.u32.totalorder %s5146_s12, %s5593_s3 }
  0x51   : > { %p5150_p0 = pneg %p5149_p3  ;;  %p5154_p4 = por %p5153_p12, %p5152_p10 }
  0x53   : > { %p5156_p2 = por %p5155_p1, %p5154_p4 }
  0x55   : > { %p5157_p6 = pnand %p5156_p2, %p5150_p0 }
  0x57   : > { %5160 = shalt.err (!%p5157_p6)
}
  0x58   : > { %s5161_s1 = scalar_lea.vmem %s5596_s18, 32768  ;;  %s5366_s8 = smov [#allocation4]  }
  0x59   : > { %p5162_p7 = scmp.ne.s32.totalorder %s5596_s18, %s5161_s1  ;;  %s5166_s28 = sshll.u32 %s5366_s8, 4  ;;  %s5167_s28 = int_to_ptr.vmem [resolvable:$false] %s5166_s28 }
  0x5a   : > { %s5168_s24 = scalar_lea.vmem %s5167_s28, 65536  ;;  %p5169_p8 = scmp.lt.s32.totalorder %s5596_s18, %s5167_s28 }
  0x5b   : > { %p5164_p5 = pnand %p5162_p7, %p5118_p11  ;;  %p5170_p10 = scmp.lt.s32.totalorder %s5168_s24, %s5161_s1 }
  0x5d   : > { %p5165_p3 = pneg %p5164_p5  ;;  %p5171_p12 = por %p5170_p10, %p5169_p8 }
  0x5f   : > { %p5172_p4 = pnand %p5171_p12, %p5165_p3 }
  0x61   : > { %5175 = shalt.err (!%p5172_p4)
}
  0x62   : > { %s7001_s12 = smov 512   ;;  %s7002_s9 = smov 1024  }
  0x63   : > { %4983 = dma.hbm_to_vmem [thread:$0]  (!%p5533_p9), %s5593_s3, 32768, %s5596_s18, %s5600_s7, %s7002_s9, %s7001_s12, %s5365_s11  }
  0x64   : > { %s97_s27 = sadd.s32 1, %s5328_s17  ;;  %p7003_p8 = scmp.eq.s32.totalorder %s5477_s4, 0 }
  0x65   : > { %p104_p11 = scmp.ne.s32.totalorder %s5328_s17, %s5324_s16  ;;  %p110_p0 = scmp.ne.s32.totalorder %s5324_s16, %s5320_s15 }
  0x66   : > { %s5633_s10 = scalar_select %p7003_p8, %s5328_s17, %s97_s27  }
  0x67   : > { %s210_s5 = sand.u32 1, %s5328_s17   ;;  %s4457_s14 = sshll.u32 %s5352_s23, 14 }
  0x68   : > { %p7004_p1 = scmp.eq.s32.totalorder %s5360_s25, 0  ;;  %p7005_p6 = scmp.eq.s32.totalorder %s5463_s26, 0 }
  0x69   : > { %s4437_s8 = sshll.u32 %s210_s5, 10  ;;  %s5652_s18 = scalar_lea.hbm %s6959_s2, %s4457_s14 }
  0x6a   : > { %p106_p2 = por %p104_p11, %p7004_p1  ;;  %p5645_p7 = por %p110_p0, %p7005_p6 }
  0x6b   : > { %p7007_p9 = scmp.lt.s32.totalorder %s5360_s25, 4  ;;  %s212_s4 = scalar_lea.vmem [#allocation9], %s4437_s8 }
  0x6c   : > { %s7006_s1 = scalar_select %p5645_p7, 1, 0 }
  0x6d   : > { %p5656_p5 = pnand %p7007_p9, %p106_p2  ;;  %s220_s11 = sshll.u32 %s212_s4, 4  ;;  %s5660_s11 = int_to_ptr.vmem [resolvable:$true] %s220_s11 }
  0x6e   : > { %s5176_s3 = scalar_lea.hbm %s5652_s18, 16384  ;;  %s5181_s9 = scalar_lea.hbm %s6959_s2, 32768 }
  0x6f   : > { %p5177_p3 = scmp.ne.s32.totalorder %s5652_s18, %s5176_s3  ;;  %p5178_p10 = pneg %p5656_p5 }
  0x70   : > { %p5182_p8 = scmp.lt.u32.totalorder %s5652_s18, %s6959_s2  ;;  %p5183_p11 = scmp.lt.u32.totalorder %s5181_s9, %s5176_s3 }
  0x71   : > { %p5179_p12 = pnand %p5178_p10, %p5177_p3  ;;  %p5185_p1 = scmp.lt.u32.totalorder %s5176_s3, %s5652_s18 }
  0x72   : > { %p5184_p0 = por %p5183_p11, %p5182_p8 }
  0x73   : > { %p5180_p4 = pneg %p5179_p12 }
  0x74   : > { %p5186_p2 = por %p5185_p1, %p5184_p0 }
  0x76   : > { %p5187_p6 = pnand %p5186_p2, %p5180_p4 }
  0x78   : > { %5190 = shalt.err (!%p5187_p6)
}
  0x79   : > { %s5191_s14 = scalar_lea.vmem %s5660_s11, 16384  ;;  %s5367_s8 = smov [#allocation9]  }
  0x7a   : > { %p5192_p9 = scmp.ne.s32.totalorder %s5660_s11, %s5191_s14  ;;  %s5196_s28 = sshll.u32 %s5367_s8, 4  ;;  %s5197_s28 = int_to_ptr.vmem [resolvable:$false] %s5196_s28 }
  0x7b   : > { %s5198_s24 = scalar_lea.vmem %s5197_s28, 32768  ;;  %p5199_p7 = scmp.lt.s32.totalorder %s5660_s11, %s5197_s28 }
  0x7c   : > { %p5194_p3 = pnand %p5192_p9, %p5178_p10  ;;  %p5200_p8 = scmp.lt.s32.totalorder %s5198_s24, %s5191_s14 }
  0x7e   : > { %p5195_p12 = pneg %p5194_p3  ;;  %p5201_p11 = por %p5200_p8, %p5199_p7 }
  0x80   : > { %p5202_p0 = pnand %p5201_p11, %p5195_p12 }
  0x82   : > { %5205 = shalt.err (!%p5202_p0)
}
  0x83   : > { %s5368_s4 = smov 256   ;;  %s5369_s3 = smov 16  }
  0x84   : > { %4989 = dma.hbm_to_vmem [thread:$0]  (!%p5656_p5), %s5652_s18, 16384, %s5660_s11, %s5550_s30, %s5368_s4, %s5368_s4, %s5369_s3  }
  0x85   : > { %232 = sbr.rel (%p5584_p13) target bundleno = 1215 (0x4bf), region = 32  ;;  %s234_s7 = sand.u32 (!%p5584_p13), 1, %s5336_s19  }
  0x86   : > { %s4442_s12 = sshll.u32 (!%p5584_p13), %s234_s7, 11  ;;  %s235_s9 = scalar_lea.sflag (!%p5584_p13), [#allocation5], %s234_s7 }
  0x87   : > { %s5691_s27 = scalar_lea.vmem (!%p5584_p13), [#allocation4], %s4442_s12  ;;  %p7009_p7 = scmp.ne.s32.totalorder (!%p5584_p13), %s6988_s6, 0 }
  0x8c   : > { %5291 = dma.done.wait (%p7009_p7), %s235_s9, 32768  }
  0x8d   : > { %5293 = vsyncadd (%p7009_p7), %s235_s9, 4294934528  ;;  %s243_s5 = sand.u32 1, %s5463_s26   ;;  %s5698_s30 = scalar_lea.vmem [#allocation7], %s4442_s12 }
  0x8e   : > { %s244_s15 = scalar_lea.sflag [#allocation8], %s243_s5 }
  0x8f   : > { %5295 = dma.done.wait (%p7009_p7), %s244_s15, 32768  }
  0x90   : > { %5297 = vsyncadd (%p7009_p7), %s244_s15, 4294934528  ;;  %s254_s29 = sand.u32 1, %s5324_s16   ;;  %p7010_p13 = scmp.ne.s32.totalorder %s7006_s1, 0 }
  0x91   : > { %s4444_s18 = sshll.u32 %s254_s29, 10 }
  0x92   : > { %s5705_s11 = scalar_lea.vmem [#allocation9], %s4444_s18 }
  0x93   : > { %5299 = dma.done.wait (%p7010_p13), %s244_s15, 16384  }
  0x94   : > { %5301 = vsyncadd (%p7010_p13), %s244_s15, 4294950912  ;;  %s286_s26 = sand.u32 1, %s5312_s13   ;;  %p4446_p5 = scmp.ne.s32.totalorder %s5344_s21, 0 }
  0x95   : > { %s4445_s14 = sshll.u32 %s286_s26, 11  ;;  %v5370_v0 = vmov (!%p4446_p5), 0.0  }
  0x96   : > { %s5714_s8 = scalar_lea.vmem [#allocation10], %s4445_s14  ;;  %298 = sbr.rel (%p4446_p5) target bundleno = 278 (0x116), region = 48  ;;  %299 = vst [vmem:[#allocation2] sm:$0xff] (!%p4446_p5), %v5370_v0  ;;  %300 = vst [vmem:[#allocation2 + $0x8] sm:$0xff] (!%p4446_p5), %v5370_v0 }
  0x97   : > { %301 = vst [vmem:[#allocation2 + $0x10] sm:$0xff] (!%p4446_p5), %v5370_v0  ;;  %302 = vst [vmem:[#allocation2 + $0x18] sm:$0xff] (!%p4446_p5), %v5370_v0 }
  0x98   : > { %303 = vst [vmem:[#allocation2 + $0x20] sm:$0xff] (!%p4446_p5), %v5370_v0  ;;  %304 = vst [vmem:[#allocation2 + $0x28] sm:$0xff] (!%p4446_p5), %v5370_v0 }
  0x99   : > { %305 = vst [vmem:[#allocation2 + $0x30] sm:$0xff] (!%p4446_p5), %v5370_v0  ;;  %306 = vst [vmem:[#allocation2 + $0x38] sm:$0xff] (!%p4446_p5), %v5370_v0 }
  0x9a   : > { %307 = vst [vmem:[#allocation2 + $0x40] sm:$0xff] (!%p4446_p5), %v5370_v0  ;;  %308 = vst [vmem:[#allocation2 + $0x48] sm:$0xff] (!%p4446_p5), %v5370_v0 }
  0x9b   : > { %309 = vst [vmem:[#allocation2 + $0x50] sm:$0xff] (!%p4446_p5), %v5370_v0  ;;  %310 = vst [vmem:[#allocation2 + $0x58] sm:$0xff] (!%p4446_p5), %v5370_v0 }
  0x9c   : > { %311 = vst [vmem:[#allocation2 + $0x60] sm:$0xff] (!%p4446_p5), %v5370_v0  ;;  %312 = vst [vmem:[#allocation2 + $0x68] sm:$0xff] (!%p4446_p5), %v5370_v0 }
  0x9d   : > { %313 = vst [vmem:[#allocation2 + $0x70] sm:$0xff] %v5370_v0  ;;  %314 = vst [vmem:[#allocation2 + $0x78] sm:$0xff] %v5370_v0 }
  0x9e   : > { %315 = vst [vmem:[#allocation2 + $0x80] sm:$0xff] %v5370_v0  ;;  %316 = vst [vmem:[#allocation2 + $0x88] sm:$0xff] %v5370_v0 }
  0x9f   : > { %317 = vst [vmem:[#allocation2 + $0x90] sm:$0xff] %v5370_v0  ;;  %318 = vst [vmem:[#allocation2 + $0x98] sm:$0xff] %v5370_v0 }
  0xa0   : > { %319 = vst [vmem:[#allocation2 + $0xa0] sm:$0xff] %v5370_v0  ;;  %320 = vst [vmem:[#allocation2 + $0xa8] sm:$0xff] %v5370_v0 }
  0xa1   : > { %321 = vst [vmem:[#allocation2 + $0xb0] sm:$0xff] %v5370_v0  ;;  %322 = vst [vmem:[#allocation2 + $0xb8] sm:$0xff] %v5370_v0 }
  0xa2   : > { %323 = vst [vmem:[#allocation2 + $0xc0] sm:$0xff] %v5370_v0  ;;  %324 = vst [vmem:[#allocation2 + $0xc8] sm:$0xff] %v5370_v0 }
  0xa3   : > { %325 = vst [vmem:[#allocation2 + $0xd0] sm:$0xff] %v5370_v0  ;;  %326 = vst [vmem:[#allocation2 + $0xd8] sm:$0xff] %v5370_v0 }
  0xa4   : > { %327 = vst [vmem:[#allocation2 + $0xe0] sm:$0xff] %v5370_v0  ;;  %328 = vst [vmem:[#allocation2 + $0xe8] sm:$0xff] %v5370_v0 }
  0xa5   : > { %329 = vst [vmem:[#allocation2 + $0xf0] sm:$0xff] %v5370_v0  ;;  %330 = vst [vmem:[#allocation2 + $0xf8] sm:$0xff] %v5370_v0 }
  0xa6   : > { %331 = vst [vmem:[#allocation2 + $0x100] sm:$0xff] %v5370_v0  ;;  %332 = vst [vmem:[#allocation2 + $0x108] sm:$0xff] %v5370_v0 }
  0xa7   : > { %333 = vst [vmem:[#allocation2 + $0x110] sm:$0xff] %v5370_v0  ;;  %334 = vst [vmem:[#allocation2 + $0x118] sm:$0xff] %v5370_v0 }
  0xa8   : > { %335 = vst [vmem:[#allocation2 + $0x120] sm:$0xff] %v5370_v0  ;;  %336 = vst [vmem:[#allocation2 + $0x128] sm:$0xff] %v5370_v0 }
  0xa9   : > { %337 = vst [vmem:[#allocation2 + $0x130] sm:$0xff] %v5370_v0  ;;  %338 = vst [vmem:[#allocation2 + $0x138] sm:$0xff] %v5370_v0 }
  0xaa   : > { %339 = vst [vmem:[#allocation2 + $0x140] sm:$0xff] %v5370_v0  ;;  %340 = vst [vmem:[#allocation2 + $0x148] sm:$0xff] %v5370_v0 }
  0xab   : > { %341 = vst [vmem:[#allocation2 + $0x150] sm:$0xff] %v5370_v0  ;;  %342 = vst [vmem:[#allocation2 + $0x158] sm:$0xff] %v5370_v0 }
  0xac   : > { %343 = vst [vmem:[#allocation2 + $0x160] sm:$0xff] %v5370_v0  ;;  %344 = vst [vmem:[#allocation2 + $0x168] sm:$0xff] %v5370_v0 }
  0xad   : > { %345 = vst [vmem:[#allocation2 + $0x170] sm:$0xff] %v5370_v0  ;;  %346 = vst [vmem:[#allocation2 + $0x178] sm:$0xff] %v5370_v0 }
  0xae   : > { %347 = vst [vmem:[#allocation2 + $0x180] sm:$0xff] %v5370_v0  ;;  %348 = vst [vmem:[#allocation2 + $0x188] sm:$0xff] %v5370_v0 }
  0xaf   : > { %349 = vst [vmem:[#allocation2 + $0x190] sm:$0xff] %v5370_v0  ;;  %350 = vst [vmem:[#allocation2 + $0x198] sm:$0xff] %v5370_v0 }
  0xb0   : > { %351 = vst [vmem:[#allocation2 + $0x1a0] sm:$0xff] %v5370_v0  ;;  %352 = vst [vmem:[#allocation2 + $0x1a8] sm:$0xff] %v5370_v0 }
  0xb1   : > { %353 = vst [vmem:[#allocation2 + $0x1b0] sm:$0xff] %v5370_v0  ;;  %354 = vst [vmem:[#allocation2 + $0x1b8] sm:$0xff] %v5370_v0 }
  0xb2   : > { %355 = vst [vmem:[#allocation2 + $0x1c0] sm:$0xff] %v5370_v0  ;;  %356 = vst [vmem:[#allocation2 + $0x1c8] sm:$0xff] %v5370_v0 }
  0xb3   : > { %357 = vst [vmem:[#allocation2 + $0x1d0] sm:$0xff] %v5370_v0  ;;  %358 = vst [vmem:[#allocation2 + $0x1d8] sm:$0xff] %v5370_v0 }
  0xb4   : > { %359 = vst [vmem:[#allocation2 + $0x1e0] sm:$0xff] %v5370_v0  ;;  %360 = vst [vmem:[#allocation2 + $0x1e8] sm:$0xff] %v5370_v0 }
  0xb5   : > { %361 = vst [vmem:[#allocation2 + $0x1f0] sm:$0xff] %v5370_v0  ;;  %362 = vst [vmem:[#allocation2 + $0x1f8] sm:$0xff] %v5370_v0 }
  0xb6   : > { %363 = vst [vmem:[#allocation2 + $0x200] sm:$0xff] %v5370_v0  ;;  %364 = vst [vmem:[#allocation2 + $0x208] sm:$0xff] %v5370_v0 }
  0xb7   : > { %365 = vst [vmem:[#allocation2 + $0x210] sm:$0xff] %v5370_v0  ;;  %366 = vst [vmem:[#allocation2 + $0x218] sm:$0xff] %v5370_v0 }
  0xb8   : > { %367 = vst [vmem:[#allocation2 + $0x220] sm:$0xff] %v5370_v0  ;;  %368 = vst [vmem:[#allocation2 + $0x228] sm:$0xff] %v5370_v0 }
  0xb9   : > { %369 = vst [vmem:[#allocation2 + $0x230] sm:$0xff] %v5370_v0  ;;  %370 = vst [vmem:[#allocation2 + $0x238] sm:$0xff] %v5370_v0 }
  0xba   : > { %371 = vst [vmem:[#allocation2 + $0x240] sm:$0xff] %v5370_v0  ;;  %372 = vst [vmem:[#allocation2 + $0x248] sm:$0xff] %v5370_v0 }
  0xbb   : > { %373 = vst [vmem:[#allocation2 + $0x250] sm:$0xff] %v5370_v0  ;;  %374 = vst [vmem:[#allocation2 + $0x258] sm:$0xff] %v5370_v0 }
  0xbc   : > { %375 = vst [vmem:[#allocation2 + $0x260] sm:$0xff] %v5370_v0  ;;  %376 = vst [vmem:[#allocation2 + $0x268] sm:$0xff] %v5370_v0 }
  0xbd   : > { %377 = vst [vmem:[#allocation2 + $0x270] sm:$0xff] %v5370_v0  ;;  %378 = vst [vmem:[#allocation2 + $0x278] sm:$0xff] %v5370_v0 }
  0xbe   : > { %379 = vst [vmem:[#allocation2 + $0x280] sm:$0xff] %v5370_v0  ;;  %380 = vst [vmem:[#allocation2 + $0x288] sm:$0xff] %v5370_v0 }
  0xbf   : > { %381 = vst [vmem:[#allocation2 + $0x290] sm:$0xff] %v5370_v0  ;;  %382 = vst [vmem:[#allocation2 + $0x298] sm:$0xff] %v5370_v0 }
  0xc0   : > { %383 = vst [vmem:[#allocation2 + $0x2a0] sm:$0xff] %v5370_v0  ;;  %384 = vst [vmem:[#allocation2 + $0x2a8] sm:$0xff] %v5370_v0 }
  0xc1   : > { %385 = vst [vmem:[#allocation2 + $0x2b0] sm:$0xff] %v5370_v0  ;;  %386 = vst [vmem:[#allocation2 + $0x2b8] sm:$0xff] %v5370_v0 }
  0xc2   : > { %387 = vst [vmem:[#allocation2 + $0x2c0] sm:$0xff] %v5370_v0  ;;  %388 = vst [vmem:[#allocation2 + $0x2c8] sm:$0xff] %v5370_v0 }
  0xc3   : > { %389 = vst [vmem:[#allocation2 + $0x2d0] sm:$0xff] %v5370_v0  ;;  %390 = vst [vmem:[#allocation2 + $0x2d8] sm:$0xff] %v5370_v0 }
  0xc4   : > { %391 = vst [vmem:[#allocation2 + $0x2e0] sm:$0xff] %v5370_v0  ;;  %392 = vst [vmem:[#allocation2 + $0x2e8] sm:$0xff] %v5370_v0 }
  0xc5   : > { %393 = vst [vmem:[#allocation2 + $0x2f0] sm:$0xff] %v5370_v0  ;;  %394 = vst [vmem:[#allocation2 + $0x2f8] sm:$0xff] %v5370_v0 }
  0xc6   : > { %395 = vst [vmem:[#allocation2 + $0x300] sm:$0xff] %v5370_v0  ;;  %396 = vst [vmem:[#allocation2 + $0x308] sm:$0xff] %v5370_v0 }
  0xc7   : > { %397 = vst [vmem:[#allocation2 + $0x310] sm:$0xff] %v5370_v0  ;;  %398 = vst [vmem:[#allocation2 + $0x318] sm:$0xff] %v5370_v0 }
  0xc8   : > { %399 = vst [vmem:[#allocation2 + $0x320] sm:$0xff] %v5370_v0  ;;  %400 = vst [vmem:[#allocation2 + $0x328] sm:$0xff] %v5370_v0 }
  0xc9   : > { %401 = vst [vmem:[#allocation2 + $0x330] sm:$0xff] %v5370_v0  ;;  %402 = vst [vmem:[#allocation2 + $0x338] sm:$0xff] %v5370_v0 }
  0xca   : > { %403 = vst [vmem:[#allocation2 + $0x340] sm:$0xff] %v5370_v0  ;;  %404 = vst [vmem:[#allocation2 + $0x348] sm:$0xff] %v5370_v0 }
  0xcb   : > { %405 = vst [vmem:[#allocation2 + $0x350] sm:$0xff] %v5370_v0  ;;  %406 = vst [vmem:[#allocation2 + $0x358] sm:$0xff] %v5370_v0 }
  0xcc   : > { %407 = vst [vmem:[#allocation2 + $0x360] sm:$0xff] %v5370_v0  ;;  %408 = vst [vmem:[#allocation2 + $0x368] sm:$0xff] %v5370_v0 }
  0xcd   : > { %409 = vst [vmem:[#allocation2 + $0x370] sm:$0xff] %v5370_v0  ;;  %410 = vst [vmem:[#allocation2 + $0x378] sm:$0xff] %v5370_v0 }
  0xce   : > { %411 = vst [vmem:[#allocation2 + $0x380] sm:$0xff] %v5370_v0  ;;  %412 = vst [vmem:[#allocation2 + $0x388] sm:$0xff] %v5370_v0 }
  0xcf   : > { %413 = vst [vmem:[#allocation2 + $0x390] sm:$0xff] %v5370_v0  ;;  %414 = vst [vmem:[#allocation2 + $0x398] sm:$0xff] %v5370_v0 }
  0xd0   : > { %415 = vst [vmem:[#allocation2 + $0x3a0] sm:$0xff] %v5370_v0  ;;  %416 = vst [vmem:[#allocation2 + $0x3a8] sm:$0xff] %v5370_v0 }
  0xd1   : > { %417 = vst [vmem:[#allocation2 + $0x3b0] sm:$0xff] %v5370_v0  ;;  %418 = vst [vmem:[#allocation2 + $0x3b8] sm:$0xff] %v5370_v0 }
  0xd2   : > { %419 = vst [vmem:[#allocation2 + $0x3c0] sm:$0xff] %v5370_v0  ;;  %420 = vst [vmem:[#allocation2 + $0x3c8] sm:$0xff] %v5370_v0 }
  0xd3   : > { %421 = vst [vmem:[#allocation2 + $0x3d0] sm:$0xff] %v5370_v0  ;;  %422 = vst [vmem:[#allocation2 + $0x3d8] sm:$0xff] %v5370_v0 }
  0xd4   : > { %423 = vst [vmem:[#allocation2 + $0x3e0] sm:$0xff] %v5370_v0  ;;  %424 = vst [vmem:[#allocation2 + $0x3e8] sm:$0xff] %v5370_v0 }
  0xd5   : > { %425 = vst [vmem:[#allocation2 + $0x3f0] sm:$0xff] %v5370_v0  ;;  %426 = vst [vmem:[#allocation2 + $0x3f8] sm:$0xff] %v5370_v0 }
  0xd6   : > { %427 = vst [vmem:[#allocation3] sm:$0xff] %v5370_v0  ;;  %428 = vst [vmem:[#allocation3 + $0x8] sm:$0xff] %v5370_v0 }
  0xd7   : > { %429 = vst [vmem:[#allocation3 + $0x10] sm:$0xff] %v5370_v0  ;;  %430 = vst [vmem:[#allocation3 + $0x18] sm:$0xff] %v5370_v0 }
  0xd8   : > { %431 = vst [vmem:[#allocation3 + $0x20] sm:$0xff] %v5370_v0  ;;  %432 = vst [vmem:[#allocation3 + $0x28] sm:$0xff] %v5370_v0 }
  0xd9   : > { %433 = vst [vmem:[#allocation3 + $0x30] sm:$0xff] %v5370_v0  ;;  %434 = vst [vmem:[#allocation3 + $0x38] sm:$0xff] %v5370_v0 }
  0xda   : > { %435 = vst [vmem:[#allocation3 + $0x40] sm:$0xff] %v5370_v0  ;;  %436 = vst [vmem:[#allocation3 + $0x48] sm:$0xff] %v5370_v0 }
  0xdb   : > { %437 = vst [vmem:[#allocation3 + $0x50] sm:$0xff] %v5370_v0  ;;  %438 = vst [vmem:[#allocation3 + $0x58] sm:$0xff] %v5370_v0 }
  0xdc   : > { %439 = vst [vmem:[#allocation3 + $0x60] sm:$0xff] %v5370_v0  ;;  %440 = vst [vmem:[#allocation3 + $0x68] sm:$0xff] %v5370_v0 }
  0xdd   : > { %441 = vst [vmem:[#allocation3 + $0x70] sm:$0xff] %v5370_v0  ;;  %442 = vst [vmem:[#allocation3 + $0x78] sm:$0xff] %v5370_v0 }
  0xde   : > { %443 = vst [vmem:[#allocation3 + $0x80] sm:$0xff] %v5370_v0  ;;  %444 = vst [vmem:[#allocation3 + $0x88] sm:$0xff] %v5370_v0 }
  0xdf   : > { %445 = vst [vmem:[#allocation3 + $0x90] sm:$0xff] %v5370_v0  ;;  %446 = vst [vmem:[#allocation3 + $0x98] sm:$0xff] %v5370_v0 }
  0xe0   : > { %447 = vst [vmem:[#allocation3 + $0xa0] sm:$0xff] %v5370_v0  ;;  %448 = vst [vmem:[#allocation3 + $0xa8] sm:$0xff] %v5370_v0 }
  0xe1   : > { %449 = vst [vmem:[#allocation3 + $0xb0] sm:$0xff] %v5370_v0  ;;  %450 = vst [vmem:[#allocation3 + $0xb8] sm:$0xff] %v5370_v0 }
  0xe2   : > { %451 = vst [vmem:[#allocation3 + $0xc0] sm:$0xff] %v5370_v0  ;;  %452 = vst [vmem:[#allocation3 + $0xc8] sm:$0xff] %v5370_v0 }
  0xe3   : > { %453 = vst [vmem:[#allocation3 + $0xd0] sm:$0xff] %v5370_v0  ;;  %454 = vst [vmem:[#allocation3 + $0xd8] sm:$0xff] %v5370_v0 }
  0xe4   : > { %455 = vst [vmem:[#allocation3 + $0xe0] sm:$0xff] %v5370_v0  ;;  %456 = vst [vmem:[#allocation3 + $0xe8] sm:$0xff] %v5370_v0 }
  0xe5   : > { %457 = vst [vmem:[#allocation3 + $0xf0] sm:$0xff] %v5370_v0  ;;  %458 = vst [vmem:[#allocation3 + $0xf8] sm:$0xff] %v5370_v0 }
  0xe6   : > { %459 = vst [vmem:[#allocation3 + $0x100] sm:$0xff] %v5370_v0  ;;  %460 = vst [vmem:[#allocation3 + $0x108] sm:$0xff] %v5370_v0 }
  0xe7   : > { %461 = vst [vmem:[#allocation3 + $0x110] sm:$0xff] %v5370_v0  ;;  %462 = vst [vmem:[#allocation3 + $0x118] sm:$0xff] %v5370_v0 }
  0xe8   : > { %463 = vst [vmem:[#allocation3 + $0x120] sm:$0xff] %v5370_v0  ;;  %464 = vst [vmem:[#allocation3 + $0x128] sm:$0xff] %v5370_v0 }
  0xe9   : > { %465 = vst [vmem:[#allocation3 + $0x130] sm:$0xff] %v5370_v0  ;;  %466 = vst [vmem:[#allocation3 + $0x138] sm:$0xff] %v5370_v0 }
  0xea   : > { %467 = vst [vmem:[#allocation3 + $0x140] sm:$0xff] %v5370_v0  ;;  %468 = vst [vmem:[#allocation3 + $0x148] sm:$0xff] %v5370_v0 }
  0xeb   : > { %469 = vst [vmem:[#allocation3 + $0x150] sm:$0xff] %v5370_v0  ;;  %470 = vst [vmem:[#allocation3 + $0x158] sm:$0xff] %v5370_v0 }
  0xec   : > { %471 = vst [vmem:[#allocation3 + $0x160] sm:$0xff] %v5370_v0  ;;  %472 = vst [vmem:[#allocation3 + $0x168] sm:$0xff] %v5370_v0 }
  0xed   : > { %473 = vst [vmem:[#allocation3 + $0x170] sm:$0xff] %v5370_v0  ;;  %474 = vst [vmem:[#allocation3 + $0x178] sm:$0xff] %v5370_v0 }
  0xee   : > { %475 = vst [vmem:[#allocation3 + $0x180] sm:$0xff] %v5370_v0  ;;  %476 = vst [vmem:[#allocation3 + $0x188] sm:$0xff] %v5370_v0 }
  0xef   : > { %477 = vst [vmem:[#allocation3 + $0x190] sm:$0xff] %v5370_v0  ;;  %478 = vst [vmem:[#allocation3 + $0x198] sm:$0xff] %v5370_v0 }
  0xf0   : > { %479 = vst [vmem:[#allocation3 + $0x1a0] sm:$0xff] %v5370_v0  ;;  %480 = vst [vmem:[#allocation3 + $0x1a8] sm:$0xff] %v5370_v0 }
  0xf1   : > { %481 = vst [vmem:[#allocation3 + $0x1b0] sm:$0xff] %v5370_v0  ;;  %482 = vst [vmem:[#allocation3 + $0x1b8] sm:$0xff] %v5370_v0 }
  0xf2   : > { %483 = vst [vmem:[#allocation3 + $0x1c0] sm:$0xff] %v5370_v0  ;;  %484 = vst [vmem:[#allocation3 + $0x1c8] sm:$0xff] %v5370_v0 }
  0xf3   : > { %485 = vst [vmem:[#allocation3 + $0x1d0] sm:$0xff] %v5370_v0  ;;  %486 = vst [vmem:[#allocation3 + $0x1d8] sm:$0xff] %v5370_v0 }
  0xf4   : > { %487 = vst [vmem:[#allocation3 + $0x1e0] sm:$0xff] %v5370_v0  ;;  %488 = vst [vmem:[#allocation3 + $0x1e8] sm:$0xff] %v5370_v0 }
  0xf5   : > { %489 = vst [vmem:[#allocation3 + $0x1f0] sm:$0xff] %v5370_v0  ;;  %490 = vst [vmem:[#allocation3 + $0x1f8] sm:$0xff] %v5370_v0 }
  0xf6   : > { %491 = vst [vmem:[#allocation3 + $0x200] sm:$0xff] %v5370_v0  ;;  %492 = vst [vmem:[#allocation3 + $0x208] sm:$0xff] %v5370_v0 }
  0xf7   : > { %493 = vst [vmem:[#allocation3 + $0x210] sm:$0xff] %v5370_v0  ;;  %494 = vst [vmem:[#allocation3 + $0x218] sm:$0xff] %v5370_v0 }
  0xf8   : > { %495 = vst [vmem:[#allocation3 + $0x220] sm:$0xff] %v5370_v0  ;;  %496 = vst [vmem:[#allocation3 + $0x228] sm:$0xff] %v5370_v0 }
  0xf9   : > { %497 = vst [vmem:[#allocation3 + $0x230] sm:$0xff] %v5370_v0  ;;  %498 = vst [vmem:[#allocation3 + $0x238] sm:$0xff] %v5370_v0 }
  0xfa   : > { %499 = vst [vmem:[#allocation3 + $0x240] sm:$0xff] %v5370_v0  ;;  %500 = vst [vmem:[#allocation3 + $0x248] sm:$0xff] %v5370_v0 }
  0xfb   : > { %501 = vst [vmem:[#allocation3 + $0x250] sm:$0xff] %v5370_v0  ;;  %502 = vst [vmem:[#allocation3 + $0x258] sm:$0xff] %v5370_v0 }
  0xfc   : > { %503 = vst [vmem:[#allocation3 + $0x260] sm:$0xff] %v5370_v0  ;;  %504 = vst [vmem:[#allocation3 + $0x268] sm:$0xff] %v5370_v0 }
  0xfd   : > { %505 = vst [vmem:[#allocation3 + $0x270] sm:$0xff] %v5370_v0  ;;  %506 = vst [vmem:[#allocation3 + $0x278] sm:$0xff] %v5370_v0 }
  0xfe   : > { %507 = vst [vmem:[#allocation3 + $0x280] sm:$0xff] %v5370_v0  ;;  %508 = vst [vmem:[#allocation3 + $0x288] sm:$0xff] %v5370_v0 }
  0xff   : > { %509 = vst [vmem:[#allocation3 + $0x290] sm:$0xff] %v5370_v0  ;;  %510 = vst [vmem:[#allocation3 + $0x298] sm:$0xff] %v5370_v0 }
 0x100   : > { %511 = vst [vmem:[#allocation3 + $0x2a0] sm:$0xff] %v5370_v0  ;;  %512 = vst [vmem:[#allocation3 + $0x2a8] sm:$0xff] %v5370_v0 }
 0x101   : > { %513 = vst [vmem:[#allocation3 + $0x2b0] sm:$0xff] %v5370_v0  ;;  %514 = vst [vmem:[#allocation3 + $0x2b8] sm:$0xff] %v5370_v0 }
 0x102   : > { %515 = vst [vmem:[#allocation3 + $0x2c0] sm:$0xff] %v5370_v0  ;;  %516 = vst [vmem:[#allocation3 + $0x2c8] sm:$0xff] %v5370_v0 }
 0x103   : > { %517 = vst [vmem:[#allocation3 + $0x2d0] sm:$0xff] %v5370_v0  ;;  %518 = vst [vmem:[#allocation3 + $0x2d8] sm:$0xff] %v5370_v0 }
 0x104   : > { %519 = vst [vmem:[#allocation3 + $0x2e0] sm:$0xff] %v5370_v0  ;;  %520 = vst [vmem:[#allocation3 + $0x2e8] sm:$0xff] %v5370_v0 }
 0x105   : > { %521 = vst [vmem:[#allocation3 + $0x2f0] sm:$0xff] %v5370_v0  ;;  %522 = vst [vmem:[#allocation3 + $0x2f8] sm:$0xff] %v5370_v0 }
 0x106   : > { %523 = vst [vmem:[#allocation3 + $0x300] sm:$0xff] %v5370_v0  ;;  %524 = vst [vmem:[#allocation3 + $0x308] sm:$0xff] %v5370_v0 }
 0x107   : > { %525 = vst [vmem:[#allocation3 + $0x310] sm:$0xff] %v5370_v0  ;;  %526 = vst [vmem:[#allocation3 + $0x318] sm:$0xff] %v5370_v0 }
 0x108   : > { %527 = vst [vmem:[#allocation3 + $0x320] sm:$0xff] %v5370_v0  ;;  %528 = vst [vmem:[#allocation3 + $0x328] sm:$0xff] %v5370_v0 }
 0x109   : > { %529 = vst [vmem:[#allocation3 + $0x330] sm:$0xff] %v5370_v0  ;;  %530 = vst [vmem:[#allocation3 + $0x338] sm:$0xff] %v5370_v0 }
 0x10a   : > { %531 = vst [vmem:[#allocation3 + $0x340] sm:$0xff] %v5370_v0  ;;  %532 = vst [vmem:[#allocation3 + $0x348] sm:$0xff] %v5370_v0 }
 0x10b   : > { %533 = vst [vmem:[#allocation3 + $0x350] sm:$0xff] %v5370_v0  ;;  %534 = vst [vmem:[#allocation3 + $0x358] sm:$0xff] %v5370_v0 }
 0x10c   : > { %535 = vst [vmem:[#allocation3 + $0x360] sm:$0xff] %v5370_v0  ;;  %536 = vst [vmem:[#allocation3 + $0x368] sm:$0xff] %v5370_v0 }
 0x10d   : > { %537 = vst [vmem:[#allocation3 + $0x370] sm:$0xff] %v5370_v0  ;;  %538 = vst [vmem:[#allocation3 + $0x378] sm:$0xff] %v5370_v0 }
 0x10e   : > { %539 = vst [vmem:[#allocation3 + $0x380] sm:$0xff] %v5370_v0  ;;  %540 = vst [vmem:[#allocation3 + $0x388] sm:$0xff] %v5370_v0 }
 0x10f   : > { %541 = vst [vmem:[#allocation3 + $0x390] sm:$0xff] %v5370_v0  ;;  %542 = vst [vmem:[#allocation3 + $0x398] sm:$0xff] %v5370_v0 }
 0x110   : > { %543 = vst [vmem:[#allocation3 + $0x3a0] sm:$0xff] %v5370_v0  ;;  %544 = vst [vmem:[#allocation3 + $0x3a8] sm:$0xff] %v5370_v0 }
 0x111   : > { %545 = vst [vmem:[#allocation3 + $0x3b0] sm:$0xff] %v5370_v0  ;;  %546 = vst [vmem:[#allocation3 + $0x3b8] sm:$0xff] %v5370_v0 }
 0x112   : > { %547 = vst [vmem:[#allocation3 + $0x3c0] sm:$0xff] %v5370_v0  ;;  %548 = vst [vmem:[#allocation3 + $0x3c8] sm:$0xff] %v5370_v0 }
 0x113   : > { %549 = vst [vmem:[#allocation3 + $0x3d0] sm:$0xff] %v5370_v0  ;;  %550 = vst [vmem:[#allocation3 + $0x3d8] sm:$0xff] %v5370_v0 }
 0x114   : > { %551 = vst [vmem:[#allocation3 + $0x3e0] sm:$0xff] %v5370_v0  ;;  %552 = vst [vmem:[#allocation3 + $0x3e8] sm:$0xff] %v5370_v0 }
 0x115   : > { %553 = vst [vmem:[#allocation3 + $0x3f0] sm:$0xff] %v5370_v0  ;;  %554 = vst [vmem:[#allocation3 + $0x3f8] sm:$0xff] %v5370_v0 }
 0x116 PF: > { %v556_v1 = vld [vmem:[%s5705_s11 + $0x8] sm:$0xff]  ;;  %v558_v2 = vld [vmem:[%s5705_s11 + $0x18] sm:$0xff]  ;;  %v555_v3 = vld [vmem:[%s5705_s11] sm:$0xff]  ;;  %p4447_p10 = scmp.ne.s32.totalorder %s5344_s21, 1 }
 0x117   : > { %v4460_v4 = vpack.c.bf16 %v558_v2, %v556_v1  ;;  %v557_v5 = vld [vmem:[%s5705_s11 + $0x10] sm:$0xff]  ;;  %v560_v6 = vld [vmem:[%s5705_s11 + $0x28] sm:$0xff]  ;;  %v562_v7 = vld [vmem:[%s5705_s11 + $0x38] sm:$0xff] }
 0x118   : > { %v4462_v8 = vpack.c.bf16 %v557_v5, %v555_v3  ;;  %v4464_v9 = vpack.c.bf16 %v562_v7, %v560_v6  ;;  %v559_v10 = vld [vmem:[%s5705_s11 + $0x20] sm:$0xff]  ;;  %v561_v11 = vld [vmem:[%s5705_s11 + $0x30] sm:$0xff]  ;;  %v564_v12 = vld [vmem:[%s5705_s11 + $0x48] sm:$0xff] }
 0x119   : > { %4461 = vmatprep.subr.bf16.mxu0 %v4460_v4  ;;  %4589 = vmatprep.subr.bf16.mxu1 %v4460_v4  ;;  %v566_v13 = vld [vmem:[%s5705_s11 + $0x58] sm:$0xff]  ;;  %v4466_v14 = vpack.c.bf16 %v561_v11, %v559_v10  ;;  %v563_v16 = vld [vmem:[%s5705_s11 + $0x40] sm:$0xff]  ;;  %v565_v17 = vld [vmem:[%s5705_s11 + $0x50] sm:$0xff] }
 0x11a   : > { %4463 = vmatpush1.bf16.msra.mxu0 %v4462_v8  ;;  %4591 = vmatpush1.bf16.msra.mxu1 %v4462_v8  ;;  %v4468_v15 = vpack.c.bf16 %v566_v13, %v564_v12  ;;  %v568_v18 = vld [vmem:[%s5705_s11 + $0x68] sm:$0xff]  ;;  %v570_v19 = vld [vmem:[%s5705_s11 + $0x78] sm:$0xff]  ;;  %v4470_v20 = vpack.c.bf16 %v565_v17, %v563_v16  ;;  %v567_v22 = vld [vmem:[%s5705_s11 + $0x60] sm:$0xff] }
 0x11b   : > { %4465 = vmatprep.subr.bf16.mxu0 %v4464_v9  ;;  %4593 = vmatprep.subr.bf16.mxu1 %v4464_v9  ;;  %v4472_v21 = vpack.c.bf16 %v570_v19, %v568_v18  ;;  %v569_v23 = vld [vmem:[%s5705_s11 + $0x70] sm:$0xff]  ;;  %v572_v24 = vld [vmem:[%s5705_s11 + $0x88] sm:$0xff]  ;;  %v574_v25 = vld [vmem:[%s5705_s11 + $0x98] sm:$0xff] }
 0x11c   : > { %v4474_v26 = vpack.c.bf16 %v569_v23, %v567_v22  ;;  %v4476_v27 = vpack.c.bf16 %v574_v25, %v572_v24  ;;  %v571_v28 = vld [vmem:[%s5705_s11 + $0x80] sm:$0xff]  ;;  %v573_v29 = vld [vmem:[%s5705_s11 + $0x90] sm:$0xff]  ;;  %v576_v30 = vld [vmem:[%s5705_s11 + $0xa8] sm:$0xff] }
 0x11d   : > { %v578_v31 = vld [vmem:[%s5705_s11 + $0xb8] sm:$0xff]  ;;  %v4478_v32 = vpack.c.bf16 %v573_v29, %v571_v28  ;;  %v575_v34 = vld [vmem:[%s5705_s11 + $0xa0] sm:$0xff]  ;;  %v577_v35 = vld [vmem:[%s5705_s11 + $0xb0] sm:$0xff] }
 0x11e   : > { %4467 = vmatpush1.bf16.msra.mxu0 %v4466_v14  ;;  %4595 = vmatpush1.bf16.msra.mxu1 %v4466_v14  ;;  %v4480_v33 = vpack.c.bf16 %v578_v31, %v576_v30  ;;  %v580_v36 = vld [vmem:[%s5705_s11 + $0xc8] sm:$0xff]  ;;  %v582_v37 = vld [vmem:[%s5705_s11 + $0xd8] sm:$0xff]  ;;  %v4482_v38 = vpack.c.bf16 %v577_v35, %v575_v34  ;;  %v579_v39 = vld [vmem:[%s5705_s11 + $0xc0] sm:$0xff] }
 0x11f   : > { %4469 = vmatprep.subr.bf16.mxu0 %v4468_v15  ;;  %4597 = vmatprep.subr.bf16.mxu1 %v4468_v15  ;;  %v4484_v40 = vpack.c.bf16 %v582_v37, %v580_v36  ;;  %v581_v41 = vld [vmem:[%s5705_s11 + $0xd0] sm:$0xff]  ;;  %v812_v42 = vld [vmem:[%s5691_s27 + $0x8] sm:$0xff]  ;;  %v586_v45 = vld [vmem:[%s5705_s11 + $0xf8] sm:$0xff] }
 0x120   : > { %v2350_v43 = vld [vmem:[%s5698_s30 + $0x8] sm:$0xff]  ;;  %1131 = vmatprep.mubr.f32.mxu0 %v812_v42  ;;  %v4486_v46 = vpack.c.bf16 %v581_v41, %v579_v39  ;;  %v583_v48 = vld [vmem:[%s5705_s11 + $0xe0] sm:$0xff]  ;;  %v585_v49 = vld [vmem:[%s5705_s11 + $0xf0] sm:$0xff] }
 0x121   : > { %v584_v44 = vld [vmem:[%s5705_s11 + $0xe8] sm:$0xff]  ;;  %2669 = vmatprep.mubr.f32.mxu1 %v2350_v43  ;;  %v590_v51 = vld [vmem:[%s5705_s11 + $0x118] sm:$0xff]  ;;  %v4490_v52 = vpack.c.bf16 %v585_v49, %v583_v48  ;;  %v587_v54 = vld [vmem:[%s5705_s11 + $0x100] sm:$0xff] }
 0x122   : > { %4471 = vmatpush1.bf16.msra.mxu0 %v4470_v20  ;;  %4599 = vmatpush1.bf16.msra.mxu1 %v4470_v20  ;;  %v4488_v47 = vpack.c.bf16 %v586_v45, %v584_v44  ;;  %v588_v50 = vld [vmem:[%s5705_s11 + $0x108] sm:$0xff]  ;;  %v589_v55 = vld [vmem:[%s5705_s11 + $0x110] sm:$0xff]  ;;  %v594_v57 = vld [vmem:[%s5705_s11 + $0x138] sm:$0xff] }
 0x123   : > { %4473 = vmatprep.subr.bf16.mxu0 %v4472_v21  ;;  %4601 = vmatprep.subr.bf16.mxu1 %v4472_v21  ;;  %v4492_v53 = vpack.c.bf16 %v590_v51, %v588_v50  ;;  %v592_v56 = vld [vmem:[%s5705_s11 + $0x128] sm:$0xff]  ;;  %v4494_v58 = vpack.c.bf16 %v589_v55, %v587_v54  ;;  %v591_v60 = vld [vmem:[%s5705_s11 + $0x120] sm:$0xff]  ;;  %v593_v61 = vld [vmem:[%s5705_s11 + $0x130] sm:$0xff] }
 0x124   : > { %v4496_v59 = vpack.c.bf16 %v594_v57, %v592_v56  ;;  %v596_v62 = vld [vmem:[%s5705_s11 + $0x148] sm:$0xff]  ;;  %v598_v63 = vld [vmem:[%s5705_s11 + $0x158] sm:$0xff]  ;;  %v4498_v0 = vpack.c.bf16 %v593_v61, %v591_v60  ;;  %v595_v2 = vld [vmem:[%s5705_s11 + $0x140] sm:$0xff] }
 0x125   : > { %v4500_v1 = vpack.c.bf16 %v598_v63, %v596_v62  ;;  %v597_v3 = vld [vmem:[%s5705_s11 + $0x150] sm:$0xff]  ;;  %v600_v4 = vld [vmem:[%s5705_s11 + $0x168] sm:$0xff]  ;;  %v602_v5 = vld [vmem:[%s5705_s11 + $0x178] sm:$0xff] }
 0x126   : > { %4475 = vmatpush1.bf16.msra.mxu0 %v4474_v26  ;;  %4603 = vmatpush1.bf16.msra.mxu1 %v4474_v26  ;;  %v4502_v6 = vpack.c.bf16 %v597_v3, %v595_v2  ;;  %v4504_v7 = vpack.c.bf16 %v602_v5, %v600_v4  ;;  %v599_v8 = vld [vmem:[%s5705_s11 + $0x160] sm:$0xff]  ;;  %v601_v9 = vld [vmem:[%s5705_s11 + $0x170] sm:$0xff]  ;;  %v604_v10 = vld [vmem:[%s5705_s11 + $0x188] sm:$0xff] }
 0x127   : > { %4477 = vmatprep.subr.bf16.mxu0 %v4476_v27  ;;  %4605 = vmatprep.subr.bf16.mxu1 %v4476_v27  ;;  %v606_v11 = vld [vmem:[%s5705_s11 + $0x198] sm:$0xff]  ;;  %v4506_v12 = vpack.c.bf16 %v601_v9, %v599_v8  ;;  %v603_v14 = vld [vmem:[%s5705_s11 + $0x180] sm:$0xff]  ;;  %v605_v15 = vld [vmem:[%s5705_s11 + $0x190] sm:$0xff] }
 0x128   : > { %v4508_v13 = vpack.c.bf16 %v606_v11, %v604_v10  ;;  %v608_v16 = vld [vmem:[%s5705_s11 + $0x1a8] sm:$0xff]  ;;  %v610_v17 = vld [vmem:[%s5705_s11 + $0x1b8] sm:$0xff]  ;;  %v4510_v18 = vpack.c.bf16 %v605_v15, %v603_v14  ;;  %v607_v20 = vld [vmem:[%s5705_s11 + $0x1a0] sm:$0xff] }
 0x129   : > { %v4512_v19 = vpack.c.bf16 %v610_v17, %v608_v16  ;;  %v609_v21 = vld [vmem:[%s5705_s11 + $0x1b0] sm:$0xff]  ;;  %v612_v22 = vld [vmem:[%s5705_s11 + $0x1c8] sm:$0xff]  ;;  %v614_v23 = vld [vmem:[%s5705_s11 + $0x1d8] sm:$0xff] }
 0x12a   : > { %4479 = vmatpush1.bf16.msra.mxu0 %v4478_v32  ;;  %4607 = vmatpush1.bf16.msra.mxu1 %v4478_v32  ;;  %v4514_v24 = vpack.c.bf16 %v609_v21, %v607_v20  ;;  %v4516_v25 = vpack.c.bf16 %v614_v23, %v612_v22  ;;  %v611_v26 = vld [vmem:[%s5705_s11 + $0x1c0] sm:$0xff]  ;;  %v613_v27 = vld [vmem:[%s5705_s11 + $0x1d0] sm:$0xff]  ;;  %v616_v28 = vld [vmem:[%s5705_s11 + $0x1e8] sm:$0xff] }
 0x12b   : > { %4481 = vmatprep.subr.bf16.mxu0 %v4480_v33  ;;  %4609 = vmatprep.subr.bf16.mxu1 %v4480_v33  ;;  %v618_v29 = vld [vmem:[%s5705_s11 + $0x1f8] sm:$0xff]  ;;  %v4518_v30 = vpack.c.bf16 %v613_v27, %v611_v26  ;;  %v615_v32 = vld [vmem:[%s5705_s11 + $0x1e0] sm:$0xff]  ;;  %v617_v33 = vld [vmem:[%s5705_s11 + $0x1f0] sm:$0xff] }
 0x12c   : > { %v4520_v31 = vpack.c.bf16 %v618_v29, %v616_v28  ;;  %v620_v34 = vld [vmem:[%s5705_s11 + $0x208] sm:$0xff]  ;;  %v622_v35 = vld [vmem:[%s5705_s11 + $0x218] sm:$0xff]  ;;  %v4522_v36 = vpack.c.bf16 %v617_v33, %v615_v32  ;;  %v621_v39 = vld [vmem:[%s5705_s11 + $0x210] sm:$0xff] }
 0x12d   : > { %v4524_v37 = vpack.c.bf16 %v622_v35, %v620_v34  ;;  %v626_v41 = vld [vmem:[%s5705_s11 + $0x238] sm:$0xff]  ;;  %v811_v42 = vld [vmem:[%s5691_s27] sm:$0xff]  ;;  %v816_v45 = vld [vmem:[%s5691_s27 + $0x28] sm:$0xff] }
 0x12e   : > { %4483 = vmatpush1.bf16.msra.mxu0 %v4482_v38  ;;  %4611 = vmatpush1.bf16.msra.mxu1 %v4482_v38  ;;  %v619_v38 = vld [vmem:[%s5705_s11 + $0x200] sm:$0xff]  ;;  %v625_v49 = vld [vmem:[%s5705_s11 + $0x230] sm:$0xff]  ;;  %v628_v50 = vld [vmem:[%s5705_s11 + $0x248] sm:$0xff] }
 0x12f   : > { %4485 = vmatprep.subr.bf16.mxu0 %v4484_v40  ;;  %4613 = vmatprep.subr.bf16.mxu1 %v4484_v40  ;;  %v624_v40 = vld [vmem:[%s5705_s11 + $0x228] sm:$0xff]  ;;  %v2349_v43 = vld [vmem:[%s5698_s30] sm:$0xff]  ;;  %v4526_v44 = vpack.c.bf16 %v621_v39, %v619_v38  ;;  %v630_v51 = vld [vmem:[%s5705_s11 + $0x258] sm:$0xff] }
 0x130   : > { %v623_v48 = vld [vmem:[%s5705_s11 + $0x220] sm:$0xff]  ;;  %v820_v54 = vld [vmem:[%s5691_s27 + $0x48] sm:$0xff]  ;;  %v4532_v57 = vpack.c.bf16 %v630_v51, %v628_v50  ;;  %v634_v61 = vld [vmem:[%s5705_s11 + $0x278] sm:$0xff] }
 0x131   : > { %v2358_v55 = vld [vmem:[%s5698_s30 + $0x48] sm:$0xff]  ;;  %v4530_v56 = vpack.c.bf16 %v625_v49, %v623_v48  ;;  %v819_v62 = vld [vmem:[%s5691_s27 + $0x40] sm:$0xff]  ;;  %v633_v5 = vld [vmem:[%s5705_s11 + $0x270] sm:$0xff] }
 0x132   : > { %4487 = vmatpush1.bf16.msra.mxu0 %v4486_v46  ;;  %4615 = vmatpush1.bf16.msra.mxu1 %v4486_v46  ;;  %v2354_v46 = vld [vmem:[%s5698_s30 + $0x28] sm:$0xff]  ;;  %v2357_v63 = vld [vmem:[%s5698_s30 + $0x40] sm:$0xff]  ;;  %v637_v15 = vld [vmem:[%s5705_s11 + $0x290] sm:$0xff] }
 0x133   : > { %4489 = vmatprep.subr.bf16.mxu0 %v4488_v47  ;;  %4617 = vmatprep.subr.bf16.mxu1 %v4488_v47  ;;  %v4528_v47 = vpack.c.bf16 %v626_v41, %v624_v40  ;;  %v632_v60 = vld [vmem:[%s5705_s11 + $0x268] sm:$0xff]  ;;  %v631_v4 = vld [vmem:[%s5705_s11 + $0x260] sm:$0xff]  ;;  %v642_v17 = vld [vmem:[%s5705_s11 + $0x2b8] sm:$0xff] }
 0x134   : > { %v4536_v3 = vpack.c.bf16 %v634_v61, %v632_v60  ;;  %v823_v8 = vld [vmem:[%s5691_s27 + $0x60] sm:$0xff]  ;;  %v828_v10 = vld [vmem:[%s5691_s27 + $0x88] sm:$0xff]  ;;  %v646_v27 = vld [vmem:[%s5705_s11 + $0x2d8] sm:$0xff] }
 0x135   : > { %v2361_v9 = vld [vmem:[%s5698_s30 + $0x60] sm:$0xff]  ;;  %v2366_v11 = vld [vmem:[%s5698_s30 + $0x88] sm:$0xff]  ;;  %v645_v35 = vld [vmem:[%s5705_s11 + $0x2d0] sm:$0xff] }
 0x136   : > { %4491 = vmatpush1.bf16.msra.mxu0 %v4490_v52  ;;  %4619 = vmatpush1.bf16.msra.mxu1 %v4490_v52  ;;  %v815_v52 = vld [vmem:[%s5691_s27 + $0x20] sm:$0xff]  ;;  %v640_v16 = vld [vmem:[%s5705_s11 + $0x2a8] sm:$0xff] }
 0x137   : > { %4493 = vmatprep.subr.bf16.mxu0 %v4492_v53  ;;  %4621 = vmatprep.subr.bf16.mxu1 %v4492_v53  ;;  %v2353_v53 = vld [vmem:[%s5698_s30 + $0x20] sm:$0xff]  ;;  %v832_v20 = vld [vmem:[%s5691_s27 + $0xa8] sm:$0xff]  ;;  %v4544_v23 = vpack.c.bf16 %v642_v17, %v640_v16 }
 0x138   : > { %v635_v14 = vld [vmem:[%s5705_s11 + $0x280] sm:$0xff]  ;;  %v2370_v21 = vld [vmem:[%s5698_s30 + $0xa8] sm:$0xff] }
 0x139   : > { %v4542_v22 = vpack.c.bf16 %v637_v15, %v635_v14  ;;  %v644_v26 = vld [vmem:[%s5705_s11 + $0x2c8] sm:$0xff]  ;;  %v831_v28 = vld [vmem:[%s5691_s27 + $0xa0] sm:$0xff] }
 0x13a   : > { %4495 = vmatpush1.bf16.msra.mxu0 %v4494_v58  ;;  %4623 = vmatpush1.bf16.msra.mxu1 %v4494_v58  ;;  %v627_v58 = vld [vmem:[%s5705_s11 + $0x240] sm:$0xff]  ;;  %v4548_v33 = vpack.c.bf16 %v646_v27, %v644_v26  ;;  %v840_v40 = vld [vmem:[%s5691_s27 + $0xe8] sm:$0xff]  ;;  %v666_v26 = vld [vmem:[%s5705_s11 + $0x378] sm:$0xff] }
 0x13b   : > { %4497 = vmatprep.subr.bf16.mxu0 %v4496_v59  ;;  %4625 = vmatprep.subr.bf16.mxu1 %v4496_v59  ;;  %v629_v59 = vld [vmem:[%s5705_s11 + $0x250] sm:$0xff]  ;;  %v2369_v29 = vld [vmem:[%s5698_s30 + $0xa0] sm:$0xff]  ;;  %v2378_v41 = vld [vmem:[%s5698_s30 + $0xe8] sm:$0xff] }
 0x13c   : > { %v4534_v2 = vpack.c.bf16 %v629_v59, %v627_v58  ;;  %v643_v34 = vld [vmem:[%s5705_s11 + $0x2c0] sm:$0xff]  ;;  %v844_v50 = vld [vmem:[%s5691_s27 + $0x108] sm:$0xff] }
 0x13d   : > { %v835_v38 = vld [vmem:[%s5691_s27 + $0xc0] sm:$0xff]  ;;  %v2382_v51 = vld [vmem:[%s5698_s30 + $0x108] sm:$0xff] }
 0x13e   : > { %4499 = vmatpush1.bf16.msra.mxu0 %v4498_v0  ;;  %4627 = vmatpush1.bf16.msra.mxu1 %v4498_v0  ;;  %v824_v0 = vld [vmem:[%s5691_s27 + $0x68] sm:$0xff]  ;;  %v2373_v39 = vld [vmem:[%s5698_s30 + $0xc0] sm:$0xff] }
 0x13f   : > { %4501 = vmatprep.subr.bf16.mxu0 %v4500_v1  ;;  %4629 = vmatprep.subr.bf16.mxu1 %v4500_v1  ;;  %v2362_v1 = vld [vmem:[%s5698_s30 + $0x68] sm:$0xff]  ;;  %v839_v48 = vld [vmem:[%s5691_s27 + $0xe0] sm:$0xff] }
 0x140   : > { %v2377_v49 = vld [vmem:[%s5698_s30 + $0xe0] sm:$0xff]  ;;  %v848_v60 = vld [vmem:[%s5691_s27 + $0x128] sm:$0xff] }
 0x141   : > { %v843_v58 = vld [vmem:[%s5691_s27 + $0x100] sm:$0xff]  ;;  %v2386_v61 = vld [vmem:[%s5698_s30 + $0x128] sm:$0xff] }
 0x142   : > { %4503 = vmatpush1.bf16.msra.mxu0 %v4502_v6  ;;  %4631 = vmatpush1.bf16.msra.mxu1 %v4502_v6  ;;  %v636_v6 = vld [vmem:[%s5705_s11 + $0x288] sm:$0xff]  ;;  %v2381_v59 = vld [vmem:[%s5698_s30 + $0x100] sm:$0xff] }
 0x143   : > { %4505 = vmatprep.subr.bf16.mxu0 %v4504_v7  ;;  %4633 = vmatprep.subr.bf16.mxu1 %v4504_v7  ;;  %v638_v7 = vld [vmem:[%s5705_s11 + $0x298] sm:$0xff]  ;;  %v856_v14 = vld [vmem:[%s5691_s27 + $0x168] sm:$0xff]  ;;  %v855_v17 = vld [vmem:[%s5691_s27 + $0x160] sm:$0xff] }
 0x144   : > { %v2394_v15 = vld [vmem:[%s5698_s30 + $0x168] sm:$0xff]  ;;  %v663_v27 = vld [vmem:[%s5705_s11 + $0x360] sm:$0xff] }
 0x146   : > { %4507 = vmatpush1.bf16.msra.mxu0 %v4506_v12  ;;  %4635 = vmatpush1.bf16.msra.mxu1 %v4506_v12  ;;  %v4538_v12 = vpack.c.bf16 %v633_v5, %v631_v4  ;;  %v847_v4 = vld [vmem:[%s5691_s27 + $0x120] sm:$0xff] }
 0x147   : > { %4509 = vmatprep.subr.bf16.mxu0 %v4508_v13  ;;  %4637 = vmatprep.subr.bf16.mxu1 %v4508_v13  ;;  %v4540_v13 = vpack.c.bf16 %v638_v7, %v636_v6  ;;  %v2385_v5 = vld [vmem:[%s5698_s30 + $0x120] sm:$0xff]  ;;  %v852_v6 = vld [vmem:[%s5691_s27 + $0x148] sm:$0xff] }
 0x148   : > { %v2390_v7 = vld [vmem:[%s5698_s30 + $0x148] sm:$0xff] }
 0x14a   : > { %4511 = vmatpush1.bf16.msra.mxu0 %v4510_v18  ;;  %4639 = vmatpush1.bf16.msra.mxu1 %v4510_v18  ;;  %v827_v18 = vld [vmem:[%s5691_s27 + $0x80] sm:$0xff] }
 0x14b   : > { %4513 = vmatprep.subr.bf16.mxu0 %v4512_v19  ;;  %4641 = vmatprep.subr.bf16.mxu1 %v4512_v19  ;;  %v2365_v19 = vld [vmem:[%s5698_s30 + $0x80] sm:$0xff] }
 0x14e   : > { %4515 = vmatpush1.bf16.msra.mxu0 %v4514_v24  ;;  %4643 = vmatpush1.bf16.msra.mxu1 %v4514_v24  ;;  %v639_v24 = vld [vmem:[%s5705_s11 + $0x2a0] sm:$0xff] }
 0x14f   : > { %4517 = vmatprep.subr.bf16.mxu0 %v4516_v25  ;;  %4645 = vmatprep.subr.bf16.mxu1 %v4516_v25  ;;  %v641_v25 = vld [vmem:[%s5705_s11 + $0x2b0] sm:$0xff] }
 0x150   : > { %v4546_v32 = vpack.c.bf16 %v641_v25, %v639_v24  ;;  %v2402_v24 = vld [vmem:[%s5698_s30 + $0x1a8] sm:$0xff] }
 0x151   : > { %v664_v25 = vld [vmem:[%s5705_s11 + $0x368] sm:$0xff] }
 0x152   : > { %4519 = vmatpush1.bf16.msra.mxu0 %v4518_v30  ;;  %4647 = vmatpush1.bf16.msra.mxu1 %v4518_v30  ;;  %v836_v30 = vld [vmem:[%s5691_s27 + $0xc8] sm:$0xff] }
 0x153   : > { %4521 = vmatprep.subr.bf16.mxu0 %v4520_v31  ;;  %4649 = vmatprep.subr.bf16.mxu1 %v4520_v31  ;;  %v2374_v31 = vld [vmem:[%s5698_s30 + $0xc8] sm:$0xff] }
 0x156   : > { %4523 = vmatpush1.bf16.msra.mxu0 %v4522_v36  ;;  %4651 = vmatpush1.bf16.msra.mxu1 %v4522_v36  ;;  %v648_v36 = vld [vmem:[%s5705_s11 + $0x2e8] sm:$0xff] }
 0x157   : > { %4525 = vmatprep.subr.bf16.mxu0 %v4524_v37  ;;  %4653 = vmatprep.subr.bf16.mxu1 %v4524_v37  ;;  %v650_v37 = vld [vmem:[%s5705_s11 + $0x2f8] sm:$0xff] }
 0x159   : > { %1132 = vmatmul.mubr.f32.vlgmr.msra.gmra.mrb[0].mxu0 %v811_v42  ;;  %2670 = vmatmul.mubr.f32.vlgmr.msra.gmra.mrb[0].mxu1 %v2349_v43  ;;  %v4550_v42 = vpack.c.bf16 %v645_v35, %v643_v34  ;;  %v4552_v43 = vpack.c.bf16 %v650_v37, %v648_v36  ;;  %v867_v35 = vld [vmem:[%s5691_s27 + $0x1c0] sm:$0xff]  ;;  %v872_v37 = vld [vmem:[%s5691_s27 + $0x1e8] sm:$0xff] }
 0x15a   : > { %4527 = vmatpush1.bf16.msra.mxu0 %v4526_v44  ;;  %4655 = vmatpush1.bf16.msra.mxu1 %v4526_v44  ;;  %v647_v44 = vld [vmem:[%s5705_s11 + $0x2e0] sm:$0xff] }
 0x15b   : > { %1137 = vmatprep.mubr.f32.mxu0 %v816_v45  ;;  %2675 = vmatprep.mubr.f32.mxu1 %v2354_v46  ;;  %v649_v45 = vld [vmem:[%s5705_s11 + $0x2f0] sm:$0xff]  ;;  %v652_v46 = vld [vmem:[%s5705_s11 + $0x308] sm:$0xff]  ;;  %v2405_v36 = vld [vmem:[%s5698_s30 + $0x1c0] sm:$0xff] }
 0x15c   : > { %4529 = vmatprep.subr.bf16.mxu0 %v4528_v47  ;;  %4657 = vmatprep.subr.bf16.mxu1 %v4528_v47  ;;  %v654_v47 = vld [vmem:[%s5705_s11 + $0x318] sm:$0xff] }
 0x15d   : > { %1138 = vmatmul.mubr.f32.gmra.mrb[2].mxu0 %v815_v52  ;;  %2676 = vmatmul.mubr.f32.gmra.mrb[2].mxu1 %v2353_v53  ;;  %v4554_v52 = vpack.c.bf16 %v649_v45, %v647_v44  ;;  %v4556_v53 = vpack.c.bf16 %v654_v47, %v652_v46  ;;  %v2413_v44 = vld [vmem:[%s5698_s30 + $0x200] sm:$0xff]  ;;  %v880_v45 = vld [vmem:[%s5691_s27 + $0x228] sm:$0xff] }
 0x15e   : > { %1143 = vmatprep.mubr.f32.mxu0 %v820_v54  ;;  %2681 = vmatprep.mubr.f32.mxu1 %v2358_v55  ;;  %v651_v54 = vld [vmem:[%s5705_s11 + $0x300] sm:$0xff]  ;;  %v653_v55 = vld [vmem:[%s5705_s11 + $0x310] sm:$0xff]  ;;  %v2418_v46 = vld [vmem:[%s5698_s30 + $0x228] sm:$0xff] }
 0x15f   : > { %4531 = vmatpush1.bf16.msra.mxu0 %v4530_v56  ;;  %4659 = vmatpush1.bf16.msra.mxu1 %v4530_v56  ;;  %v656_v56 = vld [vmem:[%s5705_s11 + $0x328] sm:$0xff] }
 0x160   : > { %4533 = vmatprep.subr.bf16.mxu0 %v4532_v57  ;;  %4661 = vmatprep.subr.bf16.mxu1 %v4532_v57  ;;  %v658_v57 = vld [vmem:[%s5705_s11 + $0x338] sm:$0xff]  ;;  %v668_v47 = vld [vmem:[%s5705_s11 + $0x388] sm:$0xff] }
 0x161   : > { %1144 = vmatmul.mubr.f32.gmra.mrb[4].mxu0 %v819_v62  ;;  %2682 = vmatmul.mubr.f32.gmra.mrb[4].mxu1 %v2357_v63  ;;  %v4558_v62 = vpack.c.bf16 %v653_v55, %v651_v54  ;;  %v4560_v63 = vpack.c.bf16 %v658_v57, %v656_v56  ;;  %v884_v54 = vld [vmem:[%s5691_s27 + $0x248] sm:$0xff]  ;;  %v883_v57 = vld [vmem:[%s5691_s27 + $0x240] sm:$0xff] }
 0x162   : > { %1149 = vmatprep.mubr.f32.mxu0 %v824_v0  ;;  %2687 = vmatprep.mubr.f32.mxu1 %v2362_v1  ;;  %v655_v0 = vld [vmem:[%s5705_s11 + $0x320] sm:$0xff]  ;;  %v657_v1 = vld [vmem:[%s5705_s11 + $0x330] sm:$0xff]  ;;  %v2422_v55 = vld [vmem:[%s5698_s30 + $0x248] sm:$0xff] }
 0x163   : > { %4535 = vmatpush1.bf16.msra.mxu0 %v4534_v2  ;;  %4663 = vmatpush1.bf16.msra.mxu1 %v4534_v2  ;;  %v660_v2 = vld [vmem:[%s5705_s11 + $0x348] sm:$0xff] }
 0x164   : > { %4537 = vmatprep.subr.bf16.mxu0 %v4536_v3  ;;  %4665 = vmatprep.subr.bf16.mxu1 %v4536_v3  ;;  %v662_v3 = vld [vmem:[%s5705_s11 + $0x358] sm:$0xff] }
 0x165   : > { %1150 = vmatmul.mubr.f32.gmra.mrb[6].mxu0 %v823_v8  ;;  %2688 = vmatmul.mubr.f32.gmra.mrb[6].mxu1 %v2361_v9  ;;  %v4562_v8 = vpack.c.bf16 %v657_v1, %v655_v0  ;;  %v4564_v9 = vpack.c.bf16 %v662_v3, %v660_v2  ;;  %v2430_v0 = vld [vmem:[%s5698_s30 + $0x288] sm:$0xff]  ;;  %v891_v1 = vld [vmem:[%s5691_s27 + $0x280] sm:$0xff] }
 0x166   : > { %1155 = vmatprep.mubr.f32.mxu0 %v828_v10  ;;  %2693 = vmatprep.mubr.f32.mxu1 %v2366_v11  ;;  %v659_v10 = vld [vmem:[%s5705_s11 + $0x340] sm:$0xff]  ;;  %v661_v11 = vld [vmem:[%s5705_s11 + $0x350] sm:$0xff]  ;;  %v896_v3 = vld [vmem:[%s5691_s27 + $0x2a8] sm:$0xff] }
 0x167   : > { %4539 = vmatpush1.bf16.msra.mxu0 %v4538_v12  ;;  %4667 = vmatpush1.bf16.msra.mxu1 %v4538_v12  ;;  %v851_v12 = vld [vmem:[%s5691_s27 + $0x140] sm:$0xff]  ;;  %v4566_v16 = vpack.c.bf16 %v661_v11, %v659_v10  ;;  %v673_v11 = vld [vmem:[%s5705_s11 + $0x3b0] sm:$0xff] }
 0x168   : > { %4541 = vmatprep.subr.bf16.mxu0 %v4540_v13  ;;  %4669 = vmatprep.subr.bf16.mxu1 %v4540_v13  ;;  %v2389_v13 = vld [vmem:[%s5698_s30 + $0x140] sm:$0xff] }
 0x169   : > { %1156 = vmatmul.mubr.f32.gmra.mrb[8].mxu0 %v827_v18  ;;  %2694 = vmatmul.mubr.f32.gmra.mrb[8].mxu1 %v2365_v19  ;;  %v2393_v18 = vld [vmem:[%s5698_s30 + $0x160] sm:$0xff]  ;;  %v860_v19 = vld [vmem:[%s5691_s27 + $0x188] sm:$0xff] }
 0x16a   : > { %1161 = vmatprep.mubr.f32.mxu0 %v832_v20  ;;  %2699 = vmatprep.mubr.f32.mxu1 %v2370_v21  ;;  %v2398_v20 = vld [vmem:[%s5698_s30 + $0x188] sm:$0xff]  ;;  %v859_v21 = vld [vmem:[%s5691_s27 + $0x180] sm:$0xff] }
 0x16b   : > { %4543 = vmatpush1.bf16.msra.mxu0 %v4542_v22  ;;  %4671 = vmatpush1.bf16.msra.mxu1 %v4542_v22  ;;  %v2397_v22 = vld [vmem:[%s5698_s30 + $0x180] sm:$0xff] }
 0x16c   : > { %4545 = vmatprep.subr.bf16.mxu0 %v4544_v23  ;;  %4673 = vmatprep.subr.bf16.mxu1 %v4544_v23  ;;  %v864_v23 = vld [vmem:[%s5691_s27 + $0x1a8] sm:$0xff]  ;;  %v2429_v2 = vld [vmem:[%s5698_s30 + $0x280] sm:$0xff] }
 0x16d   : > { %1162 = vmatmul.mubr.f32.gmra.mrb[10].mxu0 %v831_v28  ;;  %2700 = vmatmul.mubr.f32.gmra.mrb[10].mxu1 %v2369_v29  ;;  %v863_v28 = vld [vmem:[%s5691_s27 + $0x1a0] sm:$0xff] }
 0x16e   : > { %1167 = vmatprep.mubr.f32.mxu0 %v836_v30  ;;  %2705 = vmatprep.mubr.f32.mxu1 %v2374_v31  ;;  %v2401_v29 = vld [vmem:[%s5698_s30 + $0x1a0] sm:$0xff]  ;;  %v4568_v30 = vpack.c.bf16 %v666_v26, %v664_v25  ;;  %v665_v31 = vld [vmem:[%s5705_s11 + $0x370] sm:$0xff]  ;;  %v912_v25 = vld [vmem:[%s5691_s27 + $0x328] sm:$0xff] }
 0x16f   : > { %4547 = vmatpush1.bf16.msra.mxu0 %v4546_v32  ;;  %4675 = vmatpush1.bf16.msra.mxu1 %v4546_v32  ;;  %v868_v32 = vld [vmem:[%s5691_s27 + $0x1c8] sm:$0xff]  ;;  %v4570_v34 = vpack.c.bf16 %v665_v31, %v663_v27  ;;  %v2449_v31 = vld [vmem:[%s5698_s30 + $0x320] sm:$0xff] }
 0x170   : > { %4549 = vmatprep.subr.bf16.mxu0 %v4548_v33  ;;  %4677 = vmatprep.subr.bf16.mxu1 %v4548_v33  ;;  %v2406_v33 = vld [vmem:[%s5698_s30 + $0x1c8] sm:$0xff] }
 0x171   : > { %1168 = vmatmul.mubr.f32.gmra.mrb[12].mxu0 %v835_v38  ;;  %2706 = vmatmul.mubr.f32.gmra.mrb[12].mxu1 %v2373_v39  ;;  %v2410_v38 = vld [vmem:[%s5698_s30 + $0x1e8] sm:$0xff]  ;;  %v871_v39 = vld [vmem:[%s5691_s27 + $0x1e0] sm:$0xff] }
 0x172   : > { %1173 = vmatprep.mubr.f32.mxu0 %v840_v40  ;;  %2711 = vmatprep.mubr.f32.mxu1 %v2378_v41  ;;  %v2409_v40 = vld [vmem:[%s5698_s30 + $0x1e0] sm:$0xff]  ;;  %v876_v41 = vld [vmem:[%s5691_s27 + $0x208] sm:$0xff] }
 0x173   : > { %4551 = vmatpush1.bf16.msra.mxu0 %v4550_v42  ;;  %4679 = vmatpush1.bf16.msra.mxu1 %v4550_v42  ;;  %v2414_v42 = vld [vmem:[%s5698_s30 + $0x208] sm:$0xff] }
 0x174   : > { %4553 = vmatprep.subr.bf16.mxu0 %v4552_v43  ;;  %4681 = vmatprep.subr.bf16.mxu1 %v4552_v43  ;;  %v875_v43 = vld [vmem:[%s5691_s27 + $0x200] sm:$0xff]  ;;  %v2450_v26 = vld [vmem:[%s5698_s30 + $0x328] sm:$0xff] }
 0x175   : > { %1174 = vmatmul.mubr.f32.gmra.mrb[14].mxu0 %v839_v48  ;;  %2712 = vmatmul.mubr.f32.gmra.mrb[14].mxu1 %v2377_v49  ;;  %v670_v48 = vld [vmem:[%s5705_s11 + $0x398] sm:$0xff]  ;;  %v667_v49 = vld [vmem:[%s5705_s11 + $0x380] sm:$0xff]  ;;  %v676_v27 = vld [vmem:[%s5705_s11 + $0x3c8] sm:$0xff] }
 0x176   : > { %1179 = vmatprep.mubr.f32.mxu0 %v844_v50  ;;  %2717 = vmatprep.mubr.f32.mxu1 %v2382_v51  ;;  %v879_v50 = vld [vmem:[%s5691_s27 + $0x220] sm:$0xff] }
 0x177   : > { %4555 = vmatpush1.bf16.msra.mxu0 %v4554_v52  ;;  %4683 = vmatpush1.bf16.msra.mxu1 %v4554_v52  ;;  %v2417_v51 = vld [vmem:[%s5698_s30 + $0x220] sm:$0xff]  ;;  %v4572_v52 = vpack.c.bf16 %v670_v48, %v668_v47  ;;  %v928_v47 = vld [vmem:[%s5691_s27 + $0x3a8] sm:$0xff] }
 0x178   : > { %4557 = vmatprep.subr.bf16.mxu0 %v4556_v53  ;;  %4685 = vmatprep.subr.bf16.mxu1 %v4556_v53  ;;  %v669_v53 = vld [vmem:[%s5705_s11 + $0x390] sm:$0xff]  ;;  %v2466_v48 = vld [vmem:[%s5698_s30 + $0x3a8] sm:$0xff] }
 0x179   : > { %1180 = vmatmul.mubr.f32.gmra.mrb[16].mxu0 %v843_v58  ;;  %2718 = vmatmul.mubr.f32.gmra.mrb[16].mxu1 %v2381_v59  ;;  %v4574_v56 = vpack.c.bf16 %v669_v53, %v667_v49  ;;  %v2421_v58 = vld [vmem:[%s5698_s30 + $0x240] sm:$0xff]  ;;  %v888_v59 = vld [vmem:[%s5691_s27 + $0x268] sm:$0xff] }
 0x17a   : > { %1185 = vmatprep.mubr.f32.mxu0 %v848_v60  ;;  %2723 = vmatprep.mubr.f32.mxu1 %v2386_v61  ;;  %v2426_v60 = vld [vmem:[%s5698_s30 + $0x268] sm:$0xff]  ;;  %v887_v61 = vld [vmem:[%s5691_s27 + $0x260] sm:$0xff] }
 0x17b   : > { %4559 = vmatpush1.bf16.msra.mxu0 %v4558_v62  ;;  %4687 = vmatpush1.bf16.msra.mxu1 %v4558_v62  ;;  %v2425_v62 = vld [vmem:[%s5698_s30 + $0x260] sm:$0xff]  ;;  %v680_v49 = vld [vmem:[%s5705_s11 + $0x3e8] sm:$0xff] }
 0x17c   : > { %4561 = vmatprep.subr.bf16.mxu0 %v4560_v63  ;;  %4689 = vmatprep.subr.bf16.mxu1 %v4560_v63  ;;  %v892_v63 = vld [vmem:[%s5691_s27 + $0x288] sm:$0xff]  ;;  %v2465_v53 = vld [vmem:[%s5698_s30 + $0x3a0] sm:$0xff] }
 0x17d   : > { %1186 = vmatmul.mubr.f32.gmra.mrb[18].mxu0 %v847_v4  ;;  %2724 = vmatmul.mubr.f32.gmra.mrb[18].mxu1 %v2385_v5  ;;  %v2434_v4 = vld [vmem:[%s5698_s30 + $0x2a8] sm:$0xff] }
 0x17e   : > { %1191 = vmatprep.mubr.f32.mxu0 %v852_v6  ;;  %2729 = vmatprep.mubr.f32.mxu1 %v2390_v7  ;;  %v672_v5 = vld [vmem:[%s5705_s11 + $0x3a8] sm:$0xff]  ;;  %v674_v6 = vld [vmem:[%s5705_s11 + $0x3b8] sm:$0xff]  ;;  %v671_v7 = vld [vmem:[%s5705_s11 + $0x3a0] sm:$0xff] }
 0x17f   : > { %4563 = vmatpush1.bf16.msra.mxu0 %v4562_v8  ;;  %4691 = vmatpush1.bf16.msra.mxu1 %v4562_v8  ;;  %v895_v8 = vld [vmem:[%s5691_s27 + $0x2a0] sm:$0xff]  ;;  %v4576_v10 = vpack.c.bf16 %v674_v6, %v672_v5  ;;  %v944_v5 = vld [vmem:[%s5691_s27 + $0x428] sm:$0xff] }
 0x180   : > { %4565 = vmatprep.subr.bf16.mxu0 %v4564_v9  ;;  %4693 = vmatprep.subr.bf16.mxu1 %v4564_v9  ;;  %v2433_v9 = vld [vmem:[%s5698_s30 + $0x2a0] sm:$0xff]  ;;  %v2482_v6 = vld [vmem:[%s5698_s30 + $0x428] sm:$0xff] }
 0x181   : > { %1192 = vmatmul.mubr.f32.gmra.mrb[20].mxu0 %v851_v12  ;;  %2730 = vmatmul.mubr.f32.gmra.mrb[20].mxu1 %v2389_v13  ;;  %v900_v12 = vld [vmem:[%s5691_s27 + $0x2c8] sm:$0xff] }
 0x182   : > { %1197 = vmatprep.mubr.f32.mxu0 %v856_v14  ;;  %2735 = vmatprep.mubr.f32.mxu1 %v2394_v15  ;;  %v2438_v13 = vld [vmem:[%s5698_s30 + $0x2c8] sm:$0xff]  ;;  %v4578_v14 = vpack.c.bf16 %v673_v11, %v671_v7  ;;  %v899_v15 = vld [vmem:[%s5691_s27 + $0x2c0] sm:$0xff] }
 0x183   : > { %4567 = vmatpush1.bf16.msra.mxu0 %v4566_v16  ;;  %4695 = vmatpush1.bf16.msra.mxu1 %v4566_v16  ;;  %v2437_v16 = vld [vmem:[%s5698_s30 + $0x2c0] sm:$0xff] }
 0x184   : > { %4569 = vmatprep.subr.bf16.mxu0 %v4568_v30  ;;  %4697 = vmatprep.subr.bf16.mxu1 %v4568_v30  ;;  %v911_v30 = vld [vmem:[%s5691_s27 + $0x320] sm:$0xff] }
 0x185   : > { %1198 = vmatmul.mubr.f32.gmra.mrb[22].mxu0 %v855_v17  ;;  %2736 = vmatmul.mubr.f32.gmra.mrb[22].mxu1 %v2393_v18  ;;  %v904_v17 = vld [vmem:[%s5691_s27 + $0x2e8] sm:$0xff]  ;;  %v943_v7 = vld [vmem:[%s5691_s27 + $0x420] sm:$0xff] }
 0x186   : > { %1203 = vmatprep.mubr.f32.mxu0 %v860_v19  ;;  %2741 = vmatprep.mubr.f32.mxu1 %v2398_v20  ;;  %v2442_v18 = vld [vmem:[%s5698_s30 + $0x2e8] sm:$0xff]  ;;  %v903_v19 = vld [vmem:[%s5691_s27 + $0x2e0] sm:$0xff] }
 0x187   : > { %4571 = vmatpush1.bf16.msra.mxu0 %v4570_v34  ;;  %4699 = vmatpush1.bf16.msra.mxu1 %v4570_v34  ;;  %v2441_v20 = vld [vmem:[%s5698_s30 + $0x2e0] sm:$0xff]  ;;  %v916_v34 = vld [vmem:[%s5691_s27 + $0x348] sm:$0xff] }
 0x188   : > { %4573 = vmatprep.subr.bf16.mxu0 %v4572_v52  ;;  %4701 = vmatprep.subr.bf16.mxu1 %v4572_v52  ;;  %v927_v52 = vld [vmem:[%s5691_s27 + $0x3a0] sm:$0xff] }
 0x189   : > { %1204 = vmatmul.mubr.f32.gmra.mrb[24].mxu0 %v859_v21  ;;  %2742 = vmatmul.mubr.f32.gmra.mrb[24].mxu1 %v2397_v22  ;;  %v908_v21 = vld [vmem:[%s5691_s27 + $0x308] sm:$0xff]  ;;  %v947_v11 = vld [vmem:[%s5691_s27 + $0x440] sm:$0xff] }
 0x18a   : > { %1209 = vmatprep.mubr.f32.mxu0 %v864_v23  ;;  %2747 = vmatprep.mubr.f32.mxu1 %v2402_v24  ;;  %v2446_v22 = vld [vmem:[%s5698_s30 + $0x308] sm:$0xff]  ;;  %v907_v23 = vld [vmem:[%s5691_s27 + $0x300] sm:$0xff] }
 0x18b   : > { %4575 = vmatpush1.bf16.msra.mxu0 %v4574_v56  ;;  %4703 = vmatpush1.bf16.msra.mxu1 %v4574_v56  ;;  %v2445_v24 = vld [vmem:[%s5698_s30 + $0x300] sm:$0xff]  ;;  %v932_v56 = vld [vmem:[%s5691_s27 + $0x3c8] sm:$0xff] }
 0x18c   : > { %4577 = vmatprep.subr.bf16.mxu0 %v4576_v10  ;;  %4705 = vmatprep.subr.bf16.mxu1 %v4576_v10  ;;  %v2486_v10 = vld [vmem:[%s5698_s30 + $0x448] sm:$0xff] }
 0x18d   : > { %1210 = vmatmul.mubr.f32.gmra.mrb[26].mxu0 %v863_v28  ;;  %2748 = vmatmul.mubr.f32.gmra.mrb[26].mxu1 %v2401_v29  ;;  %v678_v28 = vld [vmem:[%s5705_s11 + $0x3d8] sm:$0xff]  ;;  %v675_v29 = vld [vmem:[%s5705_s11 + $0x3c0] sm:$0xff] }
 0x18e   : > { %1215 = vmatprep.mubr.f32.mxu0 %v868_v32  ;;  %2753 = vmatprep.mubr.f32.mxu1 %v2406_v33  ;;  %v4580_v32 = vpack.c.bf16 %v678_v28, %v676_v27  ;;  %v677_v33 = vld [vmem:[%s5705_s11 + $0x3d0] sm:$0xff]  ;;  %v963_v27 = vld [vmem:[%s5691_s27 + $0x4c0] sm:$0xff] }
 0x18f   : > { %4579 = vmatpush1.bf16.msra.mxu0 %v4578_v14  ;;  %4707 = vmatpush1.bf16.msra.mxu1 %v4578_v14  ;;  %v2490_v14 = vld [vmem:[%s5698_s30 + $0x468] sm:$0xff]  ;;  %v2501_v28 = vld [vmem:[%s5698_s30 + $0x4c0] sm:$0xff] }
 0x190   : > { %4581 = vmatprep.subr.bf16.mxu0 %v4580_v32  ;;  %4709 = vmatprep.subr.bf16.mxu1 %v4580_v32  ;;  %v2505_v32 = vld [vmem:[%s5698_s30 + $0x4e0] sm:$0xff] }
 0x191   : > { %1216 = vmatmul.mubr.f32.gmra.mrb[28].mxu0 %v867_v35  ;;  %2754 = vmatmul.mubr.f32.gmra.mrb[28].mxu1 %v2405_v36  ;;  %v2454_v35 = vld [vmem:[%s5698_s30 + $0x348] sm:$0xff]  ;;  %v4582_v36 = vpack.c.bf16 %v677_v33, %v675_v29 }
 0x192   : > { %1221 = vmatprep.mubr.f32.mxu0 %v872_v37  ;;  %2759 = vmatprep.mubr.f32.mxu1 %v2410_v38  ;;  %v915_v37 = vld [vmem:[%s5691_s27 + $0x340] sm:$0xff]  ;;  %v968_v29 = vld [vmem:[%s5691_s27 + $0x4e8] sm:$0xff] }
 0x193   : > { %v2453_v38 = vld [vmem:[%s5698_s30 + $0x340] sm:$0xff]  ;;  %4583 = vmatpush1.bf16.msra.mxu0 %v4582_v36  ;;  %4711 = vmatpush1.bf16.msra.mxu1 %v4582_v36  ;;  %v972_v33 = vld [vmem:[%s5691_s27 + $0x508] sm:$0xff] }
 0x194   : > { %v2509_v36 = vld [vmem:[%s5698_s30 + $0x500] sm:$0xff] }
 0x195   : > { %1222 = vmatmul.mubr.f32.gmra.mrb[30].mxu0 %v871_v39  ;;  %2760 = vmatmul.mubr.f32.gmra.mrb[30].mxu1 %v2409_v40  ;;  %v920_v39 = vld [vmem:[%s5691_s27 + $0x368] sm:$0xff] }
 0x196   : > { %1227 = vmatprep.mubr.f32.mxu0 %v876_v41  ;;  %2765 = vmatprep.mubr.f32.mxu1 %v2414_v42  ;;  %v2458_v40 = vld [vmem:[%s5698_s30 + $0x368] sm:$0xff]  ;;  %v919_v41 = vld [vmem:[%s5691_s27 + $0x360] sm:$0xff] }
 0x197   : > { %v2457_v42 = vld [vmem:[%s5698_s30 + $0x360] sm:$0xff] }
 0x199   : > { %1228 = vmatmul.mubr.f32.gmra.mrb[32].mxu0 %v875_v43  ;;  %2766 = vmatmul.mubr.f32.gmra.mrb[32].mxu1 %v2413_v44  ;;  %v924_v43 = vld [vmem:[%s5691_s27 + $0x388] sm:$0xff] }
 0x19a   : > { %1233 = vmatprep.mubr.f32.mxu0 %v880_v45  ;;  %2771 = vmatprep.mubr.f32.mxu1 %v2418_v46  ;;  %v2462_v44 = vld [vmem:[%s5698_s30 + $0x388] sm:$0xff]  ;;  %v923_v45 = vld [vmem:[%s5691_s27 + $0x380] sm:$0xff] }
 0x19b   : > { %v2461_v46 = vld [vmem:[%s5698_s30 + $0x380] sm:$0xff] }
 0x19d   : > { %1234 = vmatmul.mubr.f32.gmra.mrb[34].mxu0 %v879_v50  ;;  %2772 = vmatmul.mubr.f32.gmra.mrb[34].mxu1 %v2417_v51  ;;  %v682_v50 = vld [vmem:[%s5705_s11 + $0x3f8] sm:$0xff]  ;;  %v679_v51 = vld [vmem:[%s5705_s11 + $0x3e0] sm:$0xff] }
 0x19e   : > { %1239 = vmatprep.mubr.f32.mxu0 %v884_v54  ;;  %2777 = vmatprep.mubr.f32.mxu1 %v2422_v55  ;;  %v4584_v54 = vpack.c.bf16 %v682_v50, %v680_v49  ;;  %v681_v55 = vld [vmem:[%s5705_s11 + $0x3f0] sm:$0xff]  ;;  %v988_v49 = vld [vmem:[%s5691_s27 + $0x588] sm:$0xff] }
 0x19f   : > { %v2526_v50 = vld [vmem:[%s5698_s30 + $0x588] sm:$0xff] }
 0x1a0   : > { %4585 = vmatprep.subr.bf16.mxu0 %v4584_v54  ;;  %4713 = vmatprep.subr.bf16.mxu1 %v4584_v54  ;;  %v2530_v54 = vld [vmem:[%s5698_s30 + $0x5a8] sm:$0xff] }
 0x1a1   : > { %1240 = vmatmul.mubr.f32.gmra.mrb[36].mxu0 %v883_v57  ;;  %2778 = vmatmul.mubr.f32.gmra.mrb[36].mxu1 %v2421_v58  ;;  %v2470_v57 = vld [vmem:[%s5698_s30 + $0x3c8] sm:$0xff]  ;;  %v4586_v58 = vpack.c.bf16 %v681_v55, %v679_v51  ;;  %v987_v51 = vld [vmem:[%s5691_s27 + $0x580] sm:$0xff] }
 0x1a2   : > { %1245 = vmatprep.mubr.f32.mxu0 %v888_v59  ;;  %2783 = vmatprep.mubr.f32.mxu1 %v2426_v60  ;;  %v931_v59 = vld [vmem:[%s5691_s27 + $0x3c0] sm:$0xff] }
 0x1a3   : > { %v2469_v60 = vld [vmem:[%s5698_s30 + $0x3c0] sm:$0xff]  ;;  %4587 = vmatpush1.bf16.msra.mxu0 %v4586_v58  ;;  %4715 = vmatpush1.bf16.msra.mxu1 %v4586_v58  ;;  %v2534_v58 = vld [vmem:[%s5698_s30 + $0x5c8] sm:$0xff] }
 0x1a4   : > { %v991_v55 = vld [vmem:[%s5691_s27 + $0x5a0] sm:$0xff] }
 0x1a5   : > { %1246 = vmatmul.mubr.f32.gmra.mrb[38].mxu0 %v887_v61  ;;  %2784 = vmatmul.mubr.f32.gmra.mrb[38].mxu1 %v2425_v62  ;;  %v936_v61 = vld [vmem:[%s5691_s27 + $0x3e8] sm:$0xff] }
 0x1a6   : > { %1251 = vmatprep.mubr.f32.mxu0 %v892_v63  ;;  %2789 = vmatprep.mubr.f32.mxu1 %v2430_v0  ;;  %v2474_v62 = vld [vmem:[%s5698_s30 + $0x3e8] sm:$0xff]  ;;  %v935_v63 = vld [vmem:[%s5691_s27 + $0x3e0] sm:$0xff] }
 0x1a7   : > { %v2473_v0 = vld [vmem:[%s5698_s30 + $0x3e0] sm:$0xff] }
 0x1a9   : > { %1252 = vmatmul.mubr.f32.gmra.mrb[40].mxu0 %v891_v1  ;;  %2790 = vmatmul.mubr.f32.gmra.mrb[40].mxu1 %v2429_v2  ;;  %v940_v1 = vld [vmem:[%s5691_s27 + $0x408] sm:$0xff] }
 0x1aa   : > { %1257 = vmatprep.mubr.f32.mxu0 %v896_v3  ;;  %2795 = vmatprep.mubr.f32.mxu1 %v2434_v4  ;;  %v2478_v2 = vld [vmem:[%s5698_s30 + $0x408] sm:$0xff]  ;;  %v939_v3 = vld [vmem:[%s5691_s27 + $0x400] sm:$0xff] }
 0x1ab   : > { %v2477_v4 = vld [vmem:[%s5698_s30 + $0x400] sm:$0xff] }
 0x1ad   : > { %1258 = vmatmul.mubr.f32.gmra.mrb[42].mxu0 %v895_v8  ;;  %2796 = vmatmul.mubr.f32.gmra.mrb[42].mxu1 %v2433_v9  ;;  %v2481_v8 = vld [vmem:[%s5698_s30 + $0x420] sm:$0xff]  ;;  %v948_v9 = vld [vmem:[%s5691_s27 + $0x448] sm:$0xff] }
 0x1ae   : > { %1263 = vmatprep.mubr.f32.mxu0 %v900_v12  ;;  %2801 = vmatprep.mubr.f32.mxu1 %v2438_v13  ;;  %v2485_v12 = vld [vmem:[%s5698_s30 + $0x440] sm:$0xff]  ;;  %v952_v13 = vld [vmem:[%s5691_s27 + $0x468] sm:$0xff] }
 0x1b1   : > { %1264 = vmatmul.mubr.f32.gmra.mrb[44].mxu0 %v899_v15  ;;  %2802 = vmatmul.mubr.f32.gmra.mrb[44].mxu1 %v2437_v16  ;;  %v951_v15 = vld [vmem:[%s5691_s27 + $0x460] sm:$0xff] }
 0x1b2   : > { %1269 = vmatprep.mubr.f32.mxu0 %v904_v17  ;;  %2807 = vmatprep.mubr.f32.mxu1 %v2442_v18  ;;  %v2489_v16 = vld [vmem:[%s5698_s30 + $0x460] sm:$0xff]  ;;  %v956_v17 = vld [vmem:[%s5691_s27 + $0x488] sm:$0xff] }
 0x1b3   : > { %v2494_v18 = vld [vmem:[%s5698_s30 + $0x488] sm:$0xff] }
 0x1b5   : > { %1270 = vmatmul.mubr.f32.gmra.mrb[46].mxu0 %v903_v19  ;;  %2808 = vmatmul.mubr.f32.gmra.mrb[46].mxu1 %v2441_v20  ;;  %v955_v19 = vld [vmem:[%s5691_s27 + $0x480] sm:$0xff] }
 0x1b6   : > { %1275 = vmatprep.mubr.f32.mxu0 %v908_v21  ;;  %2813 = vmatprep.mubr.f32.mxu1 %v2446_v22  ;;  %v2493_v20 = vld [vmem:[%s5698_s30 + $0x480] sm:$0xff]  ;;  %v960_v21 = vld [vmem:[%s5691_s27 + $0x4a8] sm:$0xff] }
 0x1b7   : > { %v2498_v22 = vld [vmem:[%s5698_s30 + $0x4a8] sm:$0xff] }
 0x1b9   : > { %1276 = vmatmul.mubr.f32.gmra.mrb[48].mxu0 %v907_v23  ;;  %2814 = vmatmul.mubr.f32.gmra.mrb[48].mxu1 %v2445_v24  ;;  %v959_v23 = vld [vmem:[%s5691_s27 + $0x4a0] sm:$0xff] }
 0x1ba   : > { %1281 = vmatprep.mubr.f32.mxu0 %v912_v25  ;;  %2819 = vmatprep.mubr.f32.mxu1 %v2450_v26  ;;  %v2497_v24 = vld [vmem:[%s5698_s30 + $0x4a0] sm:$0xff]  ;;  %v964_v25 = vld [vmem:[%s5691_s27 + $0x4c8] sm:$0xff] }
 0x1bb   : > { %v2502_v26 = vld [vmem:[%s5698_s30 + $0x4c8] sm:$0xff] }
 0x1bd   : > { %1282 = vmatmul.mubr.f32.gmra.mrb[50].mxu0 %v911_v30  ;;  %2820 = vmatmul.mubr.f32.gmra.mrb[50].mxu1 %v2449_v31  ;;  %v2506_v30 = vld [vmem:[%s5698_s30 + $0x4e8] sm:$0xff]  ;;  %v967_v31 = vld [vmem:[%s5691_s27 + $0x4e0] sm:$0xff] }
 0x1be   : > { %1287 = vmatprep.mubr.f32.mxu0 %v916_v34  ;;  %2825 = vmatprep.mubr.f32.mxu1 %v2454_v35  ;;  %v2510_v34 = vld [vmem:[%s5698_s30 + $0x508] sm:$0xff]  ;;  %v971_v35 = vld [vmem:[%s5691_s27 + $0x500] sm:$0xff] }
 0x1c1   : > { %1288 = vmatmul.mubr.f32.gmra.mrb[52].mxu0 %v915_v37  ;;  %2826 = vmatmul.mubr.f32.gmra.mrb[52].mxu1 %v2453_v38  ;;  %v976_v37 = vld [vmem:[%s5691_s27 + $0x528] sm:$0xff] }
 0x1c2   : > { %1293 = vmatprep.mubr.f32.mxu0 %v920_v39  ;;  %2831 = vmatprep.mubr.f32.mxu1 %v2458_v40  ;;  %v2514_v38 = vld [vmem:[%s5698_s30 + $0x528] sm:$0xff]  ;;  %v975_v39 = vld [vmem:[%s5691_s27 + $0x520] sm:$0xff] }
 0x1c3   : > { %v2513_v40 = vld [vmem:[%s5698_s30 + $0x520] sm:$0xff] }
 0x1c5   : > { %1294 = vmatmul.mubr.f32.gmra.mrb[54].mxu0 %v919_v41  ;;  %2832 = vmatmul.mubr.f32.gmra.mrb[54].mxu1 %v2457_v42  ;;  %v980_v41 = vld [vmem:[%s5691_s27 + $0x548] sm:$0xff] }
 0x1c6   : > { %1299 = vmatprep.mubr.f32.mxu0 %v924_v43  ;;  %2837 = vmatprep.mubr.f32.mxu1 %v2462_v44  ;;  %v2518_v42 = vld [vmem:[%s5698_s30 + $0x548] sm:$0xff]  ;;  %v979_v43 = vld [vmem:[%s5691_s27 + $0x540] sm:$0xff] }
 0x1c7   : > { %v2517_v44 = vld [vmem:[%s5698_s30 + $0x540] sm:$0xff] }
 0x1c9   : > { %1300 = vmatmul.mubr.f32.gmra.mrb[56].mxu0 %v923_v45  ;;  %2838 = vmatmul.mubr.f32.gmra.mrb[56].mxu1 %v2461_v46  ;;  %v984_v45 = vld [vmem:[%s5691_s27 + $0x568] sm:$0xff] }
 0x1ca   : > { %1305 = vmatprep.mubr.f32.mxu0 %v928_v47  ;;  %2843 = vmatprep.mubr.f32.mxu1 %v2466_v48  ;;  %v2522_v46 = vld [vmem:[%s5698_s30 + $0x568] sm:$0xff]  ;;  %v983_v47 = vld [vmem:[%s5691_s27 + $0x560] sm:$0xff] }
 0x1cb   : > { %v2521_v48 = vld [vmem:[%s5698_s30 + $0x560] sm:$0xff] }
 0x1cd   : > { %1306 = vmatmul.mubr.f32.gmra.mrb[58].mxu0 %v927_v52  ;;  %2844 = vmatmul.mubr.f32.gmra.mrb[58].mxu1 %v2465_v53  ;;  %v2525_v52 = vld [vmem:[%s5698_s30 + $0x580] sm:$0xff]  ;;  %v992_v53 = vld [vmem:[%s5691_s27 + $0x5a8] sm:$0xff] }
 0x1ce   : > { %1311 = vmatprep.mubr.f32.mxu0 %v932_v56  ;;  %2849 = vmatprep.mubr.f32.mxu1 %v2470_v57  ;;  %v2529_v56 = vld [vmem:[%s5698_s30 + $0x5a0] sm:$0xff]  ;;  %v996_v57 = vld [vmem:[%s5691_s27 + $0x5c8] sm:$0xff] }
 0x1d1   : > { %1312 = vmatmul.mubr.f32.gmra.mrb[60].mxu0 %v931_v59  ;;  %2850 = vmatmul.mubr.f32.gmra.mrb[60].mxu1 %v2469_v60  ;;  %v995_v59 = vld [vmem:[%s5691_s27 + $0x5c0] sm:$0xff] }
 0x1d2   : > { %1317 = vmatprep.mubr.f32.mxu0 %v936_v61  ;;  %2855 = vmatprep.mubr.f32.mxu1 %v2474_v62  ;;  %v2533_v60 = vld [vmem:[%s5698_s30 + $0x5c0] sm:$0xff]  ;;  %v1000_v61 = vld [vmem:[%s5691_s27 + $0x5e8] sm:$0xff] }
 0x1d3   : > { %v2538_v62 = vld [vmem:[%s5698_s30 + $0x5e8] sm:$0xff] }
 0x1d5   : > { %1318 = vmatmul.mubr.f32.gmra.mrb[62].mxu0 %v935_v63  ;;  %2856 = vmatmul.mubr.f32.gmra.mrb[62].mxu1 %v2473_v0  ;;  %v999_v63 = vld [vmem:[%s5691_s27 + $0x5e0] sm:$0xff] }
 0x1d6   : > { %1323 = vmatprep.mubr.f32.mxu0 %v940_v1  ;;  %2861 = vmatprep.mubr.f32.mxu1 %v2478_v2  ;;  %v2537_v0 = vld [vmem:[%s5698_s30 + $0x5e0] sm:$0xff]  ;;  %v1004_v1 = vld [vmem:[%s5691_s27 + $0x608] sm:$0xff] }
 0x1d7   : > { %v2542_v2 = vld [vmem:[%s5698_s30 + $0x608] sm:$0xff] }
 0x1d9   : > { %1324 = vmatmul.mubr.f32.gmra.mrb[64].mxu0 %v939_v3  ;;  %2862 = vmatmul.mubr.f32.gmra.mrb[64].mxu1 %v2477_v4  ;;  %v1003_v3 = vld [vmem:[%s5691_s27 + $0x600] sm:$0xff] }
 0x1da   : > { %1329 = vmatprep.mubr.f32.mxu0 %v944_v5  ;;  %2867 = vmatprep.mubr.f32.mxu1 %v2482_v6  ;;  %v2541_v4 = vld [vmem:[%s5698_s30 + $0x600] sm:$0xff]  ;;  %v1008_v5 = vld [vmem:[%s5691_s27 + $0x628] sm:$0xff] }
 0x1db   : > { %v2546_v6 = vld [vmem:[%s5698_s30 + $0x628] sm:$0xff] }
 0x1dd   : > { %1330 = vmatmul.mubr.f32.gmra.mrb[66].mxu0 %v943_v7  ;;  %2868 = vmatmul.mubr.f32.gmra.mrb[66].mxu1 %v2481_v8  ;;  %v1007_v7 = vld [vmem:[%s5691_s27 + $0x620] sm:$0xff] }
 0x1de   : > { %1335 = vmatprep.mubr.f32.mxu0 %v948_v9  ;;  %2873 = vmatprep.mubr.f32.mxu1 %v2486_v10  ;;  %v2545_v8 = vld [vmem:[%s5698_s30 + $0x620] sm:$0xff]  ;;  %v1012_v9 = vld [vmem:[%s5691_s27 + $0x648] sm:$0xff] }
 0x1df   : > { %v2550_v10 = vld [vmem:[%s5698_s30 + $0x648] sm:$0xff] }
 0x1e1   : > { %1336 = vmatmul.mubr.f32.gmra.mrb[68].mxu0 %v947_v11  ;;  %2874 = vmatmul.mubr.f32.gmra.mrb[68].mxu1 %v2485_v12  ;;  %v1011_v11 = vld [vmem:[%s5691_s27 + $0x640] sm:$0xff] }
 0x1e2   : > { %1341 = vmatprep.mubr.f32.mxu0 %v952_v13  ;;  %2879 = vmatprep.mubr.f32.mxu1 %v2490_v14  ;;  %v2549_v12 = vld [vmem:[%s5698_s30 + $0x640] sm:$0xff]  ;;  %v1016_v13 = vld [vmem:[%s5691_s27 + $0x668] sm:$0xff] }
 0x1e3   : > { %v2554_v14 = vld [vmem:[%s5698_s30 + $0x668] sm:$0xff] }
 0x1e5   : > { %1342 = vmatmul.mubr.f32.gmra.mrb[70].mxu0 %v951_v15  ;;  %2880 = vmatmul.mubr.f32.gmra.mrb[70].mxu1 %v2489_v16  ;;  %v1015_v15 = vld [vmem:[%s5691_s27 + $0x660] sm:$0xff] }
 0x1e6   : > { %1347 = vmatprep.mubr.f32.mxu0 %v956_v17  ;;  %2885 = vmatprep.mubr.f32.mxu1 %v2494_v18  ;;  %v2553_v16 = vld [vmem:[%s5698_s30 + $0x660] sm:$0xff]  ;;  %v1020_v17 = vld [vmem:[%s5691_s27 + $0x688] sm:$0xff] }
 0x1e7   : > { %v2558_v18 = vld [vmem:[%s5698_s30 + $0x688] sm:$0xff] }
 0x1e9   : > { %1348 = vmatmul.mubr.f32.gmra.mrb[72].mxu0 %v955_v19  ;;  %2886 = vmatmul.mubr.f32.gmra.mrb[72].mxu1 %v2493_v20  ;;  %v1019_v19 = vld [vmem:[%s5691_s27 + $0x680] sm:$0xff] }
 0x1ea   : > { %1353 = vmatprep.mubr.f32.mxu0 %v960_v21  ;;  %2891 = vmatprep.mubr.f32.mxu1 %v2498_v22  ;;  %v2557_v20 = vld [vmem:[%s5698_s30 + $0x680] sm:$0xff]  ;;  %v1024_v21 = vld [vmem:[%s5691_s27 + $0x6a8] sm:$0xff] }
 0x1eb   : > { %v2562_v22 = vld [vmem:[%s5698_s30 + $0x6a8] sm:$0xff] }
 0x1ed   : > { %1354 = vmatmul.mubr.f32.gmra.mrb[74].mxu0 %v959_v23  ;;  %2892 = vmatmul.mubr.f32.gmra.mrb[74].mxu1 %v2497_v24  ;;  %v1023_v23 = vld [vmem:[%s5691_s27 + $0x6a0] sm:$0xff] }
 0x1ee   : > { %1359 = vmatprep.mubr.f32.mxu0 %v964_v25  ;;  %2897 = vmatprep.mubr.f32.mxu1 %v2502_v26  ;;  %v2561_v24 = vld [vmem:[%s5698_s30 + $0x6a0] sm:$0xff]  ;;  %v1028_v25 = vld [vmem:[%s5691_s27 + $0x6c8] sm:$0xff] }
 0x1ef   : > { %v2566_v26 = vld [vmem:[%s5698_s30 + $0x6c8] sm:$0xff] }
 0x1f1   : > { %1360 = vmatmul.mubr.f32.gmra.mrb[76].mxu0 %v963_v27  ;;  %2898 = vmatmul.mubr.f32.gmra.mrb[76].mxu1 %v2501_v28  ;;  %v1027_v27 = vld [vmem:[%s5691_s27 + $0x6c0] sm:$0xff] }
 0x1f2   : > { %1365 = vmatprep.mubr.f32.mxu0 %v968_v29  ;;  %2903 = vmatprep.mubr.f32.mxu1 %v2506_v30  ;;  %v2565_v28 = vld [vmem:[%s5698_s30 + $0x6c0] sm:$0xff]  ;;  %v1032_v29 = vld [vmem:[%s5691_s27 + $0x6e8] sm:$0xff] }
 0x1f3   : > { %v2570_v30 = vld [vmem:[%s5698_s30 + $0x6e8] sm:$0xff] }
 0x1f5   : > { %1366 = vmatmul.mubr.f32.gmra.mrb[78].mxu0 %v967_v31  ;;  %2904 = vmatmul.mubr.f32.gmra.mrb[78].mxu1 %v2505_v32  ;;  %v1031_v31 = vld [vmem:[%s5691_s27 + $0x6e0] sm:$0xff] }
 0x1f6   : > { %1371 = vmatprep.mubr.f32.mxu0 %v972_v33  ;;  %2909 = vmatprep.mubr.f32.mxu1 %v2510_v34  ;;  %v2569_v32 = vld [vmem:[%s5698_s30 + $0x6e0] sm:$0xff]  ;;  %v1036_v33 = vld [vmem:[%s5691_s27 + $0x708] sm:$0xff] }
 0x1f7   : > { %v2574_v34 = vld [vmem:[%s5698_s30 + $0x708] sm:$0xff] }
 0x1f9   : > { %1372 = vmatmul.mubr.f32.gmra.mrb[80].mxu0 %v971_v35  ;;  %2910 = vmatmul.mubr.f32.gmra.mrb[80].mxu1 %v2509_v36  ;;  %v1035_v35 = vld [vmem:[%s5691_s27 + $0x700] sm:$0xff] }
 0x1fa   : > { %1377 = vmatprep.mubr.f32.mxu0 %v976_v37  ;;  %2915 = vmatprep.mubr.f32.mxu1 %v2514_v38  ;;  %v2573_v36 = vld [vmem:[%s5698_s30 + $0x700] sm:$0xff]  ;;  %v1040_v37 = vld [vmem:[%s5691_s27 + $0x728] sm:$0xff] }
 0x1fb   : > { %v2578_v38 = vld [vmem:[%s5698_s30 + $0x728] sm:$0xff] }
 0x1fd   : > { %1378 = vmatmul.mubr.f32.gmra.mrb[82].mxu0 %v975_v39  ;;  %2916 = vmatmul.mubr.f32.gmra.mrb[82].mxu1 %v2513_v40  ;;  %v1039_v39 = vld [vmem:[%s5691_s27 + $0x720] sm:$0xff] }
 0x1fe   : > { %1383 = vmatprep.mubr.f32.mxu0 %v980_v41  ;;  %2921 = vmatprep.mubr.f32.mxu1 %v2518_v42  ;;  %v2577_v40 = vld [vmem:[%s5698_s30 + $0x720] sm:$0xff]  ;;  %v1044_v41 = vld [vmem:[%s5691_s27 + $0x748] sm:$0xff] }
 0x1ff   : > { %v2582_v42 = vld [vmem:[%s5698_s30 + $0x748] sm:$0xff] }
 0x201   : > { %1384 = vmatmul.mubr.f32.gmra.mrb[84].mxu0 %v979_v43  ;;  %2922 = vmatmul.mubr.f32.gmra.mrb[84].mxu1 %v2517_v44  ;;  %v1043_v43 = vld [vmem:[%s5691_s27 + $0x740] sm:$0xff] }
 0x202   : > { %1389 = vmatprep.mubr.f32.mxu0 %v984_v45  ;;  %2927 = vmatprep.mubr.f32.mxu1 %v2522_v46  ;;  %v2581_v44 = vld [vmem:[%s5698_s30 + $0x740] sm:$0xff]  ;;  %v1048_v45 = vld [vmem:[%s5691_s27 + $0x768] sm:$0xff] }
 0x203   : > { %v2586_v46 = vld [vmem:[%s5698_s30 + $0x768] sm:$0xff] }
 0x205   : > { %1390 = vmatmul.mubr.f32.gmra.mrb[86].mxu0 %v983_v47  ;;  %2928 = vmatmul.mubr.f32.gmra.mrb[86].mxu1 %v2521_v48  ;;  %v1047_v47 = vld [vmem:[%s5691_s27 + $0x760] sm:$0xff] }
 0x206   : > { %1395 = vmatprep.mubr.f32.mxu0 %v988_v49  ;;  %2933 = vmatprep.mubr.f32.mxu1 %v2526_v50  ;;  %v2585_v48 = vld [vmem:[%s5698_s30 + $0x760] sm:$0xff]  ;;  %v1052_v49 = vld [vmem:[%s5691_s27 + $0x788] sm:$0xff] }
 0x207   : > { %v2590_v50 = vld [vmem:[%s5698_s30 + $0x788] sm:$0xff] }
 0x209   : > { %1396 = vmatmul.mubr.f32.gmra.mrb[88].mxu0 %v987_v51  ;;  %2934 = vmatmul.mubr.f32.gmra.mrb[88].mxu1 %v2525_v52  ;;  %v1051_v51 = vld [vmem:[%s5691_s27 + $0x780] sm:$0xff] }
 0x20a   : > { %1401 = vmatprep.mubr.f32.mxu0 %v992_v53  ;;  %2939 = vmatprep.mubr.f32.mxu1 %v2530_v54  ;;  %v2589_v52 = vld [vmem:[%s5698_s30 + $0x780] sm:$0xff]  ;;  %v1056_v53 = vld [vmem:[%s5691_s27 + $0x7a8] sm:$0xff] }
 0x20b   : > { %v2594_v54 = vld [vmem:[%s5698_s30 + $0x7a8] sm:$0xff] }
 0x20d   : > { %1402 = vmatmul.mubr.f32.gmra.mrb[90].mxu0 %v991_v55  ;;  %2940 = vmatmul.mubr.f32.gmra.mrb[90].mxu1 %v2529_v56  ;;  %v1055_v55 = vld [vmem:[%s5691_s27 + $0x7a0] sm:$0xff] }
 0x20e   : > { %1407 = vmatprep.mubr.f32.mxu0 %v996_v57  ;;  %2945 = vmatprep.mubr.f32.mxu1 %v2534_v58  ;;  %v2593_v56 = vld [vmem:[%s5698_s30 + $0x7a0] sm:$0xff]  ;;  %v1060_v57 = vld [vmem:[%s5691_s27 + $0x7c8] sm:$0xff] }
 0x20f   : > { %v2598_v58 = vld [vmem:[%s5698_s30 + $0x7c8] sm:$0xff] }
 0x211   : > { %1408 = vmatmul.mubr.f32.gmra.mrb[92].mxu0 %v995_v59  ;;  %2946 = vmatmul.mubr.f32.gmra.mrb[92].mxu1 %v2533_v60  ;;  %v1059_v59 = vld [vmem:[%s5691_s27 + $0x7c0] sm:$0xff] }
 0x212   : > { %1413 = vmatprep.mubr.f32.mxu0 %v1000_v61  ;;  %2951 = vmatprep.mubr.f32.mxu1 %v2538_v62  ;;  %v2597_v60 = vld [vmem:[%s5698_s30 + $0x7c0] sm:$0xff]  ;;  %v1064_v61 = vld [vmem:[%s5691_s27 + $0x7e8] sm:$0xff] }
 0x213   : > { %v2602_v62 = vld [vmem:[%s5698_s30 + $0x7e8] sm:$0xff] }
 0x215   : > { %1414 = vmatmul.mubr.f32.gmra.mrb[94].mxu0 %v999_v63  ;;  %2952 = vmatmul.mubr.f32.gmra.mrb[94].mxu1 %v2537_v0  ;;  %v1063_v63 = vld [vmem:[%s5691_s27 + $0x7e0] sm:$0xff] }
 0x216   : > { %1419 = vmatprep.mubr.f32.mxu0 %v1004_v1  ;;  %2957 = vmatprep.mubr.f32.mxu1 %v2542_v2  ;;  %v2601_v0 = vld [vmem:[%s5698_s30 + $0x7e0] sm:$0xff]  ;;  %v814_v1 = vld [vmem:[%s5691_s27 + $0x18] sm:$0xff] }
 0x217   : > { %v2352_v2 = vld [vmem:[%s5698_s30 + $0x18] sm:$0xff] }
 0x219   : > { %1420 = vmatmul.mubr.f32.gmra.mrb[96].mxu0 %v1003_v3  ;;  %2958 = vmatmul.mubr.f32.gmra.mrb[96].mxu1 %v2541_v4  ;;  %v813_v3 = vld [vmem:[%s5691_s27 + $0x10] sm:$0xff] }
 0x21a   : > { %1425 = vmatprep.mubr.f32.mxu0 %v1008_v5  ;;  %2963 = vmatprep.mubr.f32.mxu1 %v2546_v6  ;;  %v2351_v4 = vld [vmem:[%s5698_s30 + $0x10] sm:$0xff]  ;;  %v818_v5 = vld [vmem:[%s5691_s27 + $0x38] sm:$0xff] }
 0x21b   : > { %v2356_v6 = vld [vmem:[%s5698_s30 + $0x38] sm:$0xff] }
 0x21d   : > { %1426 = vmatmul.mubr.f32.gmra.mrb[98].mxu0 %v1007_v7  ;;  %2964 = vmatmul.mubr.f32.gmra.mrb[98].mxu1 %v2545_v8  ;;  %v817_v7 = vld [vmem:[%s5691_s27 + $0x30] sm:$0xff] }
 0x21e   : > { %1431 = vmatprep.mubr.f32.mxu0 %v1012_v9  ;;  %2969 = vmatprep.mubr.f32.mxu1 %v2550_v10  ;;  %v2355_v8 = vld [vmem:[%s5698_s30 + $0x30] sm:$0xff]  ;;  %v822_v9 = vld [vmem:[%s5691_s27 + $0x58] sm:$0xff] }
 0x21f   : > { %v2360_v10 = vld [vmem:[%s5698_s30 + $0x58] sm:$0xff] }
 0x221   : > { %1432 = vmatmul.mubr.f32.gmra.mrb[100].mxu0 %v1011_v11  ;;  %2970 = vmatmul.mubr.f32.gmra.mrb[100].mxu1 %v2549_v12  ;;  %v821_v11 = vld [vmem:[%s5691_s27 + $0x50] sm:$0xff] }
 0x222   : > { %1437 = vmatprep.mubr.f32.mxu0 %v1016_v13  ;;  %2975 = vmatprep.mubr.f32.mxu1 %v2554_v14  ;;  %v2359_v12 = vld [vmem:[%s5698_s30 + $0x50] sm:$0xff]  ;;  %v826_v13 = vld [vmem:[%s5691_s27 + $0x78] sm:$0xff] }
 0x223   : > { %v2364_v14 = vld [vmem:[%s5698_s30 + $0x78] sm:$0xff] }
 0x225   : > { %1438 = vmatmul.mubr.f32.gmra.mrb[102].mxu0 %v1015_v15  ;;  %2976 = vmatmul.mubr.f32.gmra.mrb[102].mxu1 %v2553_v16  ;;  %v825_v15 = vld [vmem:[%s5691_s27 + $0x70] sm:$0xff] }
 0x226   : > { %1443 = vmatprep.mubr.f32.mxu0 %v1020_v17  ;;  %2981 = vmatprep.mubr.f32.mxu1 %v2558_v18  ;;  %v2363_v16 = vld [vmem:[%s5698_s30 + $0x70] sm:$0xff]  ;;  %v830_v17 = vld [vmem:[%s5691_s27 + $0x98] sm:$0xff] }
 0x227   : > { %v2368_v18 = vld [vmem:[%s5698_s30 + $0x98] sm:$0xff] }
 0x229   : > { %1444 = vmatmul.mubr.f32.gmra.mrb[104].mxu0 %v1019_v19  ;;  %2982 = vmatmul.mubr.f32.gmra.mrb[104].mxu1 %v2557_v20  ;;  %v829_v19 = vld [vmem:[%s5691_s27 + $0x90] sm:$0xff] }
 0x22a   : > { %1449 = vmatprep.mubr.f32.mxu0 %v1024_v21  ;;  %2987 = vmatprep.mubr.f32.mxu1 %v2562_v22  ;;  %v2367_v20 = vld [vmem:[%s5698_s30 + $0x90] sm:$0xff]  ;;  %v834_v21 = vld [vmem:[%s5691_s27 + $0xb8] sm:$0xff] }
 0x22b   : > { %v2372_v22 = vld [vmem:[%s5698_s30 + $0xb8] sm:$0xff] }
 0x22d   : > { %1450 = vmatmul.mubr.f32.gmra.mrb[106].mxu0 %v1023_v23  ;;  %2988 = vmatmul.mubr.f32.gmra.mrb[106].mxu1 %v2561_v24  ;;  %v833_v23 = vld [vmem:[%s5691_s27 + $0xb0] sm:$0xff] }
 0x22e   : > { %1455 = vmatprep.mubr.f32.mxu0 %v1028_v25  ;;  %2993 = vmatprep.mubr.f32.mxu1 %v2566_v26  ;;  %v2371_v24 = vld [vmem:[%s5698_s30 + $0xb0] sm:$0xff]  ;;  %v838_v25 = vld [vmem:[%s5691_s27 + $0xd8] sm:$0xff] }
 0x22f   : > { %v2376_v26 = vld [vmem:[%s5698_s30 + $0xd8] sm:$0xff] }
 0x231   : > { %1456 = vmatmul.mubr.f32.gmra.mrb[108].mxu0 %v1027_v27  ;;  %2994 = vmatmul.mubr.f32.gmra.mrb[108].mxu1 %v2565_v28  ;;  %v837_v27 = vld [vmem:[%s5691_s27 + $0xd0] sm:$0xff] }
 0x232   : > { %1461 = vmatprep.mubr.f32.mxu0 %v1032_v29  ;;  %2999 = vmatprep.mubr.f32.mxu1 %v2570_v30  ;;  %v2375_v28 = vld [vmem:[%s5698_s30 + $0xd0] sm:$0xff]  ;;  %v842_v29 = vld [vmem:[%s5691_s27 + $0xf8] sm:$0xff] }
 0x233   : > { %v2380_v30 = vld [vmem:[%s5698_s30 + $0xf8] sm:$0xff] }
 0x235   : > { %1462 = vmatmul.mubr.f32.gmra.mrb[110].mxu0 %v1031_v31  ;;  %3000 = vmatmul.mubr.f32.gmra.mrb[110].mxu1 %v2569_v32  ;;  %v841_v31 = vld [vmem:[%s5691_s27 + $0xf0] sm:$0xff] }
 0x236   : > { %1467 = vmatprep.mubr.f32.mxu0 %v1036_v33  ;;  %3005 = vmatprep.mubr.f32.mxu1 %v2574_v34  ;;  %v2379_v32 = vld [vmem:[%s5698_s30 + $0xf0] sm:$0xff]  ;;  %v846_v33 = vld [vmem:[%s5691_s27 + $0x118] sm:$0xff] }
 0x237   : > { %v2384_v34 = vld [vmem:[%s5698_s30 + $0x118] sm:$0xff] }
 0x239   : > { %1468 = vmatmul.mubr.f32.gmra.mrb[112].mxu0 %v1035_v35  ;;  %3006 = vmatmul.mubr.f32.gmra.mrb[112].mxu1 %v2573_v36  ;;  %v845_v35 = vld [vmem:[%s5691_s27 + $0x110] sm:$0xff] }
 0x23a   : > { %1473 = vmatprep.mubr.f32.mxu0 %v1040_v37  ;;  %3011 = vmatprep.mubr.f32.mxu1 %v2578_v38  ;;  %v2383_v36 = vld [vmem:[%s5698_s30 + $0x110] sm:$0xff]  ;;  %v850_v37 = vld [vmem:[%s5691_s27 + $0x138] sm:$0xff] }
 0x23b   : > { %v2388_v38 = vld [vmem:[%s5698_s30 + $0x138] sm:$0xff] }
 0x23d   : > { %1474 = vmatmul.mubr.f32.gmra.mrb[114].mxu0 %v1039_v39  ;;  %3012 = vmatmul.mubr.f32.gmra.mrb[114].mxu1 %v2577_v40  ;;  %v849_v39 = vld [vmem:[%s5691_s27 + $0x130] sm:$0xff] }
 0x23e   : > { %1479 = vmatprep.mubr.f32.mxu0 %v1044_v41  ;;  %3017 = vmatprep.mubr.f32.mxu1 %v2582_v42  ;;  %v2387_v40 = vld [vmem:[%s5698_s30 + $0x130] sm:$0xff]  ;;  %v854_v41 = vld [vmem:[%s5691_s27 + $0x158] sm:$0xff] }
 0x23f   : > { %v2392_v42 = vld [vmem:[%s5698_s30 + $0x158] sm:$0xff] }
 0x241   : > { %1480 = vmatmul.mubr.f32.gmra.mrb[116].mxu0 %v1043_v43  ;;  %3018 = vmatmul.mubr.f32.gmra.mrb[116].mxu1 %v2581_v44  ;;  %v853_v43 = vld [vmem:[%s5691_s27 + $0x150] sm:$0xff] }
 0x242   : > { %1485 = vmatprep.mubr.f32.mxu0 %v1048_v45  ;;  %3023 = vmatprep.mubr.f32.mxu1 %v2586_v46  ;;  %v2391_v44 = vld [vmem:[%s5698_s30 + $0x150] sm:$0xff]  ;;  %v858_v45 = vld [vmem:[%s5691_s27 + $0x178] sm:$0xff] }
 0x243   : > { %v2396_v46 = vld [vmem:[%s5698_s30 + $0x178] sm:$0xff] }
 0x245   : > { %1486 = vmatmul.mubr.f32.gmra.mrb[118].mxu0 %v1047_v47  ;;  %3024 = vmatmul.mubr.f32.gmra.mrb[118].mxu1 %v2585_v48  ;;  %v857_v47 = vld [vmem:[%s5691_s27 + $0x170] sm:$0xff] }
 0x246   : > { %1491 = vmatprep.mubr.f32.mxu0 %v1052_v49  ;;  %3029 = vmatprep.mubr.f32.mxu1 %v2590_v50  ;;  %v2395_v48 = vld [vmem:[%s5698_s30 + $0x170] sm:$0xff]  ;;  %v862_v49 = vld [vmem:[%s5691_s27 + $0x198] sm:$0xff] }
 0x247   : > { %v2400_v50 = vld [vmem:[%s5698_s30 + $0x198] sm:$0xff] }
 0x249   : > { %1492 = vmatmul.mubr.f32.gmra.mrb[120].mxu0 %v1051_v51  ;;  %3030 = vmatmul.mubr.f32.gmra.mrb[120].mxu1 %v2589_v52  ;;  %v861_v51 = vld [vmem:[%s5691_s27 + $0x190] sm:$0xff] }
 0x24a   : > { %1497 = vmatprep.mubr.f32.mxu0 %v1056_v53  ;;  %3035 = vmatprep.mubr.f32.mxu1 %v2594_v54  ;;  %v2399_v52 = vld [vmem:[%s5698_s30 + $0x190] sm:$0xff]  ;;  %v866_v53 = vld [vmem:[%s5691_s27 + $0x1b8] sm:$0xff] }
 0x24b   : > { %v2404_v54 = vld [vmem:[%s5698_s30 + $0x1b8] sm:$0xff] }
 0x24d   : > { %1498 = vmatmul.mubr.f32.gmra.mrb[122].mxu0 %v1055_v55  ;;  %3036 = vmatmul.mubr.f32.gmra.mrb[122].mxu1 %v2593_v56  ;;  %v865_v55 = vld [vmem:[%s5691_s27 + $0x1b0] sm:$0xff] }
 0x24e   : > { %1503 = vmatprep.mubr.f32.mxu0 %v1060_v57  ;;  %3041 = vmatprep.mubr.f32.mxu1 %v2598_v58  ;;  %v2403_v56 = vld [vmem:[%s5698_s30 + $0x1b0] sm:$0xff]  ;;  %v870_v57 = vld [vmem:[%s5691_s27 + $0x1d8] sm:$0xff] }
 0x24f   : > { %v2408_v58 = vld [vmem:[%s5698_s30 + $0x1d8] sm:$0xff] }
 0x251   : > { %1504 = vmatmul.mubr.f32.gmra.mrb[124].mxu0 %v1059_v59  ;;  %3042 = vmatmul.mubr.f32.gmra.mrb[124].mxu1 %v2597_v60  ;;  %v869_v59 = vld [vmem:[%s5691_s27 + $0x1d0] sm:$0xff] }
 0x252   : > { %1509 = vmatprep.mubr.f32.mxu0 %v1064_v61  ;;  %3047 = vmatprep.mubr.f32.mxu1 %v2602_v62  ;;  %v2407_v60 = vld [vmem:[%s5698_s30 + $0x1d0] sm:$0xff]  ;;  %v874_v61 = vld [vmem:[%s5691_s27 + $0x1f8] sm:$0xff] }
 0x253   : > { %v2412_v62 = vld [vmem:[%s5698_s30 + $0x1f8] sm:$0xff] }
 0x255   : > { %1510 = vmatmul.mubr.f32.gmra.mrb[126].mxu0 %v1063_v63  ;;  %3048 = vmatmul.mubr.f32.gmra.mrb[126].mxu1 %v2601_v0  ;;  %v873_v63 = vld [vmem:[%s5691_s27 + $0x1f0] sm:$0xff] }
 0x256   : > { %1580 = vmatprep.mubr.f32.mxu0 %v814_v1  ;;  %3118 = vmatprep.mubr.f32.mxu1 %v2352_v2  ;;  %v2411_v0 = vld [vmem:[%s5698_s30 + $0x1f0] sm:$0xff]  ;;  %v878_v1 = vld [vmem:[%s5691_s27 + $0x218] sm:$0xff] }
 0x257   : > { %v2416_v2 = vld [vmem:[%s5698_s30 + $0x218] sm:$0xff] }
 0x259   : > { %1581 = vmatmul.mubr.f32.vlgmr.msra.gmra.mrb[0].mxu0 %v813_v3  ;;  %3119 = vmatmul.mubr.f32.vlgmr.msra.gmra.mrb[0].mxu1 %v2351_v4  ;;  %v877_v3 = vld [vmem:[%s5691_s27 + $0x210] sm:$0xff] }
 0x25a   : > { %1586 = vmatprep.mubr.f32.mxu0 %v818_v5  ;;  %3124 = vmatprep.mubr.f32.mxu1 %v2356_v6  ;;  %v2415_v4 = vld [vmem:[%s5698_s30 + $0x210] sm:$0xff]  ;;  %v882_v5 = vld [vmem:[%s5691_s27 + $0x238] sm:$0xff] }
 0x25b   : > { %v2420_v6 = vld [vmem:[%s5698_s30 + $0x238] sm:$0xff] }
 0x25d   : > { %1587 = vmatmul.mubr.f32.gmra.mrb[2].mxu0 %v817_v7  ;;  %3125 = vmatmul.mubr.f32.gmra.mrb[2].mxu1 %v2355_v8  ;;  %v881_v7 = vld [vmem:[%s5691_s27 + $0x230] sm:$0xff] }
 0x25e   : > { %1592 = vmatprep.mubr.f32.mxu0 %v822_v9  ;;  %3130 = vmatprep.mubr.f32.mxu1 %v2360_v10  ;;  %v2419_v8 = vld [vmem:[%s5698_s30 + $0x230] sm:$0xff]  ;;  %v886_v9 = vld [vmem:[%s5691_s27 + $0x258] sm:$0xff] }
 0x25f   : > { %v2424_v10 = vld [vmem:[%s5698_s30 + $0x258] sm:$0xff] }
 0x261   : > { %1593 = vmatmul.mubr.f32.gmra.mrb[4].mxu0 %v821_v11  ;;  %3131 = vmatmul.mubr.f32.gmra.mrb[4].mxu1 %v2359_v12  ;;  %v885_v11 = vld [vmem:[%s5691_s27 + $0x250] sm:$0xff] }
 0x262   : > { %1598 = vmatprep.mubr.f32.mxu0 %v826_v13  ;;  %3136 = vmatprep.mubr.f32.mxu1 %v2364_v14  ;;  %v2423_v12 = vld [vmem:[%s5698_s30 + $0x250] sm:$0xff]  ;;  %v890_v13 = vld [vmem:[%s5691_s27 + $0x278] sm:$0xff] }
 0x263   : > { %v2428_v14 = vld [vmem:[%s5698_s30 + $0x278] sm:$0xff] }
 0x265   : > { %1599 = vmatmul.mubr.f32.gmra.mrb[6].mxu0 %v825_v15  ;;  %3137 = vmatmul.mubr.f32.gmra.mrb[6].mxu1 %v2363_v16  ;;  %v889_v15 = vld [vmem:[%s5691_s27 + $0x270] sm:$0xff] }
 0x266   : > { %1604 = vmatprep.mubr.f32.mxu0 %v830_v17  ;;  %3142 = vmatprep.mubr.f32.mxu1 %v2368_v18  ;;  %v2427_v16 = vld [vmem:[%s5698_s30 + $0x270] sm:$0xff]  ;;  %v894_v17 = vld [vmem:[%s5691_s27 + $0x298] sm:$0xff] }
 0x267   : > { %v2432_v18 = vld [vmem:[%s5698_s30 + $0x298] sm:$0xff] }
 0x269   : > { %1605 = vmatmul.mubr.f32.gmra.mrb[8].mxu0 %v829_v19  ;;  %3143 = vmatmul.mubr.f32.gmra.mrb[8].mxu1 %v2367_v20  ;;  %v893_v19 = vld [vmem:[%s5691_s27 + $0x290] sm:$0xff] }
 0x26a   : > { %1610 = vmatprep.mubr.f32.mxu0 %v834_v21  ;;  %3148 = vmatprep.mubr.f32.mxu1 %v2372_v22  ;;  %v2431_v20 = vld [vmem:[%s5698_s30 + $0x290] sm:$0xff]  ;;  %v898_v21 = vld [vmem:[%s5691_s27 + $0x2b8] sm:$0xff] }
 0x26b   : > { %v2436_v22 = vld [vmem:[%s5698_s30 + $0x2b8] sm:$0xff] }
 0x26d   : > { %1611 = vmatmul.mubr.f32.gmra.mrb[10].mxu0 %v833_v23  ;;  %3149 = vmatmul.mubr.f32.gmra.mrb[10].mxu1 %v2371_v24  ;;  %v897_v23 = vld [vmem:[%s5691_s27 + $0x2b0] sm:$0xff] }
 0x26e   : > { %1616 = vmatprep.mubr.f32.mxu0 %v838_v25  ;;  %3154 = vmatprep.mubr.f32.mxu1 %v2376_v26  ;;  %v2435_v24 = vld [vmem:[%s5698_s30 + $0x2b0] sm:$0xff]  ;;  %v902_v25 = vld [vmem:[%s5691_s27 + $0x2d8] sm:$0xff] }
 0x26f   : > { %v2440_v26 = vld [vmem:[%s5698_s30 + $0x2d8] sm:$0xff] }
 0x271   : > { %1617 = vmatmul.mubr.f32.gmra.mrb[12].mxu0 %v837_v27  ;;  %3155 = vmatmul.mubr.f32.gmra.mrb[12].mxu1 %v2375_v28  ;;  %v901_v27 = vld [vmem:[%s5691_s27 + $0x2d0] sm:$0xff] }
 0x272   : > { %1622 = vmatprep.mubr.f32.mxu0 %v842_v29  ;;  %3160 = vmatprep.mubr.f32.mxu1 %v2380_v30  ;;  %v2439_v28 = vld [vmem:[%s5698_s30 + $0x2d0] sm:$0xff]  ;;  %v906_v29 = vld [vmem:[%s5691_s27 + $0x2f8] sm:$0xff] }
 0x273   : > { %v2444_v30 = vld [vmem:[%s5698_s30 + $0x2f8] sm:$0xff] }
 0x275   : > { %1623 = vmatmul.mubr.f32.gmra.mrb[14].mxu0 %v841_v31  ;;  %3161 = vmatmul.mubr.f32.gmra.mrb[14].mxu1 %v2379_v32  ;;  %v905_v31 = vld [vmem:[%s5691_s27 + $0x2f0] sm:$0xff] }
 0x276   : > { %1628 = vmatprep.mubr.f32.mxu0 %v846_v33  ;;  %3166 = vmatprep.mubr.f32.mxu1 %v2384_v34  ;;  %v2443_v32 = vld [vmem:[%s5698_s30 + $0x2f0] sm:$0xff]  ;;  %v910_v33 = vld [vmem:[%s5691_s27 + $0x318] sm:$0xff] }
 0x277   : > { %v2448_v34 = vld [vmem:[%s5698_s30 + $0x318] sm:$0xff] }
 0x279   : > { %1629 = vmatmul.mubr.f32.gmra.mrb[16].mxu0 %v845_v35  ;;  %3167 = vmatmul.mubr.f32.gmra.mrb[16].mxu1 %v2383_v36  ;;  %v909_v35 = vld [vmem:[%s5691_s27 + $0x310] sm:$0xff] }
 0x27a   : > { %1634 = vmatprep.mubr.f32.mxu0 %v850_v37  ;;  %3172 = vmatprep.mubr.f32.mxu1 %v2388_v38  ;;  %v2447_v36 = vld [vmem:[%s5698_s30 + $0x310] sm:$0xff]  ;;  %v914_v37 = vld [vmem:[%s5691_s27 + $0x338] sm:$0xff] }
 0x27b   : > { %v2452_v38 = vld [vmem:[%s5698_s30 + $0x338] sm:$0xff] }
 0x27d   : > { %1635 = vmatmul.mubr.f32.gmra.mrb[18].mxu0 %v849_v39  ;;  %3173 = vmatmul.mubr.f32.gmra.mrb[18].mxu1 %v2387_v40  ;;  %v913_v39 = vld [vmem:[%s5691_s27 + $0x330] sm:$0xff] }
 0x27e   : > { %1640 = vmatprep.mubr.f32.mxu0 %v854_v41  ;;  %3178 = vmatprep.mubr.f32.mxu1 %v2392_v42  ;;  %v2451_v40 = vld [vmem:[%s5698_s30 + $0x330] sm:$0xff]  ;;  %v918_v41 = vld [vmem:[%s5691_s27 + $0x358] sm:$0xff] }
 0x27f   : > { %v2456_v42 = vld [vmem:[%s5698_s30 + $0x358] sm:$0xff] }
 0x281   : > { %1641 = vmatmul.mubr.f32.gmra.mrb[20].mxu0 %v853_v43  ;;  %3179 = vmatmul.mubr.f32.gmra.mrb[20].mxu1 %v2391_v44  ;;  %v917_v43 = vld [vmem:[%s5691_s27 + $0x350] sm:$0xff] }
 0x282   : > { %1646 = vmatprep.mubr.f32.mxu0 %v858_v45  ;;  %3184 = vmatprep.mubr.f32.mxu1 %v2396_v46  ;;  %v2455_v44 = vld [vmem:[%s5698_s30 + $0x350] sm:$0xff]  ;;  %v922_v45 = vld [vmem:[%s5691_s27 + $0x378] sm:$0xff] }
 0x283   : > { %v2460_v46 = vld [vmem:[%s5698_s30 + $0x378] sm:$0xff] }
 0x285   : > { %1647 = vmatmul.mubr.f32.gmra.mrb[22].mxu0 %v857_v47  ;;  %3185 = vmatmul.mubr.f32.gmra.mrb[22].mxu1 %v2395_v48  ;;  %v921_v47 = vld [vmem:[%s5691_s27 + $0x370] sm:$0xff] }
 0x286   : > { %1652 = vmatprep.mubr.f32.mxu0 %v862_v49  ;;  %3190 = vmatprep.mubr.f32.mxu1 %v2400_v50  ;;  %v2459_v48 = vld [vmem:[%s5698_s30 + $0x370] sm:$0xff]  ;;  %v926_v49 = vld [vmem:[%s5691_s27 + $0x398] sm:$0xff] }
 0x287   : > { %v2464_v50 = vld [vmem:[%s5698_s30 + $0x398] sm:$0xff] }
 0x289   : > { %1653 = vmatmul.mubr.f32.gmra.mrb[24].mxu0 %v861_v51  ;;  %3191 = vmatmul.mubr.f32.gmra.mrb[24].mxu1 %v2399_v52  ;;  %v925_v51 = vld [vmem:[%s5691_s27 + $0x390] sm:$0xff] }
 0x28a   : > { %1658 = vmatprep.mubr.f32.mxu0 %v866_v53  ;;  %3196 = vmatprep.mubr.f32.mxu1 %v2404_v54  ;;  %v2463_v52 = vld [vmem:[%s5698_s30 + $0x390] sm:$0xff]  ;;  %v930_v53 = vld [vmem:[%s5691_s27 + $0x3b8] sm:$0xff] }
 0x28b   : > { %v2468_v54 = vld [vmem:[%s5698_s30 + $0x3b8] sm:$0xff] }
 0x28d   : > { %1659 = vmatmul.mubr.f32.gmra.mrb[26].mxu0 %v865_v55  ;;  %3197 = vmatmul.mubr.f32.gmra.mrb[26].mxu1 %v2403_v56  ;;  %v929_v55 = vld [vmem:[%s5691_s27 + $0x3b0] sm:$0xff] }
 0x28e   : > { %1664 = vmatprep.mubr.f32.mxu0 %v870_v57  ;;  %3202 = vmatprep.mubr.f32.mxu1 %v2408_v58  ;;  %v2467_v56 = vld [vmem:[%s5698_s30 + $0x3b0] sm:$0xff]  ;;  %v934_v57 = vld [vmem:[%s5691_s27 + $0x3d8] sm:$0xff] }
 0x28f   : > { %v2472_v58 = vld [vmem:[%s5698_s30 + $0x3d8] sm:$0xff] }
 0x291   : > { %1665 = vmatmul.mubr.f32.gmra.mrb[28].mxu0 %v869_v59  ;;  %3203 = vmatmul.mubr.f32.gmra.mrb[28].mxu1 %v2407_v60  ;;  %v933_v59 = vld [vmem:[%s5691_s27 + $0x3d0] sm:$0xff] }
 0x292   : > { %1670 = vmatprep.mubr.f32.mxu0 %v874_v61  ;;  %3208 = vmatprep.mubr.f32.mxu1 %v2412_v62  ;;  %v2471_v60 = vld [vmem:[%s5698_s30 + $0x3d0] sm:$0xff]  ;;  %v938_v61 = vld [vmem:[%s5691_s27 + $0x3f8] sm:$0xff] }
 0x293   : > { %v2476_v62 = vld [vmem:[%s5698_s30 + $0x3f8] sm:$0xff] }
 0x295   : > { %1671 = vmatmul.mubr.f32.gmra.mrb[30].mxu0 %v873_v63  ;;  %3209 = vmatmul.mubr.f32.gmra.mrb[30].mxu1 %v2411_v0  ;;  %v937_v63 = vld [vmem:[%s5691_s27 + $0x3f0] sm:$0xff] }
 0x296   : > { %1676 = vmatprep.mubr.f32.mxu0 %v878_v1  ;;  %3214 = vmatprep.mubr.f32.mxu1 %v2416_v2  ;;  %v2475_v0 = vld [vmem:[%s5698_s30 + $0x3f0] sm:$0xff]  ;;  %v942_v1 = vld [vmem:[%s5691_s27 + $0x418] sm:$0xff] }
 0x297   : > { %v2480_v2 = vld [vmem:[%s5698_s30 + $0x418] sm:$0xff] }
 0x299   : > { %1677 = vmatmul.mubr.f32.gmra.mrb[32].mxu0 %v877_v3  ;;  %3215 = vmatmul.mubr.f32.gmra.mrb[32].mxu1 %v2415_v4  ;;  %v941_v3 = vld [vmem:[%s5691_s27 + $0x410] sm:$0xff] }
 0x29a   : > { %1682 = vmatprep.mubr.f32.mxu0 %v882_v5  ;;  %3220 = vmatprep.mubr.f32.mxu1 %v2420_v6  ;;  %v2479_v4 = vld [vmem:[%s5698_s30 + $0x410] sm:$0xff]  ;;  %v946_v5 = vld [vmem:[%s5691_s27 + $0x438] sm:$0xff] }
 0x29b   : > { %v2484_v6 = vld [vmem:[%s5698_s30 + $0x438] sm:$0xff] }
 0x29d   : > { %1683 = vmatmul.mubr.f32.gmra.mrb[34].mxu0 %v881_v7  ;;  %3221 = vmatmul.mubr.f32.gmra.mrb[34].mxu1 %v2419_v8  ;;  %v945_v7 = vld [vmem:[%s5691_s27 + $0x430] sm:$0xff] }
 0x29e   : > { %1688 = vmatprep.mubr.f32.mxu0 %v886_v9  ;;  %3226 = vmatprep.mubr.f32.mxu1 %v2424_v10  ;;  %v2483_v8 = vld [vmem:[%s5698_s30 + $0x430] sm:$0xff]  ;;  %v950_v9 = vld [vmem:[%s5691_s27 + $0x458] sm:$0xff] }
 0x29f   : > { %v2488_v10 = vld [vmem:[%s5698_s30 + $0x458] sm:$0xff] }
 0x2a1   : > { %1689 = vmatmul.mubr.f32.gmra.mrb[36].mxu0 %v885_v11  ;;  %3227 = vmatmul.mubr.f32.gmra.mrb[36].mxu1 %v2423_v12  ;;  %v949_v11 = vld [vmem:[%s5691_s27 + $0x450] sm:$0xff] }
 0x2a2   : > { %1694 = vmatprep.mubr.f32.mxu0 %v890_v13  ;;  %3232 = vmatprep.mubr.f32.mxu1 %v2428_v14  ;;  %v2487_v12 = vld [vmem:[%s5698_s30 + $0x450] sm:$0xff]  ;;  %v954_v13 = vld [vmem:[%s5691_s27 + $0x478] sm:$0xff] }
 0x2a3   : > { %v2492_v14 = vld [vmem:[%s5698_s30 + $0x478] sm:$0xff] }
 0x2a5   : > { %1695 = vmatmul.mubr.f32.gmra.mrb[38].mxu0 %v889_v15  ;;  %3233 = vmatmul.mubr.f32.gmra.mrb[38].mxu1 %v2427_v16  ;;  %v953_v15 = vld [vmem:[%s5691_s27 + $0x470] sm:$0xff] }
 0x2a6   : > { %1700 = vmatprep.mubr.f32.mxu0 %v894_v17  ;;  %3238 = vmatprep.mubr.f32.mxu1 %v2432_v18  ;;  %v2491_v16 = vld [vmem:[%s5698_s30 + $0x470] sm:$0xff]  ;;  %v958_v17 = vld [vmem:[%s5691_s27 + $0x498] sm:$0xff] }
 0x2a7   : > { %v2496_v18 = vld [vmem:[%s5698_s30 + $0x498] sm:$0xff] }
 0x2a9   : > { %1701 = vmatmul.mubr.f32.gmra.mrb[40].mxu0 %v893_v19  ;;  %3239 = vmatmul.mubr.f32.gmra.mrb[40].mxu1 %v2431_v20  ;;  %v957_v19 = vld [vmem:[%s5691_s27 + $0x490] sm:$0xff] }
 0x2aa   : > { %1706 = vmatprep.mubr.f32.mxu0 %v898_v21  ;;  %3244 = vmatprep.mubr.f32.mxu1 %v2436_v22  ;;  %v2495_v20 = vld [vmem:[%s5698_s30 + $0x490] sm:$0xff]  ;;  %v962_v21 = vld [vmem:[%s5691_s27 + $0x4b8] sm:$0xff] }
 0x2ab   : > { %v2500_v22 = vld [vmem:[%s5698_s30 + $0x4b8] sm:$0xff] }
 0x2ad   : > { %1707 = vmatmul.mubr.f32.gmra.mrb[42].mxu0 %v897_v23  ;;  %3245 = vmatmul.mubr.f32.gmra.mrb[42].mxu1 %v2435_v24  ;;  %v961_v23 = vld [vmem:[%s5691_s27 + $0x4b0] sm:$0xff] }
 0x2ae   : > { %1712 = vmatprep.mubr.f32.mxu0 %v902_v25  ;;  %3250 = vmatprep.mubr.f32.mxu1 %v2440_v26  ;;  %v2499_v24 = vld [vmem:[%s5698_s30 + $0x4b0] sm:$0xff]  ;;  %v966_v25 = vld [vmem:[%s5691_s27 + $0x4d8] sm:$0xff] }
 0x2af   : > { %v2504_v26 = vld [vmem:[%s5698_s30 + $0x4d8] sm:$0xff] }
 0x2b1   : > { %1713 = vmatmul.mubr.f32.gmra.mrb[44].mxu0 %v901_v27  ;;  %3251 = vmatmul.mubr.f32.gmra.mrb[44].mxu1 %v2439_v28  ;;  %v965_v27 = vld [vmem:[%s5691_s27 + $0x4d0] sm:$0xff] }
 0x2b2   : > { %1718 = vmatprep.mubr.f32.mxu0 %v906_v29  ;;  %3256 = vmatprep.mubr.f32.mxu1 %v2444_v30  ;;  %v2503_v28 = vld [vmem:[%s5698_s30 + $0x4d0] sm:$0xff]  ;;  %v970_v29 = vld [vmem:[%s5691_s27 + $0x4f8] sm:$0xff] }
 0x2b3   : > { %v2508_v30 = vld [vmem:[%s5698_s30 + $0x4f8] sm:$0xff] }
 0x2b5   : > { %1719 = vmatmul.mubr.f32.gmra.mrb[46].mxu0 %v905_v31  ;;  %3257 = vmatmul.mubr.f32.gmra.mrb[46].mxu1 %v2443_v32  ;;  %v969_v31 = vld [vmem:[%s5691_s27 + $0x4f0] sm:$0xff] }
 0x2b6   : > { %1724 = vmatprep.mubr.f32.mxu0 %v910_v33  ;;  %3262 = vmatprep.mubr.f32.mxu1 %v2448_v34  ;;  %v2507_v32 = vld [vmem:[%s5698_s30 + $0x4f0] sm:$0xff]  ;;  %v974_v33 = vld [vmem:[%s5691_s27 + $0x518] sm:$0xff] }
 0x2b7   : > { %v2512_v34 = vld [vmem:[%s5698_s30 + $0x518] sm:$0xff] }
 0x2b9   : > { %1725 = vmatmul.mubr.f32.gmra.mrb[48].mxu0 %v909_v35  ;;  %3263 = vmatmul.mubr.f32.gmra.mrb[48].mxu1 %v2447_v36  ;;  %v973_v35 = vld [vmem:[%s5691_s27 + $0x510] sm:$0xff] }
 0x2ba   : > { %1730 = vmatprep.mubr.f32.mxu0 %v914_v37  ;;  %3268 = vmatprep.mubr.f32.mxu1 %v2452_v38  ;;  %v2511_v36 = vld [vmem:[%s5698_s30 + $0x510] sm:$0xff]  ;;  %v978_v37 = vld [vmem:[%s5691_s27 + $0x538] sm:$0xff] }
 0x2bb   : > { %v2516_v38 = vld [vmem:[%s5698_s30 + $0x538] sm:$0xff] }
 0x2bd   : > { %1731 = vmatmul.mubr.f32.gmra.mrb[50].mxu0 %v913_v39  ;;  %3269 = vmatmul.mubr.f32.gmra.mrb[50].mxu1 %v2451_v40  ;;  %v977_v39 = vld [vmem:[%s5691_s27 + $0x530] sm:$0xff] }
 0x2be   : > { %1736 = vmatprep.mubr.f32.mxu0 %v918_v41  ;;  %3274 = vmatprep.mubr.f32.mxu1 %v2456_v42  ;;  %v2515_v40 = vld [vmem:[%s5698_s30 + $0x530] sm:$0xff]  ;;  %v982_v41 = vld [vmem:[%s5691_s27 + $0x558] sm:$0xff] }
 0x2bf   : > { %v2520_v42 = vld [vmem:[%s5698_s30 + $0x558] sm:$0xff] }
 0x2c1   : > { %1737 = vmatmul.mubr.f32.gmra.mrb[52].mxu0 %v917_v43  ;;  %3275 = vmatmul.mubr.f32.gmra.mrb[52].mxu1 %v2455_v44  ;;  %v981_v43 = vld [vmem:[%s5691_s27 + $0x550] sm:$0xff] }
 0x2c2   : > { %1742 = vmatprep.mubr.f32.mxu0 %v922_v45  ;;  %3280 = vmatprep.mubr.f32.mxu1 %v2460_v46  ;;  %v2519_v44 = vld [vmem:[%s5698_s30 + $0x550] sm:$0xff]  ;;  %v986_v45 = vld [vmem:[%s5691_s27 + $0x578] sm:$0xff] }
 0x2c3   : > { %v2524_v46 = vld [vmem:[%s5698_s30 + $0x578] sm:$0xff] }
 0x2c5   : > { %1743 = vmatmul.mubr.f32.gmra.mrb[54].mxu0 %v921_v47  ;;  %3281 = vmatmul.mubr.f32.gmra.mrb[54].mxu1 %v2459_v48  ;;  %v985_v47 = vld [vmem:[%s5691_s27 + $0x570] sm:$0xff] }
 0x2c6   : > { %1748 = vmatprep.mubr.f32.mxu0 %v926_v49  ;;  %3286 = vmatprep.mubr.f32.mxu1 %v2464_v50  ;;  %v2523_v48 = vld [vmem:[%s5698_s30 + $0x570] sm:$0xff]  ;;  %v990_v49 = vld [vmem:[%s5691_s27 + $0x598] sm:$0xff] }
 0x2c7   : > { %v2528_v50 = vld [vmem:[%s5698_s30 + $0x598] sm:$0xff] }
 0x2c9   : > { %1749 = vmatmul.mubr.f32.gmra.mrb[56].mxu0 %v925_v51  ;;  %3287 = vmatmul.mubr.f32.gmra.mrb[56].mxu1 %v2463_v52  ;;  %v989_v51 = vld [vmem:[%s5691_s27 + $0x590] sm:$0xff] }
 0x2ca   : > { %1754 = vmatprep.mubr.f32.mxu0 %v930_v53  ;;  %3292 = vmatprep.mubr.f32.mxu1 %v2468_v54  ;;  %v2527_v52 = vld [vmem:[%s5698_s30 + $0x590] sm:$0xff]  ;;  %v994_v53 = vld [vmem:[%s5691_s27 + $0x5b8] sm:$0xff] }
 0x2cb   : > { %v2532_v54 = vld [vmem:[%s5698_s30 + $0x5b8] sm:$0xff] }
 0x2cd   : > { %1755 = vmatmul.mubr.f32.gmra.mrb[58].mxu0 %v929_v55  ;;  %3293 = vmatmul.mubr.f32.gmra.mrb[58].mxu1 %v2467_v56  ;;  %v993_v55 = vld [vmem:[%s5691_s27 + $0x5b0] sm:$0xff] }
 0x2ce   : > { %1760 = vmatprep.mubr.f32.mxu0 %v934_v57  ;;  %3298 = vmatprep.mubr.f32.mxu1 %v2472_v58  ;;  %v2531_v56 = vld [vmem:[%s5698_s30 + $0x5b0] sm:$0xff]  ;;  %v998_v57 = vld [vmem:[%s5691_s27 + $0x5d8] sm:$0xff] }
 0x2cf   : > { %v2536_v58 = vld [vmem:[%s5698_s30 + $0x5d8] sm:$0xff] }
 0x2d1   : > { %1761 = vmatmul.mubr.f32.gmra.mrb[60].mxu0 %v933_v59  ;;  %3299 = vmatmul.mubr.f32.gmra.mrb[60].mxu1 %v2471_v60  ;;  %v997_v59 = vld [vmem:[%s5691_s27 + $0x5d0] sm:$0xff] }
 0x2d2   : > { %1766 = vmatprep.mubr.f32.mxu0 %v938_v61  ;;  %3304 = vmatprep.mubr.f32.mxu1 %v2476_v62  ;;  %v2535_v60 = vld [vmem:[%s5698_s30 + $0x5d0] sm:$0xff]  ;;  %v1002_v61 = vld [vmem:[%s5691_s27 + $0x5f8] sm:$0xff] }
 0x2d3   : > { %v2540_v62 = vld [vmem:[%s5698_s30 + $0x5f8] sm:$0xff] }
 0x2d5   : > { %1767 = vmatmul.mubr.f32.gmra.mrb[62].mxu0 %v937_v63  ;;  %3305 = vmatmul.mubr.f32.gmra.mrb[62].mxu1 %v2475_v0  ;;  %v1001_v63 = vld [vmem:[%s5691_s27 + $0x5f0] sm:$0xff] }
 0x2d6   : > { %1772 = vmatprep.mubr.f32.mxu0 %v942_v1  ;;  %3310 = vmatprep.mubr.f32.mxu1 %v2480_v2  ;;  %v2539_v0 = vld [vmem:[%s5698_s30 + $0x5f0] sm:$0xff]  ;;  %v1006_v1 = vld [vmem:[%s5691_s27 + $0x618] sm:$0xff] }
 0x2d7   : > { %v2544_v2 = vld [vmem:[%s5698_s30 + $0x618] sm:$0xff] }
 0x2d9   : > { %1773 = vmatmul.mubr.f32.gmra.mrb[64].mxu0 %v941_v3  ;;  %3311 = vmatmul.mubr.f32.gmra.mrb[64].mxu1 %v2479_v4  ;;  %v1005_v3 = vld [vmem:[%s5691_s27 + $0x610] sm:$0xff] }
 0x2da   : > { %1778 = vmatprep.mubr.f32.mxu0 %v946_v5  ;;  %3316 = vmatprep.mubr.f32.mxu1 %v2484_v6  ;;  %v2543_v4 = vld [vmem:[%s5698_s30 + $0x610] sm:$0xff]  ;;  %v1010_v5 = vld [vmem:[%s5691_s27 + $0x638] sm:$0xff] }
 0x2db   : > { %v2548_v6 = vld [vmem:[%s5698_s30 + $0x638] sm:$0xff] }
 0x2dd   : > { %1779 = vmatmul.mubr.f32.gmra.mrb[66].mxu0 %v945_v7  ;;  %3317 = vmatmul.mubr.f32.gmra.mrb[66].mxu1 %v2483_v8  ;;  %v1009_v7 = vld [vmem:[%s5691_s27 + $0x630] sm:$0xff] }
 0x2de   : > { %1784 = vmatprep.mubr.f32.mxu0 %v950_v9  ;;  %3322 = vmatprep.mubr.f32.mxu1 %v2488_v10  ;;  %v2547_v8 = vld [vmem:[%s5698_s30 + $0x630] sm:$0xff]  ;;  %v1014_v9 = vld [vmem:[%s5691_s27 + $0x658] sm:$0xff] }
 0x2df   : > { %v2552_v10 = vld [vmem:[%s5698_s30 + $0x658] sm:$0xff] }
 0x2e1   : > { %1785 = vmatmul.mubr.f32.gmra.mrb[68].mxu0 %v949_v11  ;;  %3323 = vmatmul.mubr.f32.gmra.mrb[68].mxu1 %v2487_v12  ;;  %v1013_v11 = vld [vmem:[%s5691_s27 + $0x650] sm:$0xff] }
 0x2e2   : > { %1790 = vmatprep.mubr.f32.mxu0 %v954_v13  ;;  %3328 = vmatprep.mubr.f32.mxu1 %v2492_v14  ;;  %v2551_v12 = vld [vmem:[%s5698_s30 + $0x650] sm:$0xff]  ;;  %v1018_v13 = vld [vmem:[%s5691_s27 + $0x678] sm:$0xff] }
 0x2e3   : > { %v2556_v14 = vld [vmem:[%s5698_s30 + $0x678] sm:$0xff] }
 0x2e5   : > { %1791 = vmatmul.mubr.f32.gmra.mrb[70].mxu0 %v953_v15  ;;  %3329 = vmatmul.mubr.f32.gmra.mrb[70].mxu1 %v2491_v16  ;;  %v1017_v15 = vld [vmem:[%s5691_s27 + $0x670] sm:$0xff] }
 0x2e6   : > { %1796 = vmatprep.mubr.f32.mxu0 %v958_v17  ;;  %3334 = vmatprep.mubr.f32.mxu1 %v2496_v18  ;;  %v2555_v16 = vld [vmem:[%s5698_s30 + $0x670] sm:$0xff]  ;;  %v1022_v17 = vld [vmem:[%s5691_s27 + $0x698] sm:$0xff] }
 0x2e7   : > { %v2560_v18 = vld [vmem:[%s5698_s30 + $0x698] sm:$0xff] }
 0x2e9   : > { %1797 = vmatmul.mubr.f32.gmra.mrb[72].mxu0 %v957_v19  ;;  %3335 = vmatmul.mubr.f32.gmra.mrb[72].mxu1 %v2495_v20  ;;  %v1021_v19 = vld [vmem:[%s5691_s27 + $0x690] sm:$0xff] }
 0x2ea   : > { %1802 = vmatprep.mubr.f32.mxu0 %v962_v21  ;;  %3340 = vmatprep.mubr.f32.mxu1 %v2500_v22  ;;  %v2559_v20 = vld [vmem:[%s5698_s30 + $0x690] sm:$0xff]  ;;  %v1026_v21 = vld [vmem:[%s5691_s27 + $0x6b8] sm:$0xff] }
 0x2eb   : > { %v2564_v22 = vld [vmem:[%s5698_s30 + $0x6b8] sm:$0xff] }
 0x2ed   : > { %1803 = vmatmul.mubr.f32.gmra.mrb[74].mxu0 %v961_v23  ;;  %3341 = vmatmul.mubr.f32.gmra.mrb[74].mxu1 %v2499_v24  ;;  %v683_v23 = vld [vmem:[#allocation2] sm:$0xff] }
 0x2ee   : > { %1808 = vmatprep.mubr.f32.mxu0 %v966_v25  ;;  %3346 = vmatprep.mubr.f32.mxu1 %v2504_v26  ;;  %v2221_v24 = vld [vmem:[#allocation3] sm:$0xff]  ;;  %v684_v25 = vld [vmem:[#allocation2 + $0x8] sm:$0xff]  ;;  %v1025_v26 = vld [vmem:[%s5691_s27 + $0x6b0] sm:$0xff] }
 0x2f1   : > { %1809 = vmatmul.mubr.f32.gmra.mrb[76].mxu0 %v965_v27  ;;  %3347 = vmatmul.mubr.f32.gmra.mrb[76].mxu1 %v2503_v28  ;;  %v2563_v27 = vld [vmem:[%s5698_s30 + $0x6b0] sm:$0xff]  ;;  %v2222_v28 = vld [vmem:[#allocation3 + $0x8] sm:$0xff] }
 0x2f2   : > { %1814 = vmatprep.mubr.f32.mxu0 %v970_v29  ;;  %3352 = vmatprep.mubr.f32.mxu1 %v2508_v30  ;;  %v1030_v29 = vld [vmem:[%s5691_s27 + $0x6d8] sm:$0xff] }
 0x2f3   : > { %v2568_v30 = vld [vmem:[%s5698_s30 + $0x6d8] sm:$0xff] }
 0x2f5   : > { %1815 = vmatmul.mubr.f32.gmra.mrb[78].mxu0 %v969_v31  ;;  %3353 = vmatmul.mubr.f32.gmra.mrb[78].mxu1 %v2507_v32 }
 0x2f6   : > { %1820 = vmatprep.mubr.f32.mxu0 %v974_v33  ;;  %3358 = vmatprep.mubr.f32.mxu1 %v2512_v34 }
 0x2f9   : > { %1821 = vmatmul.mubr.f32.gmra.mrb[80].mxu0 %v973_v35  ;;  %3359 = vmatmul.mubr.f32.gmra.mrb[80].mxu1 %v2511_v36 }
 0x2fa   : > { %1826 = vmatprep.mubr.f32.mxu0 %v978_v37  ;;  %3364 = vmatprep.mubr.f32.mxu1 %v2516_v38  ;;  %v685_v37 = vld [vmem:[#allocation2 + $0x10] sm:$0xff] }
 0x2fb   : > { %v2223_v38 = vld [vmem:[#allocation3 + $0x10] sm:$0xff] }
 0x2fd   : > { %1827 = vmatmul.mubr.f32.gmra.mrb[82].mxu0 %v977_v39  ;;  %3365 = vmatmul.mubr.f32.gmra.mrb[82].mxu1 %v2515_v40 }
 0x2fe   : > { %1832 = vmatprep.mubr.f32.mxu0 %v982_v41  ;;  %3370 = vmatprep.mubr.f32.mxu1 %v2520_v42  ;;  %v686_v41 = vld [vmem:[#allocation2 + $0x18] sm:$0xff]  ;;  %v1029_v42 = vld [vmem:[%s5691_s27 + $0x6d0] sm:$0xff] }
 0x301   : > { %1833 = vmatmul.mubr.f32.gmra.mrb[84].mxu0 %v981_v43  ;;  %3371 = vmatmul.mubr.f32.gmra.mrb[84].mxu1 %v2519_v44  ;;  %v2567_v43 = vld [vmem:[%s5698_s30 + $0x6d0] sm:$0xff]  ;;  %v2224_v44 = vld [vmem:[#allocation3 + $0x18] sm:$0xff] }
 0x302   : > { %1838 = vmatprep.mubr.f32.mxu0 %v986_v45  ;;  %3376 = vmatprep.mubr.f32.mxu1 %v2524_v46  ;;  %v1034_v45 = vld [vmem:[%s5691_s27 + $0x6f8] sm:$0xff] }
 0x303   : > { %v2572_v46 = vld [vmem:[%s5698_s30 + $0x6f8] sm:$0xff] }
 0x305   : > { %1839 = vmatmul.mubr.f32.gmra.mrb[86].mxu0 %v985_v47  ;;  %3377 = vmatmul.mubr.f32.gmra.mrb[86].mxu1 %v2523_v48 }
 0x306   : > { %1844 = vmatprep.mubr.f32.mxu0 %v990_v49  ;;  %3382 = vmatprep.mubr.f32.mxu1 %v2528_v50 }
 0x309   : > { %1845 = vmatmul.mubr.f32.gmra.mrb[88].mxu0 %v989_v51  ;;  %3383 = vmatmul.mubr.f32.gmra.mrb[88].mxu1 %v2527_v52 }
 0x30a   : > { %1850 = vmatprep.mubr.f32.mxu0 %v994_v53  ;;  %3388 = vmatprep.mubr.f32.mxu1 %v2532_v54  ;;  %v687_v53 = vld [vmem:[#allocation2 + $0x20] sm:$0xff] }
 0x30b   : > { %v2225_v54 = vld [vmem:[#allocation3 + $0x20] sm:$0xff] }
 0x30d   : > { %1851 = vmatmul.mubr.f32.gmra.mrb[90].mxu0 %v993_v55  ;;  %3389 = vmatmul.mubr.f32.gmra.mrb[90].mxu1 %v2531_v56 }
 0x30e   : > { %1856 = vmatprep.mubr.f32.mxu0 %v998_v57  ;;  %3394 = vmatprep.mubr.f32.mxu1 %v2536_v58  ;;  %v688_v57 = vld [vmem:[#allocation2 + $0x28] sm:$0xff]  ;;  %v1033_v58 = vld [vmem:[%s5691_s27 + $0x6f0] sm:$0xff] }
 0x311   : > { %1857 = vmatmul.mubr.f32.gmra.mrb[92].mxu0 %v997_v59  ;;  %3395 = vmatmul.mubr.f32.gmra.mrb[92].mxu1 %v2535_v60  ;;  %v2571_v59 = vld [vmem:[%s5698_s30 + $0x6f0] sm:$0xff]  ;;  %v2226_v60 = vld [vmem:[#allocation3 + $0x28] sm:$0xff] }
 0x312   : > { %1862 = vmatprep.mubr.f32.mxu0 %v1002_v61  ;;  %3400 = vmatprep.mubr.f32.mxu1 %v2540_v62  ;;  %v1038_v61 = vld [vmem:[%s5691_s27 + $0x718] sm:$0xff] }
 0x313   : > { %v2576_v62 = vld [vmem:[%s5698_s30 + $0x718] sm:$0xff] }
 0x315   : > { %1863 = vmatmul.mubr.f32.gmra.mrb[94].mxu0 %v1001_v63  ;;  %3401 = vmatmul.mubr.f32.gmra.mrb[94].mxu1 %v2539_v0 }
 0x316   : > { %1868 = vmatprep.mubr.f32.mxu0 %v1006_v1  ;;  %3406 = vmatprep.mubr.f32.mxu1 %v2544_v2 }
 0x319   : > { %1869 = vmatmul.mubr.f32.gmra.mrb[96].mxu0 %v1005_v3  ;;  %3407 = vmatmul.mubr.f32.gmra.mrb[96].mxu1 %v2543_v4 }
 0x31a   : > { %1874 = vmatprep.mubr.f32.mxu0 %v1010_v5  ;;  %3412 = vmatprep.mubr.f32.mxu1 %v2548_v6  ;;  %v689_v5 = vld [vmem:[#allocation2 + $0x30] sm:$0xff] }
 0x31b   : > { %v2227_v6 = vld [vmem:[#allocation3 + $0x30] sm:$0xff] }
 0x31d   : > { %1875 = vmatmul.mubr.f32.gmra.mrb[98].mxu0 %v1009_v7  ;;  %3413 = vmatmul.mubr.f32.gmra.mrb[98].mxu1 %v2547_v8 }
 0x31e   : > { %1880 = vmatprep.mubr.f32.mxu0 %v1014_v9  ;;  %3418 = vmatprep.mubr.f32.mxu1 %v2552_v10  ;;  %v690_v9 = vld [vmem:[#allocation2 + $0x38] sm:$0xff]  ;;  %v1037_v10 = vld [vmem:[%s5691_s27 + $0x710] sm:$0xff] }
 0x321   : > { %1881 = vmatmul.mubr.f32.gmra.mrb[100].mxu0 %v1013_v11  ;;  %3419 = vmatmul.mubr.f32.gmra.mrb[100].mxu1 %v2551_v12  ;;  %v2575_v11 = vld [vmem:[%s5698_s30 + $0x710] sm:$0xff]  ;;  %v2228_v12 = vld [vmem:[#allocation3 + $0x38] sm:$0xff] }
 0x322   : > { %1886 = vmatprep.mubr.f32.mxu0 %v1018_v13  ;;  %3424 = vmatprep.mubr.f32.mxu1 %v2556_v14  ;;  %v1042_v13 = vld [vmem:[%s5691_s27 + $0x738] sm:$0xff] }
 0x323   : > { %v2580_v14 = vld [vmem:[%s5698_s30 + $0x738] sm:$0xff] }
 0x325   : > { %1887 = vmatmul.mubr.f32.gmra.mrb[102].mxu0 %v1017_v15  ;;  %3425 = vmatmul.mubr.f32.gmra.mrb[102].mxu1 %v2555_v16 }
 0x326   : > { %1892 = vmatprep.mubr.f32.mxu0 %v1022_v17  ;;  %3430 = vmatprep.mubr.f32.mxu1 %v2560_v18 }
 0x329   : > { %1893 = vmatmul.mubr.f32.gmra.mrb[104].mxu0 %v1021_v19  ;;  %3431 = vmatmul.mubr.f32.gmra.mrb[104].mxu1 %v2559_v20 }
 0x32a   : > { %1898 = vmatprep.mubr.f32.mxu0 %v1026_v21  ;;  %3436 = vmatprep.mubr.f32.mxu1 %v2564_v22  ;;  %v691_v21 = vld [vmem:[#allocation2 + $0x40] sm:$0xff] }
 0x32b   : > { %v2229_v22 = vld [vmem:[#allocation3 + $0x40] sm:$0xff] }
 0x32c   : > { %v1582_v31 = vpop.f32.mrb[0].mxu0  ;;  %v3120_v32 = vpop.f32.mrb[0].mxu1 }
 0x32d   : > { %v1965_v33 = vadd.f32 %v1582_v31, %v683_v23  ;;  %v3503_v34 = vadd.f32 %v3120_v32, %v2221_v24  ;;  %v1584_v35 = vpop.f32.mrb[1].mxu0  ;;  %1899 = vmatmul.mubr.f32.gmra.mrb[106].mxu0 %v1025_v26  ;;  %v3122_v36 = vpop.f32.mrb[1].mxu1  ;;  %3437 = vmatmul.mubr.f32.gmra.mrb[106].mxu1 %v2563_v27  ;;  %v1041_v26 = vld [vmem:[%s5691_s27 + $0x730] sm:$0xff] }
 0x32e   : > { %v1966_v39 = vadd.f32 %v1584_v35, %v684_v25  ;;  %v3504_v40 = vadd.f32 %v3122_v36, %v2222_v28  ;;  %1904 = vmatprep.mubr.f32.mxu0 %v1030_v29  ;;  %3442 = vmatprep.mubr.f32.mxu1 %v2568_v30  ;;  %v692_v25 = vld [vmem:[#allocation2 + $0x48] sm:$0xff]  ;;  %v2579_v27 = vld [vmem:[%s5698_s30 + $0x730] sm:$0xff]  ;;  %v1046_v29 = vld [vmem:[%s5691_s27 + $0x758] sm:$0xff] }
 0x32f   : > { %2093 = vst [vmem:[#allocation2] sm:$0xff] %v1965_v33  ;;  %3631 = vst [vmem:[#allocation3] sm:$0xff] %v3503_v34  ;;  %v2230_v28 = vld [vmem:[#allocation3 + $0x48] sm:$0xff]  ;;  %v2584_v30 = vld [vmem:[%s5698_s30 + $0x758] sm:$0xff] }
 0x330   : > { %2094 = vst [vmem:[#allocation2 + $0x8] sm:$0xff] %v1966_v39  ;;  %3632 = vst [vmem:[#allocation3 + $0x8] sm:$0xff] %v3504_v40  ;;  %v1588_v47 = vpop.f32.mrb[2].mxu0  ;;  %v3126_v48 = vpop.f32.mrb[2].mxu1 }
 0x331   : > { %v1967_v49 = vadd.f32 %v1588_v47, %v685_v37  ;;  %v3505_v50 = vadd.f32 %v3126_v48, %v2223_v38  ;;  %v1590_v51 = vpop.f32.mrb[3].mxu0  ;;  %1905 = vmatmul.mubr.f32.gmra.mrb[108].mxu0 %v1029_v42  ;;  %v3128_v52 = vpop.f32.mrb[3].mxu1  ;;  %3443 = vmatmul.mubr.f32.gmra.mrb[108].mxu1 %v2567_v43  ;;  %v693_v37 = vld [vmem:[#allocation2 + $0x50] sm:$0xff] }
 0x332   : > { %v1968_v55 = vadd.f32 %v1590_v51, %v686_v41  ;;  %v3506_v56 = vadd.f32 %v3128_v52, %v2224_v44  ;;  %1910 = vmatprep.mubr.f32.mxu0 %v1034_v45  ;;  %3448 = vmatprep.mubr.f32.mxu1 %v2572_v46  ;;  %v2231_v38 = vld [vmem:[#allocation3 + $0x50] sm:$0xff]  ;;  %v694_v41 = vld [vmem:[#allocation2 + $0x58] sm:$0xff] }
 0x333   : > { %2095 = vst [vmem:[#allocation2 + $0x10] sm:$0xff] %v1967_v49  ;;  %3633 = vst [vmem:[#allocation3 + $0x10] sm:$0xff] %v3505_v50  ;;  %v1045_v42 = vld [vmem:[%s5691_s27 + $0x750] sm:$0xff]  ;;  %v2232_v44 = vld [vmem:[#allocation3 + $0x58] sm:$0xff] }
 0x334   : > { %2096 = vst [vmem:[#allocation2 + $0x18] sm:$0xff] %v1968_v55  ;;  %3634 = vst [vmem:[#allocation3 + $0x18] sm:$0xff] %v3506_v56  ;;  %v1594_v63 = vpop.f32.mrb[4].mxu0  ;;  %v3132_v0 = vpop.f32.mrb[4].mxu1  ;;  %v2583_v43 = vld [vmem:[%s5698_s30 + $0x750] sm:$0xff]  ;;  %v1050_v45 = vld [vmem:[%s5691_s27 + $0x778] sm:$0xff] }
 0x335   : > { %v1969_v1 = vadd.f32 %v1594_v63, %v687_v53  ;;  %v3507_v2 = vadd.f32 %v3132_v0, %v2225_v54  ;;  %v1596_v3 = vpop.f32.mrb[5].mxu0  ;;  %1911 = vmatmul.mubr.f32.gmra.mrb[110].mxu0 %v1033_v58  ;;  %v3134_v4 = vpop.f32.mrb[5].mxu1  ;;  %3449 = vmatmul.mubr.f32.gmra.mrb[110].mxu1 %v2571_v59  ;;  %v2588_v46 = vld [vmem:[%s5698_s30 + $0x778] sm:$0xff]  ;;  %v695_v53 = vld [vmem:[#allocation2 + $0x60] sm:$0xff]  ;;  %v1049_v58 = vld [vmem:[%s5691_s27 + $0x770] sm:$0xff] }
 0x336   : > { %v1970_v7 = vadd.f32 %v1596_v3, %v688_v57  ;;  %v3508_v8 = vadd.f32 %v3134_v4, %v2226_v60  ;;  %1916 = vmatprep.mubr.f32.mxu0 %v1038_v61  ;;  %3454 = vmatprep.mubr.f32.mxu1 %v2576_v62  ;;  %v2233_v54 = vld [vmem:[#allocation3 + $0x60] sm:$0xff]  ;;  %v696_v57 = vld [vmem:[#allocation2 + $0x68] sm:$0xff]  ;;  %v2587_v59 = vld [vmem:[%s5698_s30 + $0x770] sm:$0xff] }
 0x337   : > { %2097 = vst [vmem:[#allocation2 + $0x20] sm:$0xff] %v1969_v1  ;;  %3635 = vst [vmem:[#allocation3 + $0x20] sm:$0xff] %v3507_v2  ;;  %v2234_v60 = vld [vmem:[#allocation3 + $0x68] sm:$0xff]  ;;  %v1054_v61 = vld [vmem:[%s5691_s27 + $0x798] sm:$0xff] }
 0x338   : > { %2098 = vst [vmem:[#allocation2 + $0x28] sm:$0xff] %v1970_v7  ;;  %3636 = vst [vmem:[#allocation3 + $0x28] sm:$0xff] %v3508_v8  ;;  %v1600_v15 = vpop.f32.mrb[6].mxu0  ;;  %v3138_v16 = vpop.f32.mrb[6].mxu1  ;;  %v2592_v62 = vld [vmem:[%s5698_s30 + $0x798] sm:$0xff] }
 0x339   : > { %v1971_v17 = vadd.f32 %v1600_v15, %v689_v5  ;;  %v3509_v18 = vadd.f32 %v3138_v16, %v2227_v6  ;;  %v1602_v19 = vpop.f32.mrb[7].mxu0  ;;  %1917 = vmatmul.mubr.f32.gmra.mrb[112].mxu0 %v1037_v10  ;;  %v3140_v20 = vpop.f32.mrb[7].mxu1  ;;  %3455 = vmatmul.mubr.f32.gmra.mrb[112].mxu1 %v2575_v11  ;;  %v697_v5 = vld [vmem:[#allocation2 + $0x70] sm:$0xff] }
 0x33a   : > { %v1972_v23 = vadd.f32 %v1602_v19, %v690_v9  ;;  %v3510_v24 = vadd.f32 %v3140_v20, %v2228_v12  ;;  %1922 = vmatprep.mubr.f32.mxu0 %v1042_v13  ;;  %3460 = vmatprep.mubr.f32.mxu1 %v2580_v14  ;;  %v2235_v6 = vld [vmem:[#allocation3 + $0x70] sm:$0xff]  ;;  %v698_v9 = vld [vmem:[#allocation2 + $0x78] sm:$0xff] }
 0x33b   : > { %2099 = vst [vmem:[#allocation2 + $0x30] sm:$0xff] %v1971_v17  ;;  %3637 = vst [vmem:[#allocation3 + $0x30] sm:$0xff] %v3509_v18  ;;  %v1053_v10 = vld [vmem:[%s5691_s27 + $0x790] sm:$0xff]  ;;  %v2236_v12 = vld [vmem:[#allocation3 + $0x78] sm:$0xff] }
 0x33c   : > { %2100 = vst [vmem:[#allocation2 + $0x38] sm:$0xff] %v1972_v23  ;;  %3638 = vst [vmem:[#allocation3 + $0x38] sm:$0xff] %v3510_v24  ;;  %v1606_v31 = vpop.f32.mrb[8].mxu0  ;;  %v3144_v32 = vpop.f32.mrb[8].mxu1  ;;  %v2591_v11 = vld [vmem:[%s5698_s30 + $0x790] sm:$0xff]  ;;  %v1058_v13 = vld [vmem:[%s5691_s27 + $0x7b8] sm:$0xff] }
 0x33d   : > { %v1973_v33 = vadd.f32 %v1606_v31, %v691_v21  ;;  %v3511_v34 = vadd.f32 %v3144_v32, %v2229_v22  ;;  %v1608_v35 = vpop.f32.mrb[9].mxu0  ;;  %1923 = vmatmul.mubr.f32.gmra.mrb[114].mxu0 %v1041_v26  ;;  %v3146_v36 = vpop.f32.mrb[9].mxu1  ;;  %3461 = vmatmul.mubr.f32.gmra.mrb[114].mxu1 %v2579_v27  ;;  %v2596_v14 = vld [vmem:[%s5698_s30 + $0x7b8] sm:$0xff]  ;;  %v699_v21 = vld [vmem:[#allocation2 + $0x80] sm:$0xff]  ;;  %v1057_v26 = vld [vmem:[%s5691_s27 + $0x7b0] sm:$0xff] }
 0x33e   : > { %v1974_v39 = vadd.f32 %v1608_v35, %v692_v25  ;;  %v3512_v40 = vadd.f32 %v3146_v36, %v2230_v28  ;;  %1928 = vmatprep.mubr.f32.mxu0 %v1046_v29  ;;  %3466 = vmatprep.mubr.f32.mxu1 %v2584_v30  ;;  %v2237_v22 = vld [vmem:[#allocation3 + $0x80] sm:$0xff]  ;;  %v700_v25 = vld [vmem:[#allocation2 + $0x88] sm:$0xff]  ;;  %v2595_v27 = vld [vmem:[%s5698_s30 + $0x7b0] sm:$0xff] }
 0x33f   : > { %2101 = vst [vmem:[#allocation2 + $0x40] sm:$0xff] %v1973_v33  ;;  %3639 = vst [vmem:[#allocation3 + $0x40] sm:$0xff] %v3511_v34  ;;  %v2238_v28 = vld [vmem:[#allocation3 + $0x88] sm:$0xff]  ;;  %v1062_v29 = vld [vmem:[%s5691_s27 + $0x7d8] sm:$0xff] }
 0x340   : > { %2102 = vst [vmem:[#allocation2 + $0x48] sm:$0xff] %v1974_v39  ;;  %3640 = vst [vmem:[#allocation3 + $0x48] sm:$0xff] %v3512_v40  ;;  %v1612_v47 = vpop.f32.mrb[10].mxu0  ;;  %v3150_v48 = vpop.f32.mrb[10].mxu1  ;;  %v2600_v30 = vld [vmem:[%s5698_s30 + $0x7d8] sm:$0xff] }
 0x341   : > { %v1975_v49 = vadd.f32 %v1612_v47, %v693_v37  ;;  %v3513_v50 = vadd.f32 %v3150_v48, %v2231_v38  ;;  %v1614_v51 = vpop.f32.mrb[11].mxu0  ;;  %1929 = vmatmul.mubr.f32.gmra.mrb[116].mxu0 %v1045_v42  ;;  %v3152_v52 = vpop.f32.mrb[11].mxu1  ;;  %3467 = vmatmul.mubr.f32.gmra.mrb[116].mxu1 %v2583_v43  ;;  %v701_v37 = vld [vmem:[#allocation2 + $0x90] sm:$0xff] }
 0x342   : > { %v1976_v55 = vadd.f32 %v1614_v51, %v694_v41  ;;  %v3514_v56 = vadd.f32 %v3152_v52, %v2232_v44  ;;  %1934 = vmatprep.mubr.f32.mxu0 %v1050_v45  ;;  %3472 = vmatprep.mubr.f32.mxu1 %v2588_v46  ;;  %v2239_v38 = vld [vmem:[#allocation3 + $0x90] sm:$0xff]  ;;  %v702_v41 = vld [vmem:[#allocation2 + $0x98] sm:$0xff] }
 0x343   : > { %2103 = vst [vmem:[#allocation2 + $0x50] sm:$0xff] %v1975_v49  ;;  %3641 = vst [vmem:[#allocation3 + $0x50] sm:$0xff] %v3513_v50  ;;  %v1061_v42 = vld [vmem:[%s5691_s27 + $0x7d0] sm:$0xff]  ;;  %v2240_v44 = vld [vmem:[#allocation3 + $0x98] sm:$0xff] }
 0x344   : > { %2104 = vst [vmem:[#allocation2 + $0x58] sm:$0xff] %v1976_v55  ;;  %3642 = vst [vmem:[#allocation3 + $0x58] sm:$0xff] %v3514_v56  ;;  %v1618_v63 = vpop.f32.mrb[12].mxu0  ;;  %v3156_v0 = vpop.f32.mrb[12].mxu1  ;;  %v2599_v43 = vld [vmem:[%s5698_s30 + $0x7d0] sm:$0xff]  ;;  %v1066_v45 = vld [vmem:[%s5691_s27 + $0x7f8] sm:$0xff] }
 0x345   : > { %v1977_v1 = vadd.f32 %v1618_v63, %v695_v53  ;;  %v3515_v2 = vadd.f32 %v3156_v0, %v2233_v54  ;;  %v1620_v3 = vpop.f32.mrb[13].mxu0  ;;  %1935 = vmatmul.mubr.f32.gmra.mrb[118].mxu0 %v1049_v58  ;;  %v3158_v4 = vpop.f32.mrb[13].mxu1  ;;  %3473 = vmatmul.mubr.f32.gmra.mrb[118].mxu1 %v2587_v59  ;;  %v2604_v46 = vld [vmem:[%s5698_s30 + $0x7f8] sm:$0xff]  ;;  %v703_v53 = vld [vmem:[#allocation2 + $0xa0] sm:$0xff]  ;;  %v2603_v58 = vld [vmem:[%s5698_s30 + $0x7f0] sm:$0xff] }
 0x346   : > { %v1978_v7 = vadd.f32 %v1620_v3, %v696_v57  ;;  %v3516_v8 = vadd.f32 %v3158_v4, %v2234_v60  ;;  %1940 = vmatprep.mubr.f32.mxu0 %v1054_v61  ;;  %3478 = vmatprep.mubr.f32.mxu1 %v2592_v62  ;;  %v2241_v56 = vld [vmem:[#allocation3 + $0xa0] sm:$0xff]  ;;  %v1065_v57 = vld [vmem:[%s5691_s27 + $0x7f0] sm:$0xff]  ;;  %v704_v59 = vld [vmem:[#allocation2 + $0xa8] sm:$0xff] }
 0x347   : > { %2105 = vst [vmem:[#allocation2 + $0x60] sm:$0xff] %v1977_v1  ;;  %3643 = vst [vmem:[#allocation3 + $0x60] sm:$0xff] %v3515_v2  ;;  %v2242_v60 = vld [vmem:[#allocation3 + $0xa8] sm:$0xff] }
 0x348   : > { %2106 = vst [vmem:[#allocation2 + $0x68] sm:$0xff] %v1978_v7  ;;  %3644 = vst [vmem:[#allocation3 + $0x68] sm:$0xff] %v3516_v8  ;;  %v1624_v15 = vpop.f32.mrb[14].mxu0  ;;  %v3162_v16 = vpop.f32.mrb[14].mxu1  ;;  %v706_v7 = vld [vmem:[#allocation2 + $0xb8] sm:$0xff] }
 0x349   : > { %v1979_v17 = vadd.f32 %v1624_v15, %v697_v5  ;;  %v3517_v18 = vadd.f32 %v3162_v16, %v2235_v6  ;;  %v1626_v19 = vpop.f32.mrb[15].mxu0  ;;  %1941 = vmatmul.mubr.f32.gmra.mrb[120].mxu0 %v1053_v10  ;;  %v3164_v20 = vpop.f32.mrb[15].mxu1  ;;  %3479 = vmatmul.mubr.f32.gmra.mrb[120].mxu1 %v2591_v11  ;;  %v705_v5 = vld [vmem:[#allocation2 + $0xb0] sm:$0xff]  ;;  %v2244_v8 = vld [vmem:[#allocation3 + $0xb8] sm:$0xff] }
 0x34a   : > { %v1980_v23 = vadd.f32 %v1626_v19, %v698_v9  ;;  %v3518_v24 = vadd.f32 %v3164_v20, %v2236_v12  ;;  %1946 = vmatprep.mubr.f32.mxu0 %v1058_v13  ;;  %3484 = vmatprep.mubr.f32.mxu1 %v2596_v14  ;;  %v2243_v6 = vld [vmem:[#allocation3 + $0xb0] sm:$0xff]  ;;  %v708_v19 = vld [vmem:[#allocation2 + $0xc8] sm:$0xff] }
 0x34b   : > { %2107 = vst [vmem:[#allocation2 + $0x70] sm:$0xff] %v1979_v17  ;;  %3645 = vst [vmem:[#allocation3 + $0x70] sm:$0xff] %v3517_v18  ;;  %v707_v17 = vld [vmem:[#allocation2 + $0xc0] sm:$0xff]  ;;  %v2246_v20 = vld [vmem:[#allocation3 + $0xc8] sm:$0xff] }
 0x34c   : > { %2108 = vst [vmem:[#allocation2 + $0x78] sm:$0xff] %v1980_v23  ;;  %3646 = vst [vmem:[#allocation3 + $0x78] sm:$0xff] %v3518_v24  ;;  %v1630_v31 = vpop.f32.mrb[16].mxu0  ;;  %v3168_v32 = vpop.f32.mrb[16].mxu1  ;;  %v2245_v18 = vld [vmem:[#allocation3 + $0xc0] sm:$0xff] }
 0x34d   : > { %v1981_v33 = vadd.f32 %v1630_v31, %v699_v21  ;;  %v3519_v34 = vadd.f32 %v3168_v32, %v2237_v22  ;;  %v1632_v35 = vpop.f32.mrb[17].mxu0  ;;  %1947 = vmatmul.mubr.f32.gmra.mrb[122].mxu0 %v1057_v26  ;;  %v3170_v36 = vpop.f32.mrb[17].mxu1  ;;  %3485 = vmatmul.mubr.f32.gmra.mrb[122].mxu1 %v2595_v27  ;;  %v710_v31 = vld [vmem:[#allocation2 + $0xd8] sm:$0xff] }
 0x34e   : > { %v1982_v39 = vadd.f32 %v1632_v35, %v700_v25  ;;  %v3520_v40 = vadd.f32 %v3170_v36, %v2238_v28  ;;  %1952 = vmatprep.mubr.f32.mxu0 %v1062_v29  ;;  %3490 = vmatprep.mubr.f32.mxu1 %v2600_v30  ;;  %v709_v29 = vld [vmem:[#allocation2 + $0xd0] sm:$0xff]  ;;  %v2248_v32 = vld [vmem:[#allocation3 + $0xd8] sm:$0xff] }
 0x34f   : > { %2109 = vst [vmem:[#allocation2 + $0x80] sm:$0xff] %v1981_v33  ;;  %3647 = vst [vmem:[#allocation3 + $0x80] sm:$0xff] %v3519_v34  ;;  %v2247_v30 = vld [vmem:[#allocation3 + $0xd0] sm:$0xff] }
 0x350   : > { %2110 = vst [vmem:[#allocation2 + $0x88] sm:$0xff] %v1982_v39  ;;  %3648 = vst [vmem:[#allocation3 + $0x88] sm:$0xff] %v3520_v40  ;;  %v1636_v47 = vpop.f32.mrb[18].mxu0  ;;  %v3174_v48 = vpop.f32.mrb[18].mxu1 }
 0x351   : > { %v1983_v49 = vadd.f32 %v1636_v47, %v701_v37  ;;  %v3521_v50 = vadd.f32 %v3174_v48, %v2239_v38  ;;  %v1638_v51 = vpop.f32.mrb[19].mxu0  ;;  %1953 = vmatmul.mubr.f32.gmra.mrb[124].mxu0 %v1061_v42  ;;  %v3176_v52 = vpop.f32.mrb[19].mxu1  ;;  %3491 = vmatmul.mubr.f32.gmra.mrb[124].mxu1 %v2599_v43  ;;  %v2249_v42 = vld [vmem:[#allocation3 + $0xe0] sm:$0xff]  ;;  %v712_v43 = vld [vmem:[#allocation2 + $0xe8] sm:$0xff] }
 0x352   : > { %v1984_v54 = vadd.f32 %v1638_v51, %v702_v41  ;;  %v3522_v55 = vadd.f32 %v3176_v52, %v2240_v44  ;;  %1958 = vmatprep.mubr.f32.mxu0 %v1066_v45  ;;  %3496 = vmatprep.mubr.f32.mxu1 %v2604_v46  ;;  %v711_v41 = vld [vmem:[#allocation2 + $0xe0] sm:$0xff]  ;;  %v2250_v44 = vld [vmem:[#allocation3 + $0xe8] sm:$0xff] }
 0x353   : > { %2111 = vst [vmem:[#allocation2 + $0x90] sm:$0xff] %v1983_v49  ;;  %3649 = vst [vmem:[#allocation3 + $0x90] sm:$0xff] %v3521_v50 }
 0x354   : > { %2112 = vst [vmem:[#allocation2 + $0x98] sm:$0xff] %v1984_v54  ;;  %3650 = vst [vmem:[#allocation3 + $0x98] sm:$0xff] %v3522_v55  ;;  %v1642_v61 = vpop.f32.mrb[20].mxu0  ;;  %v3180_v62 = vpop.f32.mrb[20].mxu1  ;;  %v2251_v54 = vld [vmem:[#allocation3 + $0xf0] sm:$0xff]  ;;  %v714_v55 = vld [vmem:[#allocation2 + $0xf8] sm:$0xff] }
 0x355   : > { %v1985_v63 = vadd.f32 %v1642_v61, %v703_v53  ;;  %v3523_v0 = vadd.f32 %v3180_v62, %v2241_v56  ;;  %v1644_v1 = vpop.f32.mrb[21].mxu0  ;;  %1959 = vmatmul.mubr.f32.gmra.mrb[126].mxu0 %v1065_v57  ;;  %v3182_v2 = vpop.f32.mrb[21].mxu1  ;;  %3497 = vmatmul.mubr.f32.gmra.mrb[126].mxu1 %v2603_v58  ;;  %v713_v53 = vld [vmem:[#allocation2 + $0xf0] sm:$0xff]  ;;  %v2252_v56 = vld [vmem:[#allocation3 + $0xf8] sm:$0xff] }
 0x356   : > { %v1986_v3 = vadd.f32 %v1644_v1, %v704_v59  ;;  %v3524_v4 = vadd.f32 %v3182_v2, %v2242_v60  ;;  %v715_v1 = vld [vmem:[#allocation2 + $0x100] sm:$0xff] }
 0x357   : > { %2113 = vst [vmem:[#allocation2 + $0xa0] sm:$0xff] %v1985_v63  ;;  %3651 = vst [vmem:[#allocation3 + $0xa0] sm:$0xff] %v3523_v0  ;;  %v2253_v2 = vld [vmem:[#allocation3 + $0x100] sm:$0xff] }
 0x358   : > { %2114 = vst [vmem:[#allocation2 + $0xa8] sm:$0xff] %v1986_v3  ;;  %3652 = vst [vmem:[#allocation3 + $0xa8] sm:$0xff] %v3524_v4  ;;  %v1648_v9 = vpop.f32.mrb[22].mxu0  ;;  %v3186_v10 = vpop.f32.mrb[22].mxu1  ;;  %v716_v3 = vld [vmem:[#allocation2 + $0x108] sm:$0xff] }
 0x359   : > { %v1987_v11 = vadd.f32 %v1648_v9, %v705_v5  ;;  %v3525_v12 = vadd.f32 %v3186_v10, %v2243_v6  ;;  %v1650_v13 = vpop.f32.mrb[23].mxu0  ;;  %v3188_v14 = vpop.f32.mrb[23].mxu1  ;;  %v2254_v4 = vld [vmem:[#allocation3 + $0x108] sm:$0xff] }
 0x35a   : > { %v1988_v15 = vadd.f32 %v1650_v13, %v706_v7  ;;  %v3526_v16 = vadd.f32 %v3188_v14, %v2244_v8  ;;  %v717_v13 = vld [vmem:[#allocation2 + $0x110] sm:$0xff] }
 0x35b   : > { %2115 = vst [vmem:[#allocation2 + $0xb0] sm:$0xff] %v1987_v11  ;;  %3653 = vst [vmem:[#allocation3 + $0xb0] sm:$0xff] %v3525_v12  ;;  %v2255_v14 = vld [vmem:[#allocation3 + $0x110] sm:$0xff] }
 0x35c   : > { %2116 = vst [vmem:[#allocation2 + $0xb8] sm:$0xff] %v1988_v15  ;;  %3654 = vst [vmem:[#allocation3 + $0xb8] sm:$0xff] %v3526_v16  ;;  %v1654_v21 = vpop.f32.mrb[24].mxu0  ;;  %v3192_v22 = vpop.f32.mrb[24].mxu1  ;;  %v718_v15 = vld [vmem:[#allocation2 + $0x118] sm:$0xff] }
 0x35d   : > { %v1989_v23 = vadd.f32 %v1654_v21, %v707_v17  ;;  %v3527_v24 = vadd.f32 %v3192_v22, %v2245_v18  ;;  %v1656_v25 = vpop.f32.mrb[25].mxu0  ;;  %v3194_v26 = vpop.f32.mrb[25].mxu1  ;;  %v2256_v16 = vld [vmem:[#allocation3 + $0x118] sm:$0xff] }
 0x35e   : > { %v1990_v27 = vadd.f32 %v1656_v25, %v708_v19  ;;  %v3528_v28 = vadd.f32 %v3194_v26, %v2246_v20  ;;  %v719_v25 = vld [vmem:[#allocation2 + $0x120] sm:$0xff] }
 0x35f   : > { %2117 = vst [vmem:[#allocation2 + $0xc0] sm:$0xff] %v1989_v23  ;;  %3655 = vst [vmem:[#allocation3 + $0xc0] sm:$0xff] %v3527_v24  ;;  %v2257_v26 = vld [vmem:[#allocation3 + $0x120] sm:$0xff] }
 0x360   : > { %2118 = vst [vmem:[#allocation2 + $0xc8] sm:$0xff] %v1990_v27  ;;  %3656 = vst [vmem:[#allocation3 + $0xc8] sm:$0xff] %v3528_v28  ;;  %v1660_v33 = vpop.f32.mrb[26].mxu0  ;;  %v3198_v34 = vpop.f32.mrb[26].mxu1  ;;  %v720_v27 = vld [vmem:[#allocation2 + $0x128] sm:$0xff] }
 0x361   : > { %v1991_v35 = vadd.f32 %v1660_v33, %v709_v29  ;;  %v3529_v36 = vadd.f32 %v3198_v34, %v2247_v30  ;;  %v1662_v37 = vpop.f32.mrb[27].mxu0  ;;  %v3200_v38 = vpop.f32.mrb[27].mxu1  ;;  %v2258_v28 = vld [vmem:[#allocation3 + $0x128] sm:$0xff] }
 0x362   : > { %v1992_v39 = vadd.f32 %v1662_v37, %v710_v31  ;;  %v3530_v40 = vadd.f32 %v3200_v38, %v2248_v32  ;;  %v721_v37 = vld [vmem:[#allocation2 + $0x130] sm:$0xff] }
 0x363   : > { %2119 = vst [vmem:[#allocation2 + $0xd0] sm:$0xff] %v1991_v35  ;;  %3657 = vst [vmem:[#allocation3 + $0xd0] sm:$0xff] %v3529_v36  ;;  %v2259_v38 = vld [vmem:[#allocation3 + $0x130] sm:$0xff] }
 0x364   : > { %2120 = vst [vmem:[#allocation2 + $0xd8] sm:$0xff] %v1992_v39  ;;  %3658 = vst [vmem:[#allocation3 + $0xd8] sm:$0xff] %v3530_v40  ;;  %v1666_v45 = vpop.f32.mrb[28].mxu0  ;;  %v3204_v46 = vpop.f32.mrb[28].mxu1  ;;  %v722_v39 = vld [vmem:[#allocation2 + $0x138] sm:$0xff] }
 0x365   : > { %v1993_v47 = vadd.f32 %v1666_v45, %v711_v41  ;;  %v3531_v48 = vadd.f32 %v3204_v46, %v2249_v42  ;;  %v1668_v49 = vpop.f32.mrb[29].mxu0  ;;  %v3206_v50 = vpop.f32.mrb[29].mxu1  ;;  %v2260_v40 = vld [vmem:[#allocation3 + $0x138] sm:$0xff] }
 0x366   : > { %v1994_v51 = vadd.f32 %v1668_v49, %v712_v43  ;;  %v3532_v52 = vadd.f32 %v3206_v50, %v2250_v44  ;;  %v723_v49 = vld [vmem:[#allocation2 + $0x140] sm:$0xff] }
 0x367   : > { %2121 = vst [vmem:[#allocation2 + $0xe0] sm:$0xff] %v1993_v47  ;;  %3659 = vst [vmem:[#allocation3 + $0xe0] sm:$0xff] %v3531_v48  ;;  %v2261_v50 = vld [vmem:[#allocation3 + $0x140] sm:$0xff] }
 0x368   : > { %2122 = vst [vmem:[#allocation2 + $0xe8] sm:$0xff] %v1994_v51  ;;  %3660 = vst [vmem:[#allocation3 + $0xe8] sm:$0xff] %v3532_v52  ;;  %v1672_v57 = vpop.f32.mrb[30].mxu0  ;;  %v3210_v58 = vpop.f32.mrb[30].mxu1  ;;  %v724_v51 = vld [vmem:[#allocation2 + $0x148] sm:$0xff] }
 0x369   : > { %v1995_v59 = vadd.f32 %v1672_v57, %v713_v53  ;;  %v3533_v60 = vadd.f32 %v3210_v58, %v2251_v54  ;;  %v1674_v61 = vpop.f32.mrb[31].mxu0  ;;  %v3212_v62 = vpop.f32.mrb[31].mxu1  ;;  %v2262_v52 = vld [vmem:[#allocation3 + $0x148] sm:$0xff] }
 0x36a   : > { %v1996_v63 = vadd.f32 %v1674_v61, %v714_v55  ;;  %v3534_v0 = vadd.f32 %v3212_v62, %v2252_v56  ;;  %v725_v61 = vld [vmem:[#allocation2 + $0x150] sm:$0xff] }
 0x36b   : > { %2123 = vst [vmem:[#allocation2 + $0xf0] sm:$0xff] %v1995_v59  ;;  %3661 = vst [vmem:[#allocation3 + $0xf0] sm:$0xff] %v3533_v60  ;;  %v2263_v62 = vld [vmem:[#allocation3 + $0x150] sm:$0xff] }
 0x36c   : > { %2124 = vst [vmem:[#allocation2 + $0xf8] sm:$0xff] %v1996_v63  ;;  %3662 = vst [vmem:[#allocation3 + $0xf8] sm:$0xff] %v3534_v0  ;;  %v1678_v5 = vpop.f32.mrb[32].mxu0  ;;  %v3216_v6 = vpop.f32.mrb[32].mxu1  ;;  %v726_v63 = vld [vmem:[#allocation2 + $0x158] sm:$0xff] }
 0x36d   : > { %v1997_v7 = vadd.f32 %v1678_v5, %v715_v1  ;;  %v3535_v8 = vadd.f32 %v3216_v6, %v2253_v2  ;;  %v1680_v9 = vpop.f32.mrb[33].mxu0  ;;  %v3218_v10 = vpop.f32.mrb[33].mxu1  ;;  %v2264_v0 = vld [vmem:[#allocation3 + $0x158] sm:$0xff] }
 0x36e   : > { %v1998_v11 = vadd.f32 %v1680_v9, %v716_v3  ;;  %v3536_v12 = vadd.f32 %v3218_v10, %v2254_v4  ;;  %v727_v9 = vld [vmem:[#allocation2 + $0x160] sm:$0xff] }
 0x36f   : > { %2125 = vst [vmem:[#allocation2 + $0x100] sm:$0xff] %v1997_v7  ;;  %3663 = vst [vmem:[#allocation3 + $0x100] sm:$0xff] %v3535_v8  ;;  %v2265_v10 = vld [vmem:[#allocation3 + $0x160] sm:$0xff] }
 0x370   : > { %2126 = vst [vmem:[#allocation2 + $0x108] sm:$0xff] %v1998_v11  ;;  %3664 = vst [vmem:[#allocation3 + $0x108] sm:$0xff] %v3536_v12  ;;  %v1684_v17 = vpop.f32.mrb[34].mxu0  ;;  %v3222_v18 = vpop.f32.mrb[34].mxu1  ;;  %v728_v11 = vld [vmem:[#allocation2 + $0x168] sm:$0xff] }
 0x371   : > { %v1999_v19 = vadd.f32 %v1684_v17, %v717_v13  ;;  %v3537_v20 = vadd.f32 %v3222_v18, %v2255_v14  ;;  %v1686_v21 = vpop.f32.mrb[35].mxu0  ;;  %v3224_v22 = vpop.f32.mrb[35].mxu1  ;;  %v2266_v12 = vld [vmem:[#allocation3 + $0x168] sm:$0xff] }
 0x372   : > { %v2000_v23 = vadd.f32 %v1686_v21, %v718_v15  ;;  %v3538_v24 = vadd.f32 %v3224_v22, %v2256_v16  ;;  %v729_v21 = vld [vmem:[#allocation2 + $0x170] sm:$0xff] }
 0x373   : > { %2127 = vst [vmem:[#allocation2 + $0x110] sm:$0xff] %v1999_v19  ;;  %3665 = vst [vmem:[#allocation3 + $0x110] sm:$0xff] %v3537_v20  ;;  %v2267_v22 = vld [vmem:[#allocation3 + $0x170] sm:$0xff] }
 0x374   : > { %2128 = vst [vmem:[#allocation2 + $0x118] sm:$0xff] %v2000_v23  ;;  %3666 = vst [vmem:[#allocation3 + $0x118] sm:$0xff] %v3538_v24  ;;  %v1690_v29 = vpop.f32.mrb[36].mxu0  ;;  %v3228_v30 = vpop.f32.mrb[36].mxu1  ;;  %v730_v23 = vld [vmem:[#allocation2 + $0x178] sm:$0xff] }
 0x375   : > { %v2001_v31 = vadd.f32 %v1690_v29, %v719_v25  ;;  %v3539_v32 = vadd.f32 %v3228_v30, %v2257_v26  ;;  %v1692_v33 = vpop.f32.mrb[37].mxu0  ;;  %v3230_v34 = vpop.f32.mrb[37].mxu1  ;;  %v2268_v24 = vld [vmem:[#allocation3 + $0x178] sm:$0xff] }
 0x376   : > { %v2002_v35 = vadd.f32 %v1692_v33, %v720_v27  ;;  %v3540_v36 = vadd.f32 %v3230_v34, %v2258_v28  ;;  %v731_v33 = vld [vmem:[#allocation2 + $0x180] sm:$0xff] }
 0x377   : > { %2129 = vst [vmem:[#allocation2 + $0x120] sm:$0xff] %v2001_v31  ;;  %3667 = vst [vmem:[#allocation3 + $0x120] sm:$0xff] %v3539_v32  ;;  %v2269_v34 = vld [vmem:[#allocation3 + $0x180] sm:$0xff] }
 0x378   : > { %2130 = vst [vmem:[#allocation2 + $0x128] sm:$0xff] %v2002_v35  ;;  %3668 = vst [vmem:[#allocation3 + $0x128] sm:$0xff] %v3540_v36  ;;  %v1696_v41 = vpop.f32.mrb[38].mxu0  ;;  %v3234_v42 = vpop.f32.mrb[38].mxu1  ;;  %v732_v35 = vld [vmem:[#allocation2 + $0x188] sm:$0xff] }
 0x379   : > { %v2003_v43 = vadd.f32 %v1696_v41, %v721_v37  ;;  %v3541_v44 = vadd.f32 %v3234_v42, %v2259_v38  ;;  %v1698_v45 = vpop.f32.mrb[39].mxu0  ;;  %v3236_v46 = vpop.f32.mrb[39].mxu1  ;;  %v2270_v36 = vld [vmem:[#allocation3 + $0x188] sm:$0xff] }
 0x37a   : > { %v2004_v47 = vadd.f32 %v1698_v45, %v722_v39  ;;  %v3542_v48 = vadd.f32 %v3236_v46, %v2260_v40  ;;  %v733_v45 = vld [vmem:[#allocation2 + $0x190] sm:$0xff] }
 0x37b   : > { %2131 = vst [vmem:[#allocation2 + $0x130] sm:$0xff] %v2003_v43  ;;  %3669 = vst [vmem:[#allocation3 + $0x130] sm:$0xff] %v3541_v44  ;;  %v2271_v46 = vld [vmem:[#allocation3 + $0x190] sm:$0xff] }
 0x37c   : > { %2132 = vst [vmem:[#allocation2 + $0x138] sm:$0xff] %v2004_v47  ;;  %3670 = vst [vmem:[#allocation3 + $0x138] sm:$0xff] %v3542_v48  ;;  %v1702_v53 = vpop.f32.mrb[40].mxu0  ;;  %v3240_v54 = vpop.f32.mrb[40].mxu1  ;;  %v734_v47 = vld [vmem:[#allocation2 + $0x198] sm:$0xff] }
 0x37d   : > { %v2005_v55 = vadd.f32 %v1702_v53, %v723_v49  ;;  %v3543_v56 = vadd.f32 %v3240_v54, %v2261_v50  ;;  %v1704_v57 = vpop.f32.mrb[41].mxu0  ;;  %v3242_v58 = vpop.f32.mrb[41].mxu1  ;;  %v2272_v48 = vld [vmem:[#allocation3 + $0x198] sm:$0xff] }
 0x37e   : > { %v2006_v59 = vadd.f32 %v1704_v57, %v724_v51  ;;  %v3544_v60 = vadd.f32 %v3242_v58, %v2262_v52  ;;  %v735_v57 = vld [vmem:[#allocation2 + $0x1a0] sm:$0xff] }
 0x37f   : > { %2133 = vst [vmem:[#allocation2 + $0x140] sm:$0xff] %v2005_v55  ;;  %3671 = vst [vmem:[#allocation3 + $0x140] sm:$0xff] %v3543_v56  ;;  %v2273_v58 = vld [vmem:[#allocation3 + $0x1a0] sm:$0xff] }
 0x380   : > { %2134 = vst [vmem:[#allocation2 + $0x148] sm:$0xff] %v2006_v59  ;;  %3672 = vst [vmem:[#allocation3 + $0x148] sm:$0xff] %v3544_v60  ;;  %v1708_v1 = vpop.f32.mrb[42].mxu0  ;;  %v3246_v2 = vpop.f32.mrb[42].mxu1  ;;  %v736_v59 = vld [vmem:[#allocation2 + $0x1a8] sm:$0xff] }
 0x381   : > { %v2007_v3 = vadd.f32 %v1708_v1, %v725_v61  ;;  %v3545_v4 = vadd.f32 %v3246_v2, %v2263_v62  ;;  %v1710_v5 = vpop.f32.mrb[43].mxu0  ;;  %v3248_v6 = vpop.f32.mrb[43].mxu1  ;;  %v2274_v60 = vld [vmem:[#allocation3 + $0x1a8] sm:$0xff] }
 0x382   : > { %v2008_v7 = vadd.f32 %v1710_v5, %v726_v63  ;;  %v3546_v8 = vadd.f32 %v3248_v6, %v2264_v0  ;;  %v737_v5 = vld [vmem:[#allocation2 + $0x1b0] sm:$0xff] }
 0x383   : > { %2135 = vst [vmem:[#allocation2 + $0x150] sm:$0xff] %v2007_v3  ;;  %3673 = vst [vmem:[#allocation3 + $0x150] sm:$0xff] %v3545_v4  ;;  %v2275_v6 = vld [vmem:[#allocation3 + $0x1b0] sm:$0xff] }
 0x384   : > { %2136 = vst [vmem:[#allocation2 + $0x158] sm:$0xff] %v2008_v7  ;;  %3674 = vst [vmem:[#allocation3 + $0x158] sm:$0xff] %v3546_v8  ;;  %v1714_v13 = vpop.f32.mrb[44].mxu0  ;;  %v3252_v14 = vpop.f32.mrb[44].mxu1  ;;  %v738_v7 = vld [vmem:[#allocation2 + $0x1b8] sm:$0xff] }
 0x385   : > { %v2009_v15 = vadd.f32 %v1714_v13, %v727_v9  ;;  %v3547_v16 = vadd.f32 %v3252_v14, %v2265_v10  ;;  %v1716_v17 = vpop.f32.mrb[45].mxu0  ;;  %v3254_v18 = vpop.f32.mrb[45].mxu1  ;;  %v2276_v8 = vld [vmem:[#allocation3 + $0x1b8] sm:$0xff] }
 0x386   : > { %v2010_v19 = vadd.f32 %v1716_v17, %v728_v11  ;;  %v3548_v20 = vadd.f32 %v3254_v18, %v2266_v12  ;;  %v739_v17 = vld [vmem:[#allocation2 + $0x1c0] sm:$0xff] }
 0x387   : > { %2137 = vst [vmem:[#allocation2 + $0x160] sm:$0xff] %v2009_v15  ;;  %3675 = vst [vmem:[#allocation3 + $0x160] sm:$0xff] %v3547_v16  ;;  %v2277_v18 = vld [vmem:[#allocation3 + $0x1c0] sm:$0xff] }
 0x388   : > { %2138 = vst [vmem:[#allocation2 + $0x168] sm:$0xff] %v2010_v19  ;;  %3676 = vst [vmem:[#allocation3 + $0x168] sm:$0xff] %v3548_v20  ;;  %v1720_v25 = vpop.f32.mrb[46].mxu0  ;;  %v3258_v26 = vpop.f32.mrb[46].mxu1  ;;  %v740_v19 = vld [vmem:[#allocation2 + $0x1c8] sm:$0xff] }
 0x389   : > { %v2011_v27 = vadd.f32 %v1720_v25, %v729_v21  ;;  %v3549_v28 = vadd.f32 %v3258_v26, %v2267_v22  ;;  %v1722_v29 = vpop.f32.mrb[47].mxu0  ;;  %v3260_v30 = vpop.f32.mrb[47].mxu1  ;;  %v2278_v20 = vld [vmem:[#allocation3 + $0x1c8] sm:$0xff] }
 0x38a   : > { %v2012_v31 = vadd.f32 %v1722_v29, %v730_v23  ;;  %v3550_v32 = vadd.f32 %v3260_v30, %v2268_v24  ;;  %v741_v29 = vld [vmem:[#allocation2 + $0x1d0] sm:$0xff] }
 0x38b   : > { %2139 = vst [vmem:[#allocation2 + $0x170] sm:$0xff] %v2011_v27  ;;  %3677 = vst [vmem:[#allocation3 + $0x170] sm:$0xff] %v3549_v28  ;;  %v2279_v30 = vld [vmem:[#allocation3 + $0x1d0] sm:$0xff] }
 0x38c   : > { %2140 = vst [vmem:[#allocation2 + $0x178] sm:$0xff] %v2012_v31  ;;  %3678 = vst [vmem:[#allocation3 + $0x178] sm:$0xff] %v3550_v32  ;;  %v1726_v37 = vpop.f32.mrb[48].mxu0  ;;  %v3264_v38 = vpop.f32.mrb[48].mxu1  ;;  %v742_v31 = vld [vmem:[#allocation2 + $0x1d8] sm:$0xff] }
 0x38d   : > { %v2013_v39 = vadd.f32 %v1726_v37, %v731_v33  ;;  %v3551_v40 = vadd.f32 %v3264_v38, %v2269_v34  ;;  %v1728_v41 = vpop.f32.mrb[49].mxu0  ;;  %v3266_v42 = vpop.f32.mrb[49].mxu1  ;;  %v2280_v32 = vld [vmem:[#allocation3 + $0x1d8] sm:$0xff] }
 0x38e   : > { %v2014_v43 = vadd.f32 %v1728_v41, %v732_v35  ;;  %v3552_v44 = vadd.f32 %v3266_v42, %v2270_v36  ;;  %v743_v41 = vld [vmem:[#allocation2 + $0x1e0] sm:$0xff] }
 0x38f   : > { %2141 = vst [vmem:[#allocation2 + $0x180] sm:$0xff] %v2013_v39  ;;  %3679 = vst [vmem:[#allocation3 + $0x180] sm:$0xff] %v3551_v40  ;;  %v2281_v42 = vld [vmem:[#allocation3 + $0x1e0] sm:$0xff] }
 0x390   : > { %2142 = vst [vmem:[#allocation2 + $0x188] sm:$0xff] %v2014_v43  ;;  %3680 = vst [vmem:[#allocation3 + $0x188] sm:$0xff] %v3552_v44  ;;  %v1732_v49 = vpop.f32.mrb[50].mxu0  ;;  %v3270_v50 = vpop.f32.mrb[50].mxu1  ;;  %v744_v43 = vld [vmem:[#allocation2 + $0x1e8] sm:$0xff] }
 0x391   : > { %v2015_v51 = vadd.f32 %v1732_v49, %v733_v45  ;;  %v3553_v52 = vadd.f32 %v3270_v50, %v2271_v46  ;;  %v1734_v53 = vpop.f32.mrb[51].mxu0  ;;  %v3272_v54 = vpop.f32.mrb[51].mxu1  ;;  %v2282_v44 = vld [vmem:[#allocation3 + $0x1e8] sm:$0xff] }
 0x392   : > { %v2016_v55 = vadd.f32 %v1734_v53, %v734_v47  ;;  %v3554_v56 = vadd.f32 %v3272_v54, %v2272_v48  ;;  %v745_v53 = vld [vmem:[#allocation2 + $0x1f0] sm:$0xff] }
 0x393   : > { %2143 = vst [vmem:[#allocation2 + $0x190] sm:$0xff] %v2015_v51  ;;  %3681 = vst [vmem:[#allocation3 + $0x190] sm:$0xff] %v3553_v52  ;;  %v2283_v54 = vld [vmem:[#allocation3 + $0x1f0] sm:$0xff] }
 0x394   : > { %2144 = vst [vmem:[#allocation2 + $0x198] sm:$0xff] %v2016_v55  ;;  %3682 = vst [vmem:[#allocation3 + $0x198] sm:$0xff] %v3554_v56  ;;  %v1738_v61 = vpop.f32.mrb[52].mxu0  ;;  %v3276_v62 = vpop.f32.mrb[52].mxu1  ;;  %v746_v55 = vld [vmem:[#allocation2 + $0x1f8] sm:$0xff] }
 0x395   : > { %v2017_v63 = vadd.f32 %v1738_v61, %v735_v57  ;;  %v3555_v0 = vadd.f32 %v3276_v62, %v2273_v58  ;;  %v1740_v1 = vpop.f32.mrb[53].mxu0  ;;  %v3278_v2 = vpop.f32.mrb[53].mxu1  ;;  %v2284_v56 = vld [vmem:[#allocation3 + $0x1f8] sm:$0xff] }
 0x396   : > { %v2018_v3 = vadd.f32 %v1740_v1, %v736_v59  ;;  %v3556_v4 = vadd.f32 %v3278_v2, %v2274_v60  ;;  %v747_v1 = vld [vmem:[#allocation2 + $0x200] sm:$0xff] }
 0x397   : > { %2145 = vst [vmem:[#allocation2 + $0x1a0] sm:$0xff] %v2017_v63  ;;  %3683 = vst [vmem:[#allocation3 + $0x1a0] sm:$0xff] %v3555_v0  ;;  %v2285_v2 = vld [vmem:[#allocation3 + $0x200] sm:$0xff] }
 0x398   : > { %2146 = vst [vmem:[#allocation2 + $0x1a8] sm:$0xff] %v2018_v3  ;;  %3684 = vst [vmem:[#allocation3 + $0x1a8] sm:$0xff] %v3556_v4  ;;  %v1744_v9 = vpop.f32.mrb[54].mxu0  ;;  %v3282_v10 = vpop.f32.mrb[54].mxu1  ;;  %v748_v3 = vld [vmem:[#allocation2 + $0x208] sm:$0xff] }
 0x399   : > { %v2019_v11 = vadd.f32 %v1744_v9, %v737_v5  ;;  %v3557_v12 = vadd.f32 %v3282_v10, %v2275_v6  ;;  %v1746_v13 = vpop.f32.mrb[55].mxu0  ;;  %v3284_v14 = vpop.f32.mrb[55].mxu1  ;;  %v2286_v4 = vld [vmem:[#allocation3 + $0x208] sm:$0xff] }
 0x39a   : > { %v2020_v15 = vadd.f32 %v1746_v13, %v738_v7  ;;  %v3558_v16 = vadd.f32 %v3284_v14, %v2276_v8  ;;  %v749_v13 = vld [vmem:[#allocation2 + $0x210] sm:$0xff] }
 0x39b   : > { %2147 = vst [vmem:[#allocation2 + $0x1b0] sm:$0xff] %v2019_v11  ;;  %3685 = vst [vmem:[#allocation3 + $0x1b0] sm:$0xff] %v3557_v12  ;;  %v2287_v14 = vld [vmem:[#allocation3 + $0x210] sm:$0xff] }
 0x39c   : > { %2148 = vst [vmem:[#allocation2 + $0x1b8] sm:$0xff] %v2020_v15  ;;  %3686 = vst [vmem:[#allocation3 + $0x1b8] sm:$0xff] %v3558_v16  ;;  %v1750_v21 = vpop.f32.mrb[56].mxu0  ;;  %v3288_v22 = vpop.f32.mrb[56].mxu1  ;;  %v750_v15 = vld [vmem:[#allocation2 + $0x218] sm:$0xff] }
 0x39d   : > { %v2021_v23 = vadd.f32 %v1750_v21, %v739_v17  ;;  %v3559_v24 = vadd.f32 %v3288_v22, %v2277_v18  ;;  %v1752_v25 = vpop.f32.mrb[57].mxu0  ;;  %v3290_v26 = vpop.f32.mrb[57].mxu1  ;;  %v2288_v16 = vld [vmem:[#allocation3 + $0x218] sm:$0xff] }
 0x39e   : > { %v2022_v27 = vadd.f32 %v1752_v25, %v740_v19  ;;  %v3560_v28 = vadd.f32 %v3290_v26, %v2278_v20  ;;  %v751_v25 = vld [vmem:[#allocation2 + $0x220] sm:$0xff] }
 0x39f   : > { %2149 = vst [vmem:[#allocation2 + $0x1c0] sm:$0xff] %v2021_v23  ;;  %3687 = vst [vmem:[#allocation3 + $0x1c0] sm:$0xff] %v3559_v24  ;;  %v2289_v26 = vld [vmem:[#allocation3 + $0x220] sm:$0xff] }
 0x3a0   : > { %2150 = vst [vmem:[#allocation2 + $0x1c8] sm:$0xff] %v2022_v27  ;;  %3688 = vst [vmem:[#allocation3 + $0x1c8] sm:$0xff] %v3560_v28  ;;  %v1756_v33 = vpop.f32.mrb[58].mxu0  ;;  %v3294_v34 = vpop.f32.mrb[58].mxu1  ;;  %v752_v27 = vld [vmem:[#allocation2 + $0x228] sm:$0xff] }
 0x3a1   : > { %v2023_v35 = vadd.f32 %v1756_v33, %v741_v29  ;;  %v3561_v36 = vadd.f32 %v3294_v34, %v2279_v30  ;;  %v1758_v37 = vpop.f32.mrb[59].mxu0  ;;  %v3296_v38 = vpop.f32.mrb[59].mxu1  ;;  %v2290_v28 = vld [vmem:[#allocation3 + $0x228] sm:$0xff] }
 0x3a2   : > { %v2024_v39 = vadd.f32 %v1758_v37, %v742_v31  ;;  %v3562_v40 = vadd.f32 %v3296_v38, %v2280_v32  ;;  %v753_v37 = vld [vmem:[#allocation2 + $0x230] sm:$0xff] }
 0x3a3   : > { %2151 = vst [vmem:[#allocation2 + $0x1d0] sm:$0xff] %v2023_v35  ;;  %3689 = vst [vmem:[#allocation3 + $0x1d0] sm:$0xff] %v3561_v36  ;;  %v2291_v38 = vld [vmem:[#allocation3 + $0x230] sm:$0xff] }
 0x3a4   : > { %2152 = vst [vmem:[#allocation2 + $0x1d8] sm:$0xff] %v2024_v39  ;;  %3690 = vst [vmem:[#allocation3 + $0x1d8] sm:$0xff] %v3562_v40  ;;  %v1762_v45 = vpop.f32.mrb[60].mxu0  ;;  %v3300_v46 = vpop.f32.mrb[60].mxu1  ;;  %v754_v39 = vld [vmem:[#allocation2 + $0x238] sm:$0xff] }
 0x3a5   : > { %v2025_v47 = vadd.f32 %v1762_v45, %v743_v41  ;;  %v3563_v48 = vadd.f32 %v3300_v46, %v2281_v42  ;;  %v1764_v49 = vpop.f32.mrb[61].mxu0  ;;  %v3302_v50 = vpop.f32.mrb[61].mxu1  ;;  %v2292_v40 = vld [vmem:[#allocation3 + $0x238] sm:$0xff] }
 0x3a6   : > { %v2026_v51 = vadd.f32 %v1764_v49, %v744_v43  ;;  %v3564_v52 = vadd.f32 %v3302_v50, %v2282_v44  ;;  %v755_v49 = vld [vmem:[#allocation2 + $0x240] sm:$0xff] }
 0x3a7   : > { %2153 = vst [vmem:[#allocation2 + $0x1e0] sm:$0xff] %v2025_v47  ;;  %3691 = vst [vmem:[#allocation3 + $0x1e0] sm:$0xff] %v3563_v48  ;;  %v2293_v50 = vld [vmem:[#allocation3 + $0x240] sm:$0xff] }
 0x3a8   : > { %2154 = vst [vmem:[#allocation2 + $0x1e8] sm:$0xff] %v2026_v51  ;;  %3692 = vst [vmem:[#allocation3 + $0x1e8] sm:$0xff] %v3564_v52  ;;  %v1768_v57 = vpop.f32.mrb[62].mxu0  ;;  %v3306_v58 = vpop.f32.mrb[62].mxu1  ;;  %v756_v51 = vld [vmem:[#allocation2 + $0x248] sm:$0xff] }
 0x3a9   : > { %v2027_v59 = vadd.f32 %v1768_v57, %v745_v53  ;;  %v3565_v60 = vadd.f32 %v3306_v58, %v2283_v54  ;;  %v1770_v61 = vpop.f32.mrb[63].mxu0  ;;  %v3308_v62 = vpop.f32.mrb[63].mxu1  ;;  %v2294_v52 = vld [vmem:[#allocation3 + $0x248] sm:$0xff] }
 0x3aa   : > { %v2028_v63 = vadd.f32 %v1770_v61, %v746_v55  ;;  %v3566_v0 = vadd.f32 %v3308_v62, %v2284_v56  ;;  %v757_v61 = vld [vmem:[#allocation2 + $0x250] sm:$0xff] }
 0x3ab   : > { %2155 = vst [vmem:[#allocation2 + $0x1f0] sm:$0xff] %v2027_v59  ;;  %3693 = vst [vmem:[#allocation3 + $0x1f0] sm:$0xff] %v3565_v60  ;;  %v2295_v62 = vld [vmem:[#allocation3 + $0x250] sm:$0xff] }
 0x3ac   : > { %2156 = vst [vmem:[#allocation2 + $0x1f8] sm:$0xff] %v2028_v63  ;;  %3694 = vst [vmem:[#allocation3 + $0x1f8] sm:$0xff] %v3566_v0  ;;  %v1774_v5 = vpop.f32.mrb[64].mxu0  ;;  %v3312_v6 = vpop.f32.mrb[64].mxu1  ;;  %v758_v63 = vld [vmem:[#allocation2 + $0x258] sm:$0xff] }
 0x3ad   : > { %v2029_v7 = vadd.f32 %v1774_v5, %v747_v1  ;;  %v3567_v8 = vadd.f32 %v3312_v6, %v2285_v2  ;;  %v1776_v9 = vpop.f32.mrb[65].mxu0  ;;  %v3314_v10 = vpop.f32.mrb[65].mxu1  ;;  %v2296_v0 = vld [vmem:[#allocation3 + $0x258] sm:$0xff] }
 0x3ae   : > { %v2030_v11 = vadd.f32 %v1776_v9, %v748_v3  ;;  %v3568_v12 = vadd.f32 %v3314_v10, %v2286_v4  ;;  %v759_v9 = vld [vmem:[#allocation2 + $0x260] sm:$0xff] }
 0x3af   : > { %2157 = vst [vmem:[#allocation2 + $0x200] sm:$0xff] %v2029_v7  ;;  %3695 = vst [vmem:[#allocation3 + $0x200] sm:$0xff] %v3567_v8  ;;  %v2297_v10 = vld [vmem:[#allocation3 + $0x260] sm:$0xff] }
 0x3b0   : > { %2158 = vst [vmem:[#allocation2 + $0x208] sm:$0xff] %v2030_v11  ;;  %3696 = vst [vmem:[#allocation3 + $0x208] sm:$0xff] %v3568_v12  ;;  %v1780_v17 = vpop.f32.mrb[66].mxu0  ;;  %v3318_v18 = vpop.f32.mrb[66].mxu1  ;;  %v760_v11 = vld [vmem:[#allocation2 + $0x268] sm:$0xff] }
 0x3b1   : > { %v2031_v19 = vadd.f32 %v1780_v17, %v749_v13  ;;  %v3569_v20 = vadd.f32 %v3318_v18, %v2287_v14  ;;  %v1782_v21 = vpop.f32.mrb[67].mxu0  ;;  %v3320_v22 = vpop.f32.mrb[67].mxu1  ;;  %v2298_v12 = vld [vmem:[#allocation3 + $0x268] sm:$0xff] }
 0x3b2   : > { %v2032_v23 = vadd.f32 %v1782_v21, %v750_v15  ;;  %v3570_v24 = vadd.f32 %v3320_v22, %v2288_v16  ;;  %v761_v21 = vld [vmem:[#allocation2 + $0x270] sm:$0xff] }
 0x3b3   : > { %2159 = vst [vmem:[#allocation2 + $0x210] sm:$0xff] %v2031_v19  ;;  %3697 = vst [vmem:[#allocation3 + $0x210] sm:$0xff] %v3569_v20  ;;  %v2299_v22 = vld [vmem:[#allocation3 + $0x270] sm:$0xff] }
 0x3b4   : > { %2160 = vst [vmem:[#allocation2 + $0x218] sm:$0xff] %v2032_v23  ;;  %3698 = vst [vmem:[#allocation3 + $0x218] sm:$0xff] %v3570_v24  ;;  %v1786_v29 = vpop.f32.mrb[68].mxu0  ;;  %v3324_v30 = vpop.f32.mrb[68].mxu1  ;;  %v762_v23 = vld [vmem:[#allocation2 + $0x278] sm:$0xff] }
 0x3b5   : > { %v2033_v31 = vadd.f32 %v1786_v29, %v751_v25  ;;  %v3571_v32 = vadd.f32 %v3324_v30, %v2289_v26  ;;  %v1788_v33 = vpop.f32.mrb[69].mxu0  ;;  %v3326_v34 = vpop.f32.mrb[69].mxu1  ;;  %v2300_v24 = vld [vmem:[#allocation3 + $0x278] sm:$0xff] }
 0x3b6   : > { %v2034_v35 = vadd.f32 %v1788_v33, %v752_v27  ;;  %v3572_v36 = vadd.f32 %v3326_v34, %v2290_v28  ;;  %v763_v33 = vld [vmem:[#allocation2 + $0x280] sm:$0xff] }
 0x3b7   : > { %2161 = vst [vmem:[#allocation2 + $0x220] sm:$0xff] %v2033_v31  ;;  %3699 = vst [vmem:[#allocation3 + $0x220] sm:$0xff] %v3571_v32  ;;  %v2301_v34 = vld [vmem:[#allocation3 + $0x280] sm:$0xff] }
 0x3b8   : > { %2162 = vst [vmem:[#allocation2 + $0x228] sm:$0xff] %v2034_v35  ;;  %3700 = vst [vmem:[#allocation3 + $0x228] sm:$0xff] %v3572_v36  ;;  %v1792_v41 = vpop.f32.mrb[70].mxu0  ;;  %v3330_v42 = vpop.f32.mrb[70].mxu1  ;;  %v764_v35 = vld [vmem:[#allocation2 + $0x288] sm:$0xff] }
 0x3b9   : > { %v2035_v43 = vadd.f32 %v1792_v41, %v753_v37  ;;  %v3573_v44 = vadd.f32 %v3330_v42, %v2291_v38  ;;  %v1794_v45 = vpop.f32.mrb[71].mxu0  ;;  %v3332_v46 = vpop.f32.mrb[71].mxu1  ;;  %v2302_v36 = vld [vmem:[#allocation3 + $0x288] sm:$0xff] }
 0x3ba   : > { %v2036_v47 = vadd.f32 %v1794_v45, %v754_v39  ;;  %v3574_v48 = vadd.f32 %v3332_v46, %v2292_v40  ;;  %v765_v45 = vld [vmem:[#allocation2 + $0x290] sm:$0xff] }
 0x3bb   : > { %2163 = vst [vmem:[#allocation2 + $0x230] sm:$0xff] %v2035_v43  ;;  %3701 = vst [vmem:[#allocation3 + $0x230] sm:$0xff] %v3573_v44  ;;  %v2303_v46 = vld [vmem:[#allocation3 + $0x290] sm:$0xff] }
 0x3bc   : > { %2164 = vst [vmem:[#allocation2 + $0x238] sm:$0xff] %v2036_v47  ;;  %3702 = vst [vmem:[#allocation3 + $0x238] sm:$0xff] %v3574_v48  ;;  %v1798_v53 = vpop.f32.mrb[72].mxu0  ;;  %v3336_v54 = vpop.f32.mrb[72].mxu1  ;;  %v766_v47 = vld [vmem:[#allocation2 + $0x298] sm:$0xff] }
 0x3bd   : > { %v2037_v55 = vadd.f32 %v1798_v53, %v755_v49  ;;  %v3575_v56 = vadd.f32 %v3336_v54, %v2293_v50  ;;  %v1800_v57 = vpop.f32.mrb[73].mxu0  ;;  %v3338_v58 = vpop.f32.mrb[73].mxu1  ;;  %v2304_v48 = vld [vmem:[#allocation3 + $0x298] sm:$0xff] }
 0x3be   : > { %v2038_v59 = vadd.f32 %v1800_v57, %v756_v51  ;;  %v3576_v60 = vadd.f32 %v3338_v58, %v2294_v52  ;;  %v767_v57 = vld [vmem:[#allocation2 + $0x2a0] sm:$0xff] }
 0x3bf   : > { %2165 = vst [vmem:[#allocation2 + $0x240] sm:$0xff] %v2037_v55  ;;  %3703 = vst [vmem:[#allocation3 + $0x240] sm:$0xff] %v3575_v56  ;;  %v2305_v58 = vld [vmem:[#allocation3 + $0x2a0] sm:$0xff] }
 0x3c0   : > { %2166 = vst [vmem:[#allocation2 + $0x248] sm:$0xff] %v2038_v59  ;;  %3704 = vst [vmem:[#allocation3 + $0x248] sm:$0xff] %v3576_v60  ;;  %v1804_v1 = vpop.f32.mrb[74].mxu0  ;;  %v3342_v2 = vpop.f32.mrb[74].mxu1  ;;  %v768_v59 = vld [vmem:[#allocation2 + $0x2a8] sm:$0xff] }
 0x3c1   : > { %v2039_v3 = vadd.f32 %v1804_v1, %v757_v61  ;;  %v3577_v4 = vadd.f32 %v3342_v2, %v2295_v62  ;;  %v1806_v5 = vpop.f32.mrb[75].mxu0  ;;  %v3344_v6 = vpop.f32.mrb[75].mxu1  ;;  %v2306_v60 = vld [vmem:[#allocation3 + $0x2a8] sm:$0xff] }
 0x3c2   : > { %v2040_v7 = vadd.f32 %v1806_v5, %v758_v63  ;;  %v3578_v8 = vadd.f32 %v3344_v6, %v2296_v0  ;;  %v769_v5 = vld [vmem:[#allocation2 + $0x2b0] sm:$0xff] }
 0x3c3   : > { %2167 = vst [vmem:[#allocation2 + $0x250] sm:$0xff] %v2039_v3  ;;  %3705 = vst [vmem:[#allocation3 + $0x250] sm:$0xff] %v3577_v4  ;;  %v2307_v6 = vld [vmem:[#allocation3 + $0x2b0] sm:$0xff] }
 0x3c4   : > { %2168 = vst [vmem:[#allocation2 + $0x258] sm:$0xff] %v2040_v7  ;;  %3706 = vst [vmem:[#allocation3 + $0x258] sm:$0xff] %v3578_v8  ;;  %v1810_v13 = vpop.f32.mrb[76].mxu0  ;;  %v3348_v14 = vpop.f32.mrb[76].mxu1  ;;  %v770_v7 = vld [vmem:[#allocation2 + $0x2b8] sm:$0xff] }
 0x3c5   : > { %v2041_v15 = vadd.f32 %v1810_v13, %v759_v9  ;;  %v3579_v16 = vadd.f32 %v3348_v14, %v2297_v10  ;;  %v1812_v17 = vpop.f32.mrb[77].mxu0  ;;  %v3350_v18 = vpop.f32.mrb[77].mxu1  ;;  %v2308_v8 = vld [vmem:[#allocation3 + $0x2b8] sm:$0xff] }
 0x3c6   : > { %v2042_v19 = vadd.f32 %v1812_v17, %v760_v11  ;;  %v3580_v20 = vadd.f32 %v3350_v18, %v2298_v12  ;;  %v771_v17 = vld [vmem:[#allocation2 + $0x2c0] sm:$0xff] }
 0x3c7   : > { %2169 = vst [vmem:[#allocation2 + $0x260] sm:$0xff] %v2041_v15  ;;  %3707 = vst [vmem:[#allocation3 + $0x260] sm:$0xff] %v3579_v16  ;;  %v2309_v18 = vld [vmem:[#allocation3 + $0x2c0] sm:$0xff] }
 0x3c8   : > { %2170 = vst [vmem:[#allocation2 + $0x268] sm:$0xff] %v2042_v19  ;;  %3708 = vst [vmem:[#allocation3 + $0x268] sm:$0xff] %v3580_v20  ;;  %v1816_v25 = vpop.f32.mrb[78].mxu0  ;;  %v3354_v26 = vpop.f32.mrb[78].mxu1  ;;  %v772_v19 = vld [vmem:[#allocation2 + $0x2c8] sm:$0xff] }
 0x3c9   : > { %v2043_v27 = vadd.f32 %v1816_v25, %v761_v21  ;;  %v3581_v28 = vadd.f32 %v3354_v26, %v2299_v22  ;;  %v1818_v29 = vpop.f32.mrb[79].mxu0  ;;  %v3356_v30 = vpop.f32.mrb[79].mxu1  ;;  %v2310_v20 = vld [vmem:[#allocation3 + $0x2c8] sm:$0xff] }
 0x3ca   : > { %v2044_v31 = vadd.f32 %v1818_v29, %v762_v23  ;;  %v3582_v32 = vadd.f32 %v3356_v30, %v2300_v24  ;;  %v773_v29 = vld [vmem:[#allocation2 + $0x2d0] sm:$0xff] }
 0x3cb   : > { %2171 = vst [vmem:[#allocation2 + $0x270] sm:$0xff] %v2043_v27  ;;  %3709 = vst [vmem:[#allocation3 + $0x270] sm:$0xff] %v3581_v28  ;;  %v2311_v30 = vld [vmem:[#allocation3 + $0x2d0] sm:$0xff] }
 0x3cc   : > { %2172 = vst [vmem:[#allocation2 + $0x278] sm:$0xff] %v2044_v31  ;;  %3710 = vst [vmem:[#allocation3 + $0x278] sm:$0xff] %v3582_v32  ;;  %v1822_v37 = vpop.f32.mrb[80].mxu0  ;;  %v3360_v38 = vpop.f32.mrb[80].mxu1  ;;  %v774_v31 = vld [vmem:[#allocation2 + $0x2d8] sm:$0xff] }
 0x3cd   : > { %v2045_v39 = vadd.f32 %v1822_v37, %v763_v33  ;;  %v3583_v40 = vadd.f32 %v3360_v38, %v2301_v34  ;;  %v1824_v41 = vpop.f32.mrb[81].mxu0  ;;  %v3362_v42 = vpop.f32.mrb[81].mxu1  ;;  %v2312_v32 = vld [vmem:[#allocation3 + $0x2d8] sm:$0xff] }
 0x3ce   : > { %v2046_v43 = vadd.f32 %v1824_v41, %v764_v35  ;;  %v3584_v44 = vadd.f32 %v3362_v42, %v2302_v36  ;;  %v775_v41 = vld [vmem:[#allocation2 + $0x2e0] sm:$0xff] }
 0x3cf   : > { %2173 = vst [vmem:[#allocation2 + $0x280] sm:$0xff] %v2045_v39  ;;  %3711 = vst [vmem:[#allocation3 + $0x280] sm:$0xff] %v3583_v40  ;;  %v2313_v42 = vld [vmem:[#allocation3 + $0x2e0] sm:$0xff] }
 0x3d0   : > { %2174 = vst [vmem:[#allocation2 + $0x288] sm:$0xff] %v2046_v43  ;;  %3712 = vst [vmem:[#allocation3 + $0x288] sm:$0xff] %v3584_v44  ;;  %v1828_v49 = vpop.f32.mrb[82].mxu0  ;;  %v3366_v50 = vpop.f32.mrb[82].mxu1  ;;  %v776_v43 = vld [vmem:[#allocation2 + $0x2e8] sm:$0xff] }
 0x3d1   : > { %v2047_v51 = vadd.f32 %v1828_v49, %v765_v45  ;;  %v3585_v52 = vadd.f32 %v3366_v50, %v2303_v46  ;;  %v1830_v53 = vpop.f32.mrb[83].mxu0  ;;  %v3368_v54 = vpop.f32.mrb[83].mxu1  ;;  %v2314_v44 = vld [vmem:[#allocation3 + $0x2e8] sm:$0xff] }
 0x3d2   : > { %v2048_v55 = vadd.f32 %v1830_v53, %v766_v47  ;;  %v3586_v56 = vadd.f32 %v3368_v54, %v2304_v48  ;;  %v777_v53 = vld [vmem:[#allocation2 + $0x2f0] sm:$0xff] }
 0x3d3   : > { %2175 = vst [vmem:[#allocation2 + $0x290] sm:$0xff] %v2047_v51  ;;  %3713 = vst [vmem:[#allocation3 + $0x290] sm:$0xff] %v3585_v52  ;;  %v2315_v54 = vld [vmem:[#allocation3 + $0x2f0] sm:$0xff] }
 0x3d4   : > { %2176 = vst [vmem:[#allocation2 + $0x298] sm:$0xff] %v2048_v55  ;;  %3714 = vst [vmem:[#allocation3 + $0x298] sm:$0xff] %v3586_v56  ;;  %v1834_v61 = vpop.f32.mrb[84].mxu0  ;;  %v3372_v62 = vpop.f32.mrb[84].mxu1  ;;  %v778_v55 = vld [vmem:[#allocation2 + $0x2f8] sm:$0xff] }
 0x3d5   : > { %v2049_v63 = vadd.f32 %v1834_v61, %v767_v57  ;;  %v3587_v0 = vadd.f32 %v3372_v62, %v2305_v58  ;;  %v1836_v1 = vpop.f32.mrb[85].mxu0  ;;  %v3374_v2 = vpop.f32.mrb[85].mxu1  ;;  %v2316_v56 = vld [vmem:[#allocation3 + $0x2f8] sm:$0xff] }
 0x3d6   : > { %v2050_v3 = vadd.f32 %v1836_v1, %v768_v59  ;;  %v3588_v4 = vadd.f32 %v3374_v2, %v2306_v60  ;;  %v779_v1 = vld [vmem:[#allocation2 + $0x300] sm:$0xff] }
 0x3d7   : > { %2177 = vst [vmem:[#allocation2 + $0x2a0] sm:$0xff] %v2049_v63  ;;  %3715 = vst [vmem:[#allocation3 + $0x2a0] sm:$0xff] %v3587_v0  ;;  %v2317_v2 = vld [vmem:[#allocation3 + $0x300] sm:$0xff] }
 0x3d8   : > { %2178 = vst [vmem:[#allocation2 + $0x2a8] sm:$0xff] %v2050_v3  ;;  %3716 = vst [vmem:[#allocation3 + $0x2a8] sm:$0xff] %v3588_v4  ;;  %v1840_v9 = vpop.f32.mrb[86].mxu0  ;;  %v3378_v10 = vpop.f32.mrb[86].mxu1  ;;  %v780_v3 = vld [vmem:[#allocation2 + $0x308] sm:$0xff] }
 0x3d9   : > { %v2051_v11 = vadd.f32 %v1840_v9, %v769_v5  ;;  %v3589_v12 = vadd.f32 %v3378_v10, %v2307_v6  ;;  %v1842_v13 = vpop.f32.mrb[87].mxu0  ;;  %v3380_v14 = vpop.f32.mrb[87].mxu1  ;;  %v2318_v4 = vld [vmem:[#allocation3 + $0x308] sm:$0xff] }
 0x3da   : > { %v2052_v15 = vadd.f32 %v1842_v13, %v770_v7  ;;  %v3590_v16 = vadd.f32 %v3380_v14, %v2308_v8  ;;  %v781_v13 = vld [vmem:[#allocation2 + $0x310] sm:$0xff] }
 0x3db   : > { %2179 = vst [vmem:[#allocation2 + $0x2b0] sm:$0xff] %v2051_v11  ;;  %3717 = vst [vmem:[#allocation3 + $0x2b0] sm:$0xff] %v3589_v12  ;;  %v2319_v14 = vld [vmem:[#allocation3 + $0x310] sm:$0xff] }
 0x3dc   : > { %2180 = vst [vmem:[#allocation2 + $0x2b8] sm:$0xff] %v2052_v15  ;;  %3718 = vst [vmem:[#allocation3 + $0x2b8] sm:$0xff] %v3590_v16  ;;  %v1846_v21 = vpop.f32.mrb[88].mxu0  ;;  %v3384_v22 = vpop.f32.mrb[88].mxu1  ;;  %v782_v15 = vld [vmem:[#allocation2 + $0x318] sm:$0xff] }
 0x3dd   : > { %v2053_v23 = vadd.f32 %v1846_v21, %v771_v17  ;;  %v3591_v24 = vadd.f32 %v3384_v22, %v2309_v18  ;;  %v1848_v25 = vpop.f32.mrb[89].mxu0  ;;  %v3386_v26 = vpop.f32.mrb[89].mxu1  ;;  %v2320_v16 = vld [vmem:[#allocation3 + $0x318] sm:$0xff] }
 0x3de   : > { %v2054_v27 = vadd.f32 %v1848_v25, %v772_v19  ;;  %v3592_v28 = vadd.f32 %v3386_v26, %v2310_v20  ;;  %v783_v25 = vld [vmem:[#allocation2 + $0x320] sm:$0xff] }
 0x3df   : > { %2181 = vst [vmem:[#allocation2 + $0x2c0] sm:$0xff] %v2053_v23  ;;  %3719 = vst [vmem:[#allocation3 + $0x2c0] sm:$0xff] %v3591_v24  ;;  %v2321_v26 = vld [vmem:[#allocation3 + $0x320] sm:$0xff] }
 0x3e0   : > { %2182 = vst [vmem:[#allocation2 + $0x2c8] sm:$0xff] %v2054_v27  ;;  %3720 = vst [vmem:[#allocation3 + $0x2c8] sm:$0xff] %v3592_v28  ;;  %v1852_v33 = vpop.f32.mrb[90].mxu0  ;;  %v3390_v34 = vpop.f32.mrb[90].mxu1  ;;  %v784_v27 = vld [vmem:[#allocation2 + $0x328] sm:$0xff] }
 0x3e1   : > { %v2055_v35 = vadd.f32 %v1852_v33, %v773_v29  ;;  %v3593_v36 = vadd.f32 %v3390_v34, %v2311_v30  ;;  %v1854_v37 = vpop.f32.mrb[91].mxu0  ;;  %v3392_v38 = vpop.f32.mrb[91].mxu1  ;;  %v2322_v28 = vld [vmem:[#allocation3 + $0x328] sm:$0xff] }
 0x3e2   : > { %v2056_v39 = vadd.f32 %v1854_v37, %v774_v31  ;;  %v3594_v40 = vadd.f32 %v3392_v38, %v2312_v32  ;;  %v785_v37 = vld [vmem:[#allocation2 + $0x330] sm:$0xff] }
 0x3e3   : > { %2183 = vst [vmem:[#allocation2 + $0x2d0] sm:$0xff] %v2055_v35  ;;  %3721 = vst [vmem:[#allocation3 + $0x2d0] sm:$0xff] %v3593_v36  ;;  %v2323_v38 = vld [vmem:[#allocation3 + $0x330] sm:$0xff] }
 0x3e4   : > { %2184 = vst [vmem:[#allocation2 + $0x2d8] sm:$0xff] %v2056_v39  ;;  %3722 = vst [vmem:[#allocation3 + $0x2d8] sm:$0xff] %v3594_v40  ;;  %v1858_v45 = vpop.f32.mrb[92].mxu0  ;;  %v3396_v46 = vpop.f32.mrb[92].mxu1  ;;  %v786_v39 = vld [vmem:[#allocation2 + $0x338] sm:$0xff] }
 0x3e5   : > { %v2057_v47 = vadd.f32 %v1858_v45, %v775_v41  ;;  %v3595_v48 = vadd.f32 %v3396_v46, %v2313_v42  ;;  %v1860_v49 = vpop.f32.mrb[93].mxu0  ;;  %v3398_v50 = vpop.f32.mrb[93].mxu1  ;;  %v2324_v40 = vld [vmem:[#allocation3 + $0x338] sm:$0xff] }
 0x3e6   : > { %v2058_v51 = vadd.f32 %v1860_v49, %v776_v43  ;;  %v3596_v52 = vadd.f32 %v3398_v50, %v2314_v44  ;;  %v787_v49 = vld [vmem:[#allocation2 + $0x340] sm:$0xff] }
 0x3e7   : > { %2185 = vst [vmem:[#allocation2 + $0x2e0] sm:$0xff] %v2057_v47  ;;  %3723 = vst [vmem:[#allocation3 + $0x2e0] sm:$0xff] %v3595_v48  ;;  %v2325_v50 = vld [vmem:[#allocation3 + $0x340] sm:$0xff] }
 0x3e8   : > { %2186 = vst [vmem:[#allocation2 + $0x2e8] sm:$0xff] %v2058_v51  ;;  %3724 = vst [vmem:[#allocation3 + $0x2e8] sm:$0xff] %v3596_v52  ;;  %v1864_v57 = vpop.f32.mrb[94].mxu0  ;;  %v3402_v58 = vpop.f32.mrb[94].mxu1  ;;  %v788_v51 = vld [vmem:[#allocation2 + $0x348] sm:$0xff] }
 0x3e9   : > { %v2059_v59 = vadd.f32 %v1864_v57, %v777_v53  ;;  %v3597_v60 = vadd.f32 %v3402_v58, %v2315_v54  ;;  %v1866_v61 = vpop.f32.mrb[95].mxu0  ;;  %v3404_v62 = vpop.f32.mrb[95].mxu1  ;;  %v2326_v52 = vld [vmem:[#allocation3 + $0x348] sm:$0xff] }
 0x3ea   : > { %v2060_v63 = vadd.f32 %v1866_v61, %v778_v55  ;;  %v3598_v0 = vadd.f32 %v3404_v62, %v2316_v56  ;;  %v789_v61 = vld [vmem:[#allocation2 + $0x350] sm:$0xff] }
 0x3eb   : > { %2187 = vst [vmem:[#allocation2 + $0x2f0] sm:$0xff] %v2059_v59  ;;  %3725 = vst [vmem:[#allocation3 + $0x2f0] sm:$0xff] %v3597_v60  ;;  %v2327_v62 = vld [vmem:[#allocation3 + $0x350] sm:$0xff] }
 0x3ec   : > { %2188 = vst [vmem:[#allocation2 + $0x2f8] sm:$0xff] %v2060_v63  ;;  %3726 = vst [vmem:[#allocation3 + $0x2f8] sm:$0xff] %v3598_v0  ;;  %v1870_v5 = vpop.f32.mrb[96].mxu0  ;;  %v3408_v6 = vpop.f32.mrb[96].mxu1  ;;  %v790_v63 = vld [vmem:[#allocation2 + $0x358] sm:$0xff] }
 0x3ed   : > { %v2061_v7 = vadd.f32 %v1870_v5, %v779_v1  ;;  %v3599_v8 = vadd.f32 %v3408_v6, %v2317_v2  ;;  %v1872_v9 = vpop.f32.mrb[97].mxu0  ;;  %v3410_v10 = vpop.f32.mrb[97].mxu1  ;;  %v2328_v0 = vld [vmem:[#allocation3 + $0x358] sm:$0xff] }
 0x3ee   : > { %v2062_v11 = vadd.f32 %v1872_v9, %v780_v3  ;;  %v3600_v12 = vadd.f32 %v3410_v10, %v2318_v4  ;;  %v791_v9 = vld [vmem:[#allocation2 + $0x360] sm:$0xff] }
 0x3ef   : > { %2189 = vst [vmem:[#allocation2 + $0x300] sm:$0xff] %v2061_v7  ;;  %3727 = vst [vmem:[#allocation3 + $0x300] sm:$0xff] %v3599_v8  ;;  %v2329_v10 = vld [vmem:[#allocation3 + $0x360] sm:$0xff] }
 0x3f0   : > { %2190 = vst [vmem:[#allocation2 + $0x308] sm:$0xff] %v2062_v11  ;;  %3728 = vst [vmem:[#allocation3 + $0x308] sm:$0xff] %v3600_v12  ;;  %v1876_v17 = vpop.f32.mrb[98].mxu0  ;;  %v3414_v18 = vpop.f32.mrb[98].mxu1  ;;  %v792_v11 = vld [vmem:[#allocation2 + $0x368] sm:$0xff] }
 0x3f1   : > { %v2063_v19 = vadd.f32 %v1876_v17, %v781_v13  ;;  %v3601_v20 = vadd.f32 %v3414_v18, %v2319_v14  ;;  %v1878_v21 = vpop.f32.mrb[99].mxu0  ;;  %v3416_v22 = vpop.f32.mrb[99].mxu1  ;;  %v2330_v12 = vld [vmem:[#allocation3 + $0x368] sm:$0xff] }
 0x3f2   : > { %v2064_v23 = vadd.f32 %v1878_v21, %v782_v15  ;;  %v3602_v24 = vadd.f32 %v3416_v22, %v2320_v16  ;;  %v793_v21 = vld [vmem:[#allocation2 + $0x370] sm:$0xff] }
 0x3f3   : > { %2191 = vst [vmem:[#allocation2 + $0x310] sm:$0xff] %v2063_v19  ;;  %3729 = vst [vmem:[#allocation3 + $0x310] sm:$0xff] %v3601_v20  ;;  %v2331_v22 = vld [vmem:[#allocation3 + $0x370] sm:$0xff] }
 0x3f4   : > { %2192 = vst [vmem:[#allocation2 + $0x318] sm:$0xff] %v2064_v23  ;;  %3730 = vst [vmem:[#allocation3 + $0x318] sm:$0xff] %v3602_v24  ;;  %v1882_v29 = vpop.f32.mrb[100].mxu0  ;;  %v3420_v30 = vpop.f32.mrb[100].mxu1  ;;  %v794_v23 = vld [vmem:[#allocation2 + $0x378] sm:$0xff] }
 0x3f5   : > { %v2065_v31 = vadd.f32 %v1882_v29, %v783_v25  ;;  %v3603_v32 = vadd.f32 %v3420_v30, %v2321_v26  ;;  %v1884_v33 = vpop.f32.mrb[101].mxu0  ;;  %v3422_v34 = vpop.f32.mrb[101].mxu1  ;;  %v2332_v24 = vld [vmem:[#allocation3 + $0x378] sm:$0xff] }
 0x3f6   : > { %v2066_v35 = vadd.f32 %v1884_v33, %v784_v27  ;;  %v3604_v36 = vadd.f32 %v3422_v34, %v2322_v28  ;;  %v795_v33 = vld [vmem:[#allocation2 + $0x380] sm:$0xff] }
 0x3f7   : > { %2193 = vst [vmem:[#allocation2 + $0x320] sm:$0xff] %v2065_v31  ;;  %3731 = vst [vmem:[#allocation3 + $0x320] sm:$0xff] %v3603_v32  ;;  %v2333_v34 = vld [vmem:[#allocation3 + $0x380] sm:$0xff] }
 0x3f8   : > { %2194 = vst [vmem:[#allocation2 + $0x328] sm:$0xff] %v2066_v35  ;;  %3732 = vst [vmem:[#allocation3 + $0x328] sm:$0xff] %v3604_v36  ;;  %v1888_v41 = vpop.f32.mrb[102].mxu0  ;;  %v3426_v42 = vpop.f32.mrb[102].mxu1  ;;  %v796_v35 = vld [vmem:[#allocation2 + $0x388] sm:$0xff] }
 0x3f9   : > { %v2067_v43 = vadd.f32 %v1888_v41, %v785_v37  ;;  %v3605_v44 = vadd.f32 %v3426_v42, %v2323_v38  ;;  %v1890_v45 = vpop.f32.mrb[103].mxu0  ;;  %v3428_v46 = vpop.f32.mrb[103].mxu1  ;;  %v2334_v36 = vld [vmem:[#allocation3 + $0x388] sm:$0xff] }
 0x3fa   : > { %v2068_v47 = vadd.f32 %v1890_v45, %v786_v39  ;;  %v3606_v48 = vadd.f32 %v3428_v46, %v2324_v40  ;;  %v797_v45 = vld [vmem:[#allocation2 + $0x390] sm:$0xff] }
 0x3fb   : > { %2195 = vst [vmem:[#allocation2 + $0x330] sm:$0xff] %v2067_v43  ;;  %3733 = vst [vmem:[#allocation3 + $0x330] sm:$0xff] %v3605_v44  ;;  %v2335_v46 = vld [vmem:[#allocation3 + $0x390] sm:$0xff] }
 0x3fc   : > { %2196 = vst [vmem:[#allocation2 + $0x338] sm:$0xff] %v2068_v47  ;;  %3734 = vst [vmem:[#allocation3 + $0x338] sm:$0xff] %v3606_v48  ;;  %v1894_v53 = vpop.f32.mrb[104].mxu0  ;;  %v3432_v54 = vpop.f32.mrb[104].mxu1  ;;  %v798_v47 = vld [vmem:[#allocation2 + $0x398] sm:$0xff] }
 0x3fd   : > { %v2069_v55 = vadd.f32 %v1894_v53, %v787_v49  ;;  %v3607_v56 = vadd.f32 %v3432_v54, %v2325_v50  ;;  %v1896_v57 = vpop.f32.mrb[105].mxu0  ;;  %v3434_v58 = vpop.f32.mrb[105].mxu1  ;;  %v2336_v48 = vld [vmem:[#allocation3 + $0x398] sm:$0xff] }
 0x3fe   : > { %v2070_v59 = vadd.f32 %v1896_v57, %v788_v51  ;;  %v3608_v60 = vadd.f32 %v3434_v58, %v2326_v52  ;;  %v799_v57 = vld [vmem:[#allocation2 + $0x3a0] sm:$0xff] }
 0x3ff   : > { %2197 = vst [vmem:[#allocation2 + $0x340] sm:$0xff] %v2069_v55  ;;  %3735 = vst [vmem:[#allocation3 + $0x340] sm:$0xff] %v3607_v56  ;;  %v2337_v58 = vld [vmem:[#allocation3 + $0x3a0] sm:$0xff] }
 0x400   : > { %2198 = vst [vmem:[#allocation2 + $0x348] sm:$0xff] %v2070_v59  ;;  %3736 = vst [vmem:[#allocation3 + $0x348] sm:$0xff] %v3608_v60  ;;  %v1900_v1 = vpop.f32.mrb[106].mxu0  ;;  %v3438_v2 = vpop.f32.mrb[106].mxu1  ;;  %v800_v59 = vld [vmem:[#allocation2 + $0x3a8] sm:$0xff] }
 0x401   : > { %v2071_v3 = vadd.f32 %v1900_v1, %v789_v61  ;;  %v3609_v4 = vadd.f32 %v3438_v2, %v2327_v62  ;;  %v1902_v5 = vpop.f32.mrb[107].mxu0  ;;  %v3440_v6 = vpop.f32.mrb[107].mxu1  ;;  %v2338_v60 = vld [vmem:[#allocation3 + $0x3a8] sm:$0xff] }
 0x402   : > { %v2072_v7 = vadd.f32 %v1902_v5, %v790_v63  ;;  %v3610_v8 = vadd.f32 %v3440_v6, %v2328_v0  ;;  %v801_v5 = vld [vmem:[#allocation2 + $0x3b0] sm:$0xff] }
 0x403   : > { %2199 = vst [vmem:[#allocation2 + $0x350] sm:$0xff] %v2071_v3  ;;  %3737 = vst [vmem:[#allocation3 + $0x350] sm:$0xff] %v3609_v4  ;;  %v2339_v6 = vld [vmem:[#allocation3 + $0x3b0] sm:$0xff] }
 0x404   : > { %2200 = vst [vmem:[#allocation2 + $0x358] sm:$0xff] %v2072_v7  ;;  %3738 = vst [vmem:[#allocation3 + $0x358] sm:$0xff] %v3610_v8  ;;  %v1906_v13 = vpop.f32.mrb[108].mxu0  ;;  %v3444_v14 = vpop.f32.mrb[108].mxu1  ;;  %v802_v7 = vld [vmem:[#allocation2 + $0x3b8] sm:$0xff] }
 0x405   : > { %v2073_v15 = vadd.f32 %v1906_v13, %v791_v9  ;;  %v3611_v16 = vadd.f32 %v3444_v14, %v2329_v10  ;;  %v1908_v17 = vpop.f32.mrb[109].mxu0  ;;  %v3446_v18 = vpop.f32.mrb[109].mxu1  ;;  %v2340_v8 = vld [vmem:[#allocation3 + $0x3b8] sm:$0xff] }
 0x406   : > { %v2074_v19 = vadd.f32 %v1908_v17, %v792_v11  ;;  %v3612_v20 = vadd.f32 %v3446_v18, %v2330_v12  ;;  %v803_v17 = vld [vmem:[#allocation2 + $0x3c0] sm:$0xff] }
 0x407   : > { %2201 = vst [vmem:[#allocation2 + $0x360] sm:$0xff] %v2073_v15  ;;  %3739 = vst [vmem:[#allocation3 + $0x360] sm:$0xff] %v3611_v16  ;;  %v2341_v18 = vld [vmem:[#allocation3 + $0x3c0] sm:$0xff] }
 0x408   : > { %2202 = vst [vmem:[#allocation2 + $0x368] sm:$0xff] %v2074_v19  ;;  %3740 = vst [vmem:[#allocation3 + $0x368] sm:$0xff] %v3612_v20  ;;  %v1912_v25 = vpop.f32.mrb[110].mxu0  ;;  %v3450_v26 = vpop.f32.mrb[110].mxu1  ;;  %v804_v19 = vld [vmem:[#allocation2 + $0x3c8] sm:$0xff] }
 0x409   : > { %v2075_v27 = vadd.f32 %v1912_v25, %v793_v21  ;;  %v3613_v28 = vadd.f32 %v3450_v26, %v2331_v22  ;;  %v1914_v29 = vpop.f32.mrb[111].mxu0  ;;  %v3452_v30 = vpop.f32.mrb[111].mxu1  ;;  %v2342_v20 = vld [vmem:[#allocation3 + $0x3c8] sm:$0xff] }
 0x40a   : > { %v2076_v31 = vadd.f32 %v1914_v29, %v794_v23  ;;  %v3614_v32 = vadd.f32 %v3452_v30, %v2332_v24  ;;  %v805_v29 = vld [vmem:[#allocation2 + $0x3d0] sm:$0xff] }
 0x40b   : > { %2203 = vst [vmem:[#allocation2 + $0x370] sm:$0xff] %v2075_v27  ;;  %3741 = vst [vmem:[#allocation3 + $0x370] sm:$0xff] %v3613_v28  ;;  %v2343_v30 = vld [vmem:[#allocation3 + $0x3d0] sm:$0xff] }
 0x40c   : > { %2204 = vst [vmem:[#allocation2 + $0x378] sm:$0xff] %v2076_v31  ;;  %3742 = vst [vmem:[#allocation3 + $0x378] sm:$0xff] %v3614_v32  ;;  %v1918_v37 = vpop.f32.mrb[112].mxu0  ;;  %v3456_v38 = vpop.f32.mrb[112].mxu1  ;;  %v806_v31 = vld [vmem:[#allocation2 + $0x3d8] sm:$0xff] }
 0x40d   : > { %v2077_v39 = vadd.f32 %v1918_v37, %v795_v33  ;;  %v3615_v40 = vadd.f32 %v3456_v38, %v2333_v34  ;;  %v1920_v41 = vpop.f32.mrb[113].mxu0  ;;  %v3458_v42 = vpop.f32.mrb[113].mxu1  ;;  %v2344_v32 = vld [vmem:[#allocation3 + $0x3d8] sm:$0xff] }
 0x40e   : > { %v2078_v43 = vadd.f32 %v1920_v41, %v796_v35  ;;  %v3616_v44 = vadd.f32 %v3458_v42, %v2334_v36  ;;  %v807_v41 = vld [vmem:[#allocation2 + $0x3e0] sm:$0xff] }
 0x40f   : > { %2205 = vst [vmem:[#allocation2 + $0x380] sm:$0xff] %v2077_v39  ;;  %3743 = vst [vmem:[#allocation3 + $0x380] sm:$0xff] %v3615_v40  ;;  %v2345_v42 = vld [vmem:[#allocation3 + $0x3e0] sm:$0xff] }
 0x410   : > { %2206 = vst [vmem:[#allocation2 + $0x388] sm:$0xff] %v2078_v43  ;;  %3744 = vst [vmem:[#allocation3 + $0x388] sm:$0xff] %v3616_v44  ;;  %v1924_v49 = vpop.f32.mrb[114].mxu0  ;;  %v3462_v50 = vpop.f32.mrb[114].mxu1  ;;  %v808_v43 = vld [vmem:[#allocation2 + $0x3e8] sm:$0xff] }
 0x411   : > { %v2079_v51 = vadd.f32 %v1924_v49, %v797_v45  ;;  %v3617_v52 = vadd.f32 %v3462_v50, %v2335_v46  ;;  %v1926_v53 = vpop.f32.mrb[115].mxu0  ;;  %v3464_v54 = vpop.f32.mrb[115].mxu1  ;;  %v2346_v44 = vld [vmem:[#allocation3 + $0x3e8] sm:$0xff] }
 0x412   : > { %v2080_v55 = vadd.f32 %v1926_v53, %v798_v47  ;;  %v3618_v56 = vadd.f32 %v3464_v54, %v2336_v48  ;;  %v809_v53 = vld [vmem:[#allocation2 + $0x3f0] sm:$0xff] }
 0x413   : > { %2207 = vst [vmem:[#allocation2 + $0x390] sm:$0xff] %v2079_v51  ;;  %3745 = vst [vmem:[#allocation3 + $0x390] sm:$0xff] %v3617_v52  ;;  %v2347_v54 = vld [vmem:[#allocation3 + $0x3f0] sm:$0xff] }
 0x414   : > { %2208 = vst [vmem:[#allocation2 + $0x398] sm:$0xff] %v2080_v55  ;;  %3746 = vst [vmem:[#allocation3 + $0x398] sm:$0xff] %v3618_v56  ;;  %v1930_v61 = vpop.f32.mrb[116].mxu0  ;;  %v3468_v62 = vpop.f32.mrb[116].mxu1  ;;  %v810_v55 = vld [vmem:[#allocation2 + $0x3f8] sm:$0xff] }
 0x415   : > { %v2081_v63 = vadd.f32 %v1930_v61, %v799_v57  ;;  %v3619_v0 = vadd.f32 %v3468_v62, %v2337_v58  ;;  %v1932_v1 = vpop.f32.mrb[117].mxu0  ;;  %v3470_v2 = vpop.f32.mrb[117].mxu1  ;;  %v2348_v56 = vld [vmem:[#allocation3 + $0x3f8] sm:$0xff] }
 0x416   : > { %v2082_v3 = vadd.f32 %v1932_v1, %v800_v59  ;;  %v3620_v4 = vadd.f32 %v3470_v2, %v2338_v60  ;;  %v3763_v1 = vld [vmem:[#allocation2] sm:$0xff] (!%p4447_p10)  ;;  %v3764_v2 = vld [vmem:[#allocation2 + $0x8] sm:$0xff] (!%p4447_p10) }
 0x417   : > { %2209 = vst [vmem:[#allocation2 + $0x3a0] sm:$0xff] %v2081_v63  ;;  %3747 = vst [vmem:[#allocation3 + $0x3a0] sm:$0xff] %v3619_v0 }
 0x418   : > { %2210 = vst [vmem:[#allocation2 + $0x3a8] sm:$0xff] %v2082_v3  ;;  %3748 = vst [vmem:[#allocation3 + $0x3a8] sm:$0xff] %v3620_v4  ;;  %v1936_v9 = vpop.f32.mrb[118].mxu0  ;;  %v3474_v10 = vpop.f32.mrb[118].mxu1  ;;  %v3765_v3 = vld [vmem:[#allocation2 + $0x10] sm:$0xff] (!%p4447_p10)  ;;  %v3766_v4 = vld [vmem:[#allocation2 + $0x18] sm:$0xff] (!%p4447_p10) }
 0x419   : > { %v2083_v11 = vadd.f32 %v1936_v9, %v801_v5  ;;  %v3621_v12 = vadd.f32 %v3474_v10, %v2339_v6  ;;  %v1938_v13 = vpop.f32.mrb[119].mxu0  ;;  %v3476_v14 = vpop.f32.mrb[119].mxu1  ;;  %3891 = vst [vmem:[%s5714_s8] sm:$0xff] (!%p4447_p10), %v3763_v1  ;;  %3892 = vst [vmem:[%s5714_s8 + $0x8] sm:$0xff] (!%p4447_p10), %v3764_v2  ;;  %v3767_v5 = vld [vmem:[#allocation2 + $0x20] sm:$0xff] (!%p4447_p10)  ;;  %v3768_v6 = vld [vmem:[#allocation2 + $0x28] sm:$0xff] (!%p4447_p10) }
 0x41a   : > { %v2084_v15 = vadd.f32 %v1938_v13, %v802_v7  ;;  %v3622_v16 = vadd.f32 %v3476_v14, %v2340_v8  ;;  %3893 = vst [vmem:[%s5714_s8 + $0x20] sm:$0xff] (!%p4447_p10), %v3765_v3  ;;  %3894 = vst [vmem:[%s5714_s8 + $0x28] sm:$0xff] (!%p4447_p10), %v3766_v4  ;;  %v3769_v7 = vld [vmem:[#allocation2 + $0x30] sm:$0xff] (!%p4447_p10)  ;;  %v3770_v8 = vld [vmem:[#allocation2 + $0x38] sm:$0xff] (!%p4447_p10) }
 0x41b   : > { %2211 = vst [vmem:[#allocation2 + $0x3b0] sm:$0xff] %v2083_v11  ;;  %3749 = vst [vmem:[#allocation3 + $0x3b0] sm:$0xff] %v3621_v12  ;;  %v3771_v9 = vld [vmem:[#allocation2 + $0x40] sm:$0xff] (!%p4447_p10)  ;;  %v3772_v10 = vld [vmem:[#allocation2 + $0x48] sm:$0xff] (!%p4447_p10) }
 0x41c   : > { %2212 = vst [vmem:[#allocation2 + $0x3b8] sm:$0xff] %v2084_v15  ;;  %3750 = vst [vmem:[#allocation3 + $0x3b8] sm:$0xff] %v3622_v16  ;;  %v1942_v21 = vpop.f32.mrb[120].mxu0  ;;  %v3480_v22 = vpop.f32.mrb[120].mxu1  ;;  %v3773_v11 = vld [vmem:[#allocation2 + $0x50] sm:$0xff] (!%p4447_p10)  ;;  %v3774_v12 = vld [vmem:[#allocation2 + $0x58] sm:$0xff] (!%p4447_p10) }
 0x41d   : > { %v2085_v23 = vadd.f32 %v1942_v21, %v803_v17  ;;  %v3623_v24 = vadd.f32 %v3480_v22, %v2341_v18  ;;  %v1944_v25 = vpop.f32.mrb[121].mxu0  ;;  %v3482_v26 = vpop.f32.mrb[121].mxu1  ;;  %3895 = vst [vmem:[%s5714_s8 + $0x40] sm:$0xff] (!%p4447_p10), %v3767_v5  ;;  %3896 = vst [vmem:[%s5714_s8 + $0x48] sm:$0xff] (!%p4447_p10), %v3768_v6  ;;  %v3775_v13 = vld [vmem:[#allocation2 + $0x60] sm:$0xff] (!%p4447_p10)  ;;  %v3776_v14 = vld [vmem:[#allocation2 + $0x68] sm:$0xff] (!%p4447_p10) }
 0x41e   : > { %v2086_v27 = vadd.f32 %v1944_v25, %v804_v19  ;;  %v3624_v28 = vadd.f32 %v3482_v26, %v2342_v20  ;;  %3897 = vst [vmem:[%s5714_s8 + $0x60] sm:$0xff] (!%p4447_p10), %v3769_v7  ;;  %3898 = vst [vmem:[%s5714_s8 + $0x68] sm:$0xff] (!%p4447_p10), %v3770_v8  ;;  %v3777_v15 = vld [vmem:[#allocation2 + $0x70] sm:$0xff] (!%p4447_p10)  ;;  %v3778_v16 = vld [vmem:[#allocation2 + $0x78] sm:$0xff] (!%p4447_p10) }
 0x41f   : > { %2213 = vst [vmem:[#allocation2 + $0x3c0] sm:$0xff] %v2085_v23  ;;  %3751 = vst [vmem:[#allocation3 + $0x3c0] sm:$0xff] %v3623_v24  ;;  %v3779_v17 = vld [vmem:[#allocation2 + $0x80] sm:$0xff] (!%p4447_p10)  ;;  %v3780_v18 = vld [vmem:[#allocation2 + $0x88] sm:$0xff] (!%p4447_p10) }
 0x420   : > { %2214 = vst [vmem:[#allocation2 + $0x3c8] sm:$0xff] %v2086_v27  ;;  %3752 = vst [vmem:[#allocation3 + $0x3c8] sm:$0xff] %v3624_v28  ;;  %v1948_v33 = vpop.f32.mrb[122].mxu0  ;;  %v3486_v34 = vpop.f32.mrb[122].mxu1  ;;  %v3781_v19 = vld [vmem:[#allocation2 + $0x90] sm:$0xff] (!%p4447_p10)  ;;  %v3782_v20 = vld [vmem:[#allocation2 + $0x98] sm:$0xff] (!%p4447_p10) }
 0x421   : > { %v2087_v35 = vadd.f32 %v1948_v33, %v805_v29  ;;  %v3625_v36 = vadd.f32 %v3486_v34, %v2343_v30  ;;  %v1950_v37 = vpop.f32.mrb[123].mxu0  ;;  %v3488_v38 = vpop.f32.mrb[123].mxu1  ;;  %3899 = vst [vmem:[%s5714_s8 + $0x80] sm:$0xff] (!%p4447_p10), %v3771_v9  ;;  %3900 = vst [vmem:[%s5714_s8 + $0x88] sm:$0xff] (!%p4447_p10), %v3772_v10  ;;  %v3783_v21 = vld [vmem:[#allocation2 + $0xa0] sm:$0xff] (!%p4447_p10)  ;;  %v3784_v22 = vld [vmem:[#allocation2 + $0xa8] sm:$0xff] (!%p4447_p10) }
 0x422   : > { %v2088_v39 = vadd.f32 %v1950_v37, %v806_v31  ;;  %v3626_v40 = vadd.f32 %v3488_v38, %v2344_v32  ;;  %3901 = vst [vmem:[%s5714_s8 + $0xa0] sm:$0xff] (!%p4447_p10), %v3773_v11  ;;  %3902 = vst [vmem:[%s5714_s8 + $0xa8] sm:$0xff] (!%p4447_p10), %v3774_v12  ;;  %v3785_v23 = vld [vmem:[#allocation2 + $0xb0] sm:$0xff] (!%p4447_p10)  ;;  %v3786_v24 = vld [vmem:[#allocation2 + $0xb8] sm:$0xff] (!%p4447_p10) }
 0x423   : > { %2215 = vst [vmem:[#allocation2 + $0x3d0] sm:$0xff] %v2087_v35  ;;  %3753 = vst [vmem:[#allocation3 + $0x3d0] sm:$0xff] %v3625_v36  ;;  %v3787_v25 = vld [vmem:[#allocation2 + $0xc0] sm:$0xff] (!%p4447_p10)  ;;  %v3788_v26 = vld [vmem:[#allocation2 + $0xc8] sm:$0xff] (!%p4447_p10) }
 0x424   : > { %2216 = vst [vmem:[#allocation2 + $0x3d8] sm:$0xff] %v2088_v39  ;;  %3754 = vst [vmem:[#allocation3 + $0x3d8] sm:$0xff] %v3626_v40  ;;  %v1954_v45 = vpop.f32.mrb[124].mxu0  ;;  %v3492_v46 = vpop.f32.mrb[124].mxu1  ;;  %v3789_v27 = vld [vmem:[#allocation2 + $0xd0] sm:$0xff] (!%p4447_p10)  ;;  %v3790_v28 = vld [vmem:[#allocation2 + $0xd8] sm:$0xff] (!%p4447_p10) }
 0x425   : > { %v2089_v47 = vadd.f32 %v1954_v45, %v807_v41  ;;  %v3627_v48 = vadd.f32 %v3492_v46, %v2345_v42  ;;  %v1956_v49 = vpop.f32.mrb[125].mxu0  ;;  %v3494_v50 = vpop.f32.mrb[125].mxu1  ;;  %3903 = vst [vmem:[%s5714_s8 + $0xc0] sm:$0xff] (!%p4447_p10), %v3775_v13  ;;  %3904 = vst [vmem:[%s5714_s8 + $0xc8] sm:$0xff] (!%p4447_p10), %v3776_v14  ;;  %v3791_v29 = vld [vmem:[#allocation2 + $0xe0] sm:$0xff] (!%p4447_p10)  ;;  %v3792_v30 = vld [vmem:[#allocation2 + $0xe8] sm:$0xff] (!%p4447_p10) }
 0x426   : > { %v2090_v51 = vadd.f32 %v1956_v49, %v808_v43  ;;  %v3628_v52 = vadd.f32 %v3494_v50, %v2346_v44  ;;  %3762 = sbr.rel (%p4447_p10) target bundleno = 1187 (0x4a3), region = 52  ;;  %3905 = vst [vmem:[%s5714_s8 + $0xe0] sm:$0xff] (!%p4447_p10), %v3777_v15  ;;  %3906 = vst [vmem:[%s5714_s8 + $0xe8] sm:$0xff] (!%p4447_p10), %v3778_v16  ;;  %v3793_v31 = vld [vmem:[#allocation2 + $0xf0] sm:$0xff] (!%p4447_p10)  ;;  %v3794_v32 = vld [vmem:[#allocation2 + $0xf8] sm:$0xff] (!%p4447_p10) }
 0x427   : > { %2217 = vst [vmem:[#allocation2 + $0x3e0] sm:$0xff] %v2089_v47  ;;  %3755 = vst [vmem:[#allocation3 + $0x3e0] sm:$0xff] %v3627_v48  ;;  %v3795_v33 = vld [vmem:[#allocation2 + $0x100] sm:$0xff] (!%p4447_p10)  ;;  %v3796_v34 = vld [vmem:[#allocation2 + $0x108] sm:$0xff] (!%p4447_p10) }
 0x428   : > { %2218 = vst [vmem:[#allocation2 + $0x3e8] sm:$0xff] %v2090_v51  ;;  %3756 = vst [vmem:[#allocation3 + $0x3e8] sm:$0xff] %v3628_v52  ;;  %v1960_v57 = vpop.f32.mrb[126].mxu0  ;;  %v3498_v58 = vpop.f32.mrb[126].mxu1  ;;  %v3797_v35 = vld [vmem:[#allocation2 + $0x110] sm:$0xff] (!%p4447_p10)  ;;  %v3798_v36 = vld [vmem:[#allocation2 + $0x118] sm:$0xff] (!%p4447_p10) }
 0x429   : > { %v2091_v59 = vadd.f32 %v1960_v57, %v809_v53  ;;  %v3629_v60 = vadd.f32 %v3498_v58, %v2347_v54  ;;  %v1962_v61 = vpop.f32.mrb[127].mxu0  ;;  %v3500_v62 = vpop.f32.mrb[127].mxu1  ;;  %3907 = vst [vmem:[%s5714_s8 + $0x100] sm:$0xff] (!%p4447_p10), %v3779_v17  ;;  %3908 = vst [vmem:[%s5714_s8 + $0x108] sm:$0xff] (!%p4447_p10), %v3780_v18  ;;  %v3799_v37 = vld [vmem:[#allocation2 + $0x120] sm:$0xff] (!%p4447_p10)  ;;  %v3800_v38 = vld [vmem:[#allocation2 + $0x128] sm:$0xff] (!%p4447_p10) }
 0x42a   : > { %v2092_v63 = vadd.f32 %v1962_v61, %v810_v55  ;;  %v3630_v0 = vadd.f32 %v3500_v62, %v2348_v56  ;;  %3909 = vst [vmem:[%s5714_s8 + $0x120] sm:$0xff] (!%p4447_p10), %v3781_v19  ;;  %3910 = vst [vmem:[%s5714_s8 + $0x128] sm:$0xff] (!%p4447_p10), %v3782_v20  ;;  %v3801_v39 = vld [vmem:[#allocation2 + $0x130] sm:$0xff] (!%p4447_p10)  ;;  %v3802_v40 = vld [vmem:[#allocation2 + $0x138] sm:$0xff] (!%p4447_p10) }
 0x42b   : > { %2219 = vst [vmem:[#allocation2 + $0x3f0] sm:$0xff] %v2091_v59  ;;  %3757 = vst [vmem:[#allocation3 + $0x3f0] sm:$0xff] %v3629_v60  ;;  %v3803_v41 = vld [vmem:[#allocation2 + $0x140] sm:$0xff] (!%p4447_p10)  ;;  %v3804_v42 = vld [vmem:[#allocation2 + $0x148] sm:$0xff] (!%p4447_p10) }
 0x42c   : > { %2220 = vst [vmem:[#allocation2 + $0x3f8] sm:$0xff] %v2092_v63  ;;  %3758 = vst [vmem:[#allocation3 + $0x3f8] sm:$0xff] %v3630_v0  ;;  %v3805_v43 = vld [vmem:[#allocation2 + $0x150] sm:$0xff] (!%p4447_p10)  ;;  %v3806_v44 = vld [vmem:[#allocation2 + $0x158] sm:$0xff] (!%p4447_p10) }
 0x42d   : > { %3911 = vst [vmem:[%s5714_s8 + $0x140] sm:$0xff] %v3783_v21  ;;  %3912 = vst [vmem:[%s5714_s8 + $0x148] sm:$0xff] %v3784_v22  ;;  %v3807_v45 = vld [vmem:[#allocation2 + $0x160] sm:$0xff]  ;;  %v3808_v46 = vld [vmem:[#allocation2 + $0x168] sm:$0xff] }
 0x42e   : > { %3913 = vst [vmem:[%s5714_s8 + $0x160] sm:$0xff] %v3785_v23  ;;  %3914 = vst [vmem:[%s5714_s8 + $0x168] sm:$0xff] %v3786_v24  ;;  %v3809_v47 = vld [vmem:[#allocation2 + $0x170] sm:$0xff]  ;;  %v3810_v48 = vld [vmem:[#allocation2 + $0x178] sm:$0xff] }
 0x42f   : > { %3915 = vst [vmem:[%s5714_s8 + $0x180] sm:$0xff] %v3787_v25  ;;  %3916 = vst [vmem:[%s5714_s8 + $0x188] sm:$0xff] %v3788_v26  ;;  %v3811_v49 = vld [vmem:[#allocation2 + $0x180] sm:$0xff]  ;;  %v3812_v50 = vld [vmem:[#allocation2 + $0x188] sm:$0xff] }
 0x430   : > { %3917 = vst [vmem:[%s5714_s8 + $0x1a0] sm:$0xff] %v3789_v27  ;;  %3918 = vst [vmem:[%s5714_s8 + $0x1a8] sm:$0xff] %v3790_v28  ;;  %v3813_v51 = vld [vmem:[#allocation2 + $0x190] sm:$0xff]  ;;  %v3814_v52 = vld [vmem:[#allocation2 + $0x198] sm:$0xff] }
 0x431   : > { %3919 = vst [vmem:[%s5714_s8 + $0x1c0] sm:$0xff] %v3791_v29  ;;  %3920 = vst [vmem:[%s5714_s8 + $0x1c8] sm:$0xff] %v3792_v30  ;;  %v3815_v53 = vld [vmem:[#allocation2 + $0x1a0] sm:$0xff]  ;;  %v3816_v54 = vld [vmem:[#allocation2 + $0x1a8] sm:$0xff] }
 0x432   : > { %3921 = vst [vmem:[%s5714_s8 + $0x1e0] sm:$0xff] %v3793_v31  ;;  %3922 = vst [vmem:[%s5714_s8 + $0x1e8] sm:$0xff] %v3794_v32  ;;  %v3817_v55 = vld [vmem:[#allocation2 + $0x1b0] sm:$0xff]  ;;  %v3818_v56 = vld [vmem:[#allocation2 + $0x1b8] sm:$0xff] }
 0x433   : > { %3923 = vst [vmem:[%s5714_s8 + $0x200] sm:$0xff] %v3795_v33  ;;  %3924 = vst [vmem:[%s5714_s8 + $0x208] sm:$0xff] %v3796_v34  ;;  %v3819_v57 = vld [vmem:[#allocation2 + $0x1c0] sm:$0xff]  ;;  %v3820_v58 = vld [vmem:[#allocation2 + $0x1c8] sm:$0xff] }
 0x434   : > { %3925 = vst [vmem:[%s5714_s8 + $0x220] sm:$0xff] %v3797_v35  ;;  %3926 = vst [vmem:[%s5714_s8 + $0x228] sm:$0xff] %v3798_v36  ;;  %v3821_v59 = vld [vmem:[#allocation2 + $0x1d0] sm:$0xff]  ;;  %v3822_v60 = vld [vmem:[#allocation2 + $0x1d8] sm:$0xff] }
 0x435   : > { %3927 = vst [vmem:[%s5714_s8 + $0x240] sm:$0xff] %v3799_v37  ;;  %3928 = vst [vmem:[%s5714_s8 + $0x248] sm:$0xff] %v3800_v38  ;;  %v3823_v61 = vld [vmem:[#allocation2 + $0x1e0] sm:$0xff]  ;;  %v3824_v62 = vld [vmem:[#allocation2 + $0x1e8] sm:$0xff] }
 0x436   : > { %3929 = vst [vmem:[%s5714_s8 + $0x260] sm:$0xff] %v3801_v39  ;;  %3930 = vst [vmem:[%s5714_s8 + $0x268] sm:$0xff] %v3802_v40  ;;  %v3825_v63 = vld [vmem:[#allocation2 + $0x1f0] sm:$0xff]  ;;  %v3826_v0 = vld [vmem:[#allocation2 + $0x1f8] sm:$0xff] }
 0x437   : > { %3931 = vst [vmem:[%s5714_s8 + $0x280] sm:$0xff] %v3803_v41  ;;  %3932 = vst [vmem:[%s5714_s8 + $0x288] sm:$0xff] %v3804_v42  ;;  %v3827_v1 = vld [vmem:[#allocation2 + $0x200] sm:$0xff]  ;;  %v3828_v2 = vld [vmem:[#allocation2 + $0x208] sm:$0xff] }
 0x438   : > { %3933 = vst [vmem:[%s5714_s8 + $0x2a0] sm:$0xff] %v3805_v43  ;;  %3934 = vst [vmem:[%s5714_s8 + $0x2a8] sm:$0xff] %v3806_v44  ;;  %v3829_v3 = vld [vmem:[#allocation2 + $0x210] sm:$0xff]  ;;  %v3830_v4 = vld [vmem:[#allocation2 + $0x218] sm:$0xff] }
 0x439   : > { %3935 = vst [vmem:[%s5714_s8 + $0x2c0] sm:$0xff] %v3807_v45  ;;  %3936 = vst [vmem:[%s5714_s8 + $0x2c8] sm:$0xff] %v3808_v46  ;;  %v3831_v5 = vld [vmem:[#allocation2 + $0x220] sm:$0xff]  ;;  %v3832_v6 = vld [vmem:[#allocation2 + $0x228] sm:$0xff] }
 0x43a   : > { %3937 = vst [vmem:[%s5714_s8 + $0x2e0] sm:$0xff] %v3809_v47  ;;  %3938 = vst [vmem:[%s5714_s8 + $0x2e8] sm:$0xff] %v3810_v48  ;;  %v3833_v7 = vld [vmem:[#allocation2 + $0x230] sm:$0xff]  ;;  %v3834_v8 = vld [vmem:[#allocation2 + $0x238] sm:$0xff] }
 0x43b   : > { %3939 = vst [vmem:[%s5714_s8 + $0x300] sm:$0xff] %v3811_v49  ;;  %3940 = vst [vmem:[%s5714_s8 + $0x308] sm:$0xff] %v3812_v50  ;;  %v3835_v9 = vld [vmem:[#allocation2 + $0x240] sm:$0xff]  ;;  %v3836_v10 = vld [vmem:[#allocation2 + $0x248] sm:$0xff] }
 0x43c   : > { %3941 = vst [vmem:[%s5714_s8 + $0x320] sm:$0xff] %v3813_v51  ;;  %3942 = vst [vmem:[%s5714_s8 + $0x328] sm:$0xff] %v3814_v52  ;;  %v3837_v11 = vld [vmem:[#allocation2 + $0x250] sm:$0xff]  ;;  %v3838_v12 = vld [vmem:[#allocation2 + $0x258] sm:$0xff] }
 0x43d   : > { %3943 = vst [vmem:[%s5714_s8 + $0x340] sm:$0xff] %v3815_v53  ;;  %3944 = vst [vmem:[%s5714_s8 + $0x348] sm:$0xff] %v3816_v54  ;;  %v3839_v13 = vld [vmem:[#allocation2 + $0x260] sm:$0xff]  ;;  %v3840_v14 = vld [vmem:[#allocation2 + $0x268] sm:$0xff] }
 0x43e   : > { %3945 = vst [vmem:[%s5714_s8 + $0x360] sm:$0xff] %v3817_v55  ;;  %3946 = vst [vmem:[%s5714_s8 + $0x368] sm:$0xff] %v3818_v56  ;;  %v3841_v15 = vld [vmem:[#allocation2 + $0x270] sm:$0xff]  ;;  %v3842_v16 = vld [vmem:[#allocation2 + $0x278] sm:$0xff] }
 0x43f   : > { %3947 = vst [vmem:[%s5714_s8 + $0x380] sm:$0xff] %v3819_v57  ;;  %3948 = vst [vmem:[%s5714_s8 + $0x388] sm:$0xff] %v3820_v58  ;;  %v3843_v17 = vld [vmem:[#allocation2 + $0x280] sm:$0xff]  ;;  %v3844_v18 = vld [vmem:[#allocation2 + $0x288] sm:$0xff] }
 0x440   : > { %3949 = vst [vmem:[%s5714_s8 + $0x3a0] sm:$0xff] %v3821_v59  ;;  %3950 = vst [vmem:[%s5714_s8 + $0x3a8] sm:$0xff] %v3822_v60  ;;  %v3845_v19 = vld [vmem:[#allocation2 + $0x290] sm:$0xff]  ;;  %v3846_v20 = vld [vmem:[#allocation2 + $0x298] sm:$0xff] }
 0x441   : > { %3951 = vst [vmem:[%s5714_s8 + $0x3c0] sm:$0xff] %v3823_v61  ;;  %3952 = vst [vmem:[%s5714_s8 + $0x3c8] sm:$0xff] %v3824_v62  ;;  %v3847_v21 = vld [vmem:[#allocation2 + $0x2a0] sm:$0xff]  ;;  %v3848_v22 = vld [vmem:[#allocation2 + $0x2a8] sm:$0xff] }
 0x442   : > { %3953 = vst [vmem:[%s5714_s8 + $0x3e0] sm:$0xff] %v3825_v63  ;;  %3954 = vst [vmem:[%s5714_s8 + $0x3e8] sm:$0xff] %v3826_v0  ;;  %v3849_v23 = vld [vmem:[#allocation2 + $0x2b0] sm:$0xff]  ;;  %v3850_v24 = vld [vmem:[#allocation2 + $0x2b8] sm:$0xff] }
 0x443   : > { %3955 = vst [vmem:[%s5714_s8 + $0x400] sm:$0xff] %v3827_v1  ;;  %3956 = vst [vmem:[%s5714_s8 + $0x408] sm:$0xff] %v3828_v2  ;;  %v3851_v25 = vld [vmem:[#allocation2 + $0x2c0] sm:$0xff]  ;;  %v3852_v26 = vld [vmem:[#allocation2 + $0x2c8] sm:$0xff] }
 0x444   : > { %3957 = vst [vmem:[%s5714_s8 + $0x420] sm:$0xff] %v3829_v3  ;;  %3958 = vst [vmem:[%s5714_s8 + $0x428] sm:$0xff] %v3830_v4  ;;  %v3853_v27 = vld [vmem:[#allocation2 + $0x2d0] sm:$0xff]  ;;  %v3854_v28 = vld [vmem:[#allocation2 + $0x2d8] sm:$0xff] }
 0x445   : > { %3959 = vst [vmem:[%s5714_s8 + $0x440] sm:$0xff] %v3831_v5  ;;  %3960 = vst [vmem:[%s5714_s8 + $0x448] sm:$0xff] %v3832_v6  ;;  %v3855_v29 = vld [vmem:[#allocation2 + $0x2e0] sm:$0xff]  ;;  %v3856_v30 = vld [vmem:[#allocation2 + $0x2e8] sm:$0xff] }
 0x446   : > { %3961 = vst [vmem:[%s5714_s8 + $0x460] sm:$0xff] %v3833_v7  ;;  %3962 = vst [vmem:[%s5714_s8 + $0x468] sm:$0xff] %v3834_v8  ;;  %v3857_v31 = vld [vmem:[#allocation2 + $0x2f0] sm:$0xff]  ;;  %v3858_v32 = vld [vmem:[#allocation2 + $0x2f8] sm:$0xff] }
 0x447   : > { %3963 = vst [vmem:[%s5714_s8 + $0x480] sm:$0xff] %v3835_v9  ;;  %3964 = vst [vmem:[%s5714_s8 + $0x488] sm:$0xff] %v3836_v10  ;;  %v3859_v33 = vld [vmem:[#allocation2 + $0x300] sm:$0xff]  ;;  %v3860_v34 = vld [vmem:[#allocation2 + $0x308] sm:$0xff] }
 0x448   : > { %3965 = vst [vmem:[%s5714_s8 + $0x4a0] sm:$0xff] %v3837_v11  ;;  %3966 = vst [vmem:[%s5714_s8 + $0x4a8] sm:$0xff] %v3838_v12  ;;  %v3861_v35 = vld [vmem:[#allocation2 + $0x310] sm:$0xff]  ;;  %v3862_v36 = vld [vmem:[#allocation2 + $0x318] sm:$0xff] }
 0x449   : > { %3967 = vst [vmem:[%s5714_s8 + $0x4c0] sm:$0xff] %v3839_v13  ;;  %3968 = vst [vmem:[%s5714_s8 + $0x4c8] sm:$0xff] %v3840_v14  ;;  %v3863_v37 = vld [vmem:[#allocation2 + $0x320] sm:$0xff]  ;;  %v3864_v38 = vld [vmem:[#allocation2 + $0x328] sm:$0xff] }
 0x44a   : > { %3969 = vst [vmem:[%s5714_s8 + $0x4e0] sm:$0xff] %v3841_v15  ;;  %3970 = vst [vmem:[%s5714_s8 + $0x4e8] sm:$0xff] %v3842_v16  ;;  %v3865_v39 = vld [vmem:[#allocation2 + $0x330] sm:$0xff]  ;;  %v3866_v40 = vld [vmem:[#allocation2 + $0x338] sm:$0xff] }
 0x44b   : > { %3971 = vst [vmem:[%s5714_s8 + $0x500] sm:$0xff] %v3843_v17  ;;  %3972 = vst [vmem:[%s5714_s8 + $0x508] sm:$0xff] %v3844_v18  ;;  %v3867_v41 = vld [vmem:[#allocation2 + $0x340] sm:$0xff]  ;;  %v3868_v42 = vld [vmem:[#allocation2 + $0x348] sm:$0xff] }
 0x44c   : > { %3973 = vst [vmem:[%s5714_s8 + $0x520] sm:$0xff] %v3845_v19  ;;  %3974 = vst [vmem:[%s5714_s8 + $0x528] sm:$0xff] %v3846_v20  ;;  %v3869_v43 = vld [vmem:[#allocation2 + $0x350] sm:$0xff]  ;;  %v3870_v44 = vld [vmem:[#allocation2 + $0x358] sm:$0xff] }
 0x44d   : > { %3975 = vst [vmem:[%s5714_s8 + $0x540] sm:$0xff] %v3847_v21  ;;  %3976 = vst [vmem:[%s5714_s8 + $0x548] sm:$0xff] %v3848_v22  ;;  %v3871_v45 = vld [vmem:[#allocation2 + $0x360] sm:$0xff]  ;;  %v3872_v46 = vld [vmem:[#allocation2 + $0x368] sm:$0xff] }
 0x44e   : > { %3977 = vst [vmem:[%s5714_s8 + $0x560] sm:$0xff] %v3849_v23  ;;  %3978 = vst [vmem:[%s5714_s8 + $0x568] sm:$0xff] %v3850_v24  ;;  %v3873_v47 = vld [vmem:[#allocation2 + $0x370] sm:$0xff]  ;;  %v3874_v48 = vld [vmem:[#allocation2 + $0x378] sm:$0xff] }
 0x44f   : > { %3979 = vst [vmem:[%s5714_s8 + $0x580] sm:$0xff] %v3851_v25  ;;  %3980 = vst [vmem:[%s5714_s8 + $0x588] sm:$0xff] %v3852_v26  ;;  %v3875_v49 = vld [vmem:[#allocation2 + $0x380] sm:$0xff]  ;;  %v3876_v50 = vld [vmem:[#allocation2 + $0x388] sm:$0xff] }
 0x450   : > { %3981 = vst [vmem:[%s5714_s8 + $0x5a0] sm:$0xff] %v3853_v27  ;;  %3982 = vst [vmem:[%s5714_s8 + $0x5a8] sm:$0xff] %v3854_v28  ;;  %v3877_v51 = vld [vmem:[#allocation2 + $0x390] sm:$0xff]  ;;  %v3878_v52 = vld [vmem:[#allocation2 + $0x398] sm:$0xff] }
 0x451   : > { %3983 = vst [vmem:[%s5714_s8 + $0x5c0] sm:$0xff] %v3855_v29  ;;  %3984 = vst [vmem:[%s5714_s8 + $0x5c8] sm:$0xff] %v3856_v30  ;;  %v3879_v53 = vld [vmem:[#allocation2 + $0x3a0] sm:$0xff]  ;;  %v3880_v54 = vld [vmem:[#allocation2 + $0x3a8] sm:$0xff] }
 0x452   : > { %3985 = vst [vmem:[%s5714_s8 + $0x5e0] sm:$0xff] %v3857_v31  ;;  %3986 = vst [vmem:[%s5714_s8 + $0x5e8] sm:$0xff] %v3858_v32  ;;  %v3881_v55 = vld [vmem:[#allocation2 + $0x3b0] sm:$0xff]  ;;  %v3882_v56 = vld [vmem:[#allocation2 + $0x3b8] sm:$0xff] }
 0x453   : > { %3987 = vst [vmem:[%s5714_s8 + $0x600] sm:$0xff] %v3859_v33  ;;  %3988 = vst [vmem:[%s5714_s8 + $0x608] sm:$0xff] %v3860_v34  ;;  %v3883_v57 = vld [vmem:[#allocation2 + $0x3c0] sm:$0xff]  ;;  %v3884_v58 = vld [vmem:[#allocation2 + $0x3c8] sm:$0xff] }
 0x454   : > { %3989 = vst [vmem:[%s5714_s8 + $0x620] sm:$0xff] %v3861_v35  ;;  %3990 = vst [vmem:[%s5714_s8 + $0x628] sm:$0xff] %v3862_v36  ;;  %v3885_v59 = vld [vmem:[#allocation2 + $0x3d0] sm:$0xff]  ;;  %v3886_v60 = vld [vmem:[#allocation2 + $0x3d8] sm:$0xff] }
 0x455   : > { %3991 = vst [vmem:[%s5714_s8 + $0x640] sm:$0xff] %v3863_v37  ;;  %3992 = vst [vmem:[%s5714_s8 + $0x648] sm:$0xff] %v3864_v38  ;;  %v3887_v61 = vld [vmem:[#allocation2 + $0x3e0] sm:$0xff]  ;;  %v3888_v62 = vld [vmem:[#allocation2 + $0x3e8] sm:$0xff] }
 0x456   : > { %3993 = vst [vmem:[%s5714_s8 + $0x660] sm:$0xff] %v3865_v39  ;;  %3994 = vst [vmem:[%s5714_s8 + $0x668] sm:$0xff] %v3866_v40  ;;  %v3889_v63 = vld [vmem:[#allocation2 + $0x3f0] sm:$0xff]  ;;  %v3890_v0 = vld [vmem:[#allocation2 + $0x3f8] sm:$0xff] }
 0x457   : > { %3995 = vst [vmem:[%s5714_s8 + $0x680] sm:$0xff] %v3867_v41  ;;  %3996 = vst [vmem:[%s5714_s8 + $0x688] sm:$0xff] %v3868_v42  ;;  %v4019_v1 = vld [vmem:[#allocation3] sm:$0xff]  ;;  %v4020_v2 = vld [vmem:[#allocation3 + $0x8] sm:$0xff] }
 0x458   : > { %3997 = vst [vmem:[%s5714_s8 + $0x6a0] sm:$0xff] %v3869_v43  ;;  %3998 = vst [vmem:[%s5714_s8 + $0x6a8] sm:$0xff] %v3870_v44  ;;  %v4021_v3 = vld [vmem:[#allocation3 + $0x10] sm:$0xff]  ;;  %v4022_v4 = vld [vmem:[#allocation3 + $0x18] sm:$0xff] }
 0x459   : > { %3999 = vst [vmem:[%s5714_s8 + $0x6c0] sm:$0xff] %v3871_v45  ;;  %4000 = vst [vmem:[%s5714_s8 + $0x6c8] sm:$0xff] %v3872_v46  ;;  %v4023_v5 = vld [vmem:[#allocation3 + $0x20] sm:$0xff]  ;;  %v4024_v6 = vld [vmem:[#allocation3 + $0x28] sm:$0xff] }
 0x45a   : > { %4001 = vst [vmem:[%s5714_s8 + $0x6e0] sm:$0xff] %v3873_v47  ;;  %4002 = vst [vmem:[%s5714_s8 + $0x6e8] sm:$0xff] %v3874_v48  ;;  %v4025_v7 = vld [vmem:[#allocation3 + $0x30] sm:$0xff]  ;;  %v4026_v8 = vld [vmem:[#allocation3 + $0x38] sm:$0xff] }
 0x45b   : > { %4003 = vst [vmem:[%s5714_s8 + $0x700] sm:$0xff] %v3875_v49  ;;  %4004 = vst [vmem:[%s5714_s8 + $0x708] sm:$0xff] %v3876_v50  ;;  %v4027_v9 = vld [vmem:[#allocation3 + $0x40] sm:$0xff]  ;;  %v4028_v10 = vld [vmem:[#allocation3 + $0x48] sm:$0xff] }
 0x45c   : > { %4005 = vst [vmem:[%s5714_s8 + $0x720] sm:$0xff] %v3877_v51  ;;  %4006 = vst [vmem:[%s5714_s8 + $0x728] sm:$0xff] %v3878_v52  ;;  %v4029_v11 = vld [vmem:[#allocation3 + $0x50] sm:$0xff]  ;;  %v4030_v12 = vld [vmem:[#allocation3 + $0x58] sm:$0xff] }
 0x45d   : > { %4007 = vst [vmem:[%s5714_s8 + $0x740] sm:$0xff] %v3879_v53  ;;  %4008 = vst [vmem:[%s5714_s8 + $0x748] sm:$0xff] %v3880_v54  ;;  %v4031_v13 = vld [vmem:[#allocation3 + $0x60] sm:$0xff]  ;;  %v4032_v14 = vld [vmem:[#allocation3 + $0x68] sm:$0xff] }
 0x45e   : > { %4009 = vst [vmem:[%s5714_s8 + $0x760] sm:$0xff] %v3881_v55  ;;  %4010 = vst [vmem:[%s5714_s8 + $0x768] sm:$0xff] %v3882_v56  ;;  %v4033_v15 = vld [vmem:[#allocation3 + $0x70] sm:$0xff]  ;;  %v4034_v16 = vld [vmem:[#allocation3 + $0x78] sm:$0xff] }
 0x45f   : > { %4011 = vst [vmem:[%s5714_s8 + $0x780] sm:$0xff] %v3883_v57  ;;  %4012 = vst [vmem:[%s5714_s8 + $0x788] sm:$0xff] %v3884_v58  ;;  %v4035_v17 = vld [vmem:[#allocation3 + $0x80] sm:$0xff]  ;;  %v4036_v18 = vld [vmem:[#allocation3 + $0x88] sm:$0xff] }
 0x460   : > { %4013 = vst [vmem:[%s5714_s8 + $0x7a0] sm:$0xff] %v3885_v59  ;;  %4014 = vst [vmem:[%s5714_s8 + $0x7a8] sm:$0xff] %v3886_v60  ;;  %v4037_v19 = vld [vmem:[#allocation3 + $0x90] sm:$0xff]  ;;  %v4038_v20 = vld [vmem:[#allocation3 + $0x98] sm:$0xff] }
 0x461   : > { %4015 = vst [vmem:[%s5714_s8 + $0x7c0] sm:$0xff] %v3887_v61  ;;  %4016 = vst [vmem:[%s5714_s8 + $0x7c8] sm:$0xff] %v3888_v62  ;;  %v4039_v21 = vld [vmem:[#allocation3 + $0xa0] sm:$0xff]  ;;  %v4040_v22 = vld [vmem:[#allocation3 + $0xa8] sm:$0xff] }
 0x462   : > { %4017 = vst [vmem:[%s5714_s8 + $0x7e0] sm:$0xff] %v3889_v63  ;;  %4018 = vst [vmem:[%s5714_s8 + $0x7e8] sm:$0xff] %v3890_v0  ;;  %v4041_v23 = vld [vmem:[#allocation3 + $0xb0] sm:$0xff]  ;;  %v4042_v24 = vld [vmem:[#allocation3 + $0xb8] sm:$0xff] }
 0x463   : > { %4147 = vst [vmem:[%s5714_s8 + $0x10] sm:$0xff] %v4019_v1  ;;  %4148 = vst [vmem:[%s5714_s8 + $0x18] sm:$0xff] %v4020_v2  ;;  %v4043_v25 = vld [vmem:[#allocation3 + $0xc0] sm:$0xff]  ;;  %v4044_v26 = vld [vmem:[#allocation3 + $0xc8] sm:$0xff] }
 0x464   : > { %4149 = vst [vmem:[%s5714_s8 + $0x30] sm:$0xff] %v4021_v3  ;;  %4150 = vst [vmem:[%s5714_s8 + $0x38] sm:$0xff] %v4022_v4  ;;  %v4045_v27 = vld [vmem:[#allocation3 + $0xd0] sm:$0xff]  ;;  %v4046_v28 = vld [vmem:[#allocation3 + $0xd8] sm:$0xff] }
 0x465   : > { %4151 = vst [vmem:[%s5714_s8 + $0x50] sm:$0xff] %v4023_v5  ;;  %4152 = vst [vmem:[%s5714_s8 + $0x58] sm:$0xff] %v4024_v6  ;;  %v4047_v29 = vld [vmem:[#allocation3 + $0xe0] sm:$0xff]  ;;  %v4048_v30 = vld [vmem:[#allocation3 + $0xe8] sm:$0xff] }
 0x466   : > { %4153 = vst [vmem:[%s5714_s8 + $0x70] sm:$0xff] %v4025_v7  ;;  %4154 = vst [vmem:[%s5714_s8 + $0x78] sm:$0xff] %v4026_v8  ;;  %v4049_v31 = vld [vmem:[#allocation3 + $0xf0] sm:$0xff]  ;;  %v4050_v32 = vld [vmem:[#allocation3 + $0xf8] sm:$0xff] }
 0x467   : > { %4155 = vst [vmem:[%s5714_s8 + $0x90] sm:$0xff] %v4027_v9  ;;  %4156 = vst [vmem:[%s5714_s8 + $0x98] sm:$0xff] %v4028_v10  ;;  %v4051_v33 = vld [vmem:[#allocation3 + $0x100] sm:$0xff]  ;;  %v4052_v34 = vld [vmem:[#allocation3 + $0x108] sm:$0xff] }
 0x468   : > { %4157 = vst [vmem:[%s5714_s8 + $0xb0] sm:$0xff] %v4029_v11  ;;  %4158 = vst [vmem:[%s5714_s8 + $0xb8] sm:$0xff] %v4030_v12  ;;  %v4053_v35 = vld [vmem:[#allocation3 + $0x110] sm:$0xff]  ;;  %v4054_v36 = vld [vmem:[#allocation3 + $0x118] sm:$0xff] }
 0x469   : > { %4159 = vst [vmem:[%s5714_s8 + $0xd0] sm:$0xff] %v4031_v13  ;;  %4160 = vst [vmem:[%s5714_s8 + $0xd8] sm:$0xff] %v4032_v14  ;;  %v4055_v37 = vld [vmem:[#allocation3 + $0x120] sm:$0xff]  ;;  %v4056_v38 = vld [vmem:[#allocation3 + $0x128] sm:$0xff] }
 0x46a   : > { %4161 = vst [vmem:[%s5714_s8 + $0xf0] sm:$0xff] %v4033_v15  ;;  %4162 = vst [vmem:[%s5714_s8 + $0xf8] sm:$0xff] %v4034_v16  ;;  %v4057_v39 = vld [vmem:[#allocation3 + $0x130] sm:$0xff]  ;;  %v4058_v40 = vld [vmem:[#allocation3 + $0x138] sm:$0xff] }
 0x46b   : > { %4163 = vst [vmem:[%s5714_s8 + $0x110] sm:$0xff] %v4035_v17  ;;  %4164 = vst [vmem:[%s5714_s8 + $0x118] sm:$0xff] %v4036_v18  ;;  %v4059_v41 = vld [vmem:[#allocation3 + $0x140] sm:$0xff]  ;;  %v4060_v42 = vld [vmem:[#allocation3 + $0x148] sm:$0xff] }
 0x46c   : > { %4165 = vst [vmem:[%s5714_s8 + $0x130] sm:$0xff] %v4037_v19  ;;  %4166 = vst [vmem:[%s5714_s8 + $0x138] sm:$0xff] %v4038_v20  ;;  %v4061_v43 = vld [vmem:[#allocation3 + $0x150] sm:$0xff]  ;;  %v4062_v44 = vld [vmem:[#allocation3 + $0x158] sm:$0xff] }
 0x46d   : > { %4167 = vst [vmem:[%s5714_s8 + $0x150] sm:$0xff] %v4039_v21  ;;  %4168 = vst [vmem:[%s5714_s8 + $0x158] sm:$0xff] %v4040_v22  ;;  %v4063_v45 = vld [vmem:[#allocation3 + $0x160] sm:$0xff]  ;;  %v4064_v46 = vld [vmem:[#allocation3 + $0x168] sm:$0xff] }
 0x46e   : > { %4169 = vst [vmem:[%s5714_s8 + $0x170] sm:$0xff] %v4041_v23  ;;  %4170 = vst [vmem:[%s5714_s8 + $0x178] sm:$0xff] %v4042_v24  ;;  %v4065_v47 = vld [vmem:[#allocation3 + $0x170] sm:$0xff]  ;;  %v4066_v48 = vld [vmem:[#allocation3 + $0x178] sm:$0xff] }
 0x46f   : > { %4171 = vst [vmem:[%s5714_s8 + $0x190] sm:$0xff] %v4043_v25  ;;  %4172 = vst [vmem:[%s5714_s8 + $0x198] sm:$0xff] %v4044_v26  ;;  %v4067_v49 = vld [vmem:[#allocation3 + $0x180] sm:$0xff]  ;;  %v4068_v50 = vld [vmem:[#allocation3 + $0x188] sm:$0xff] }
 0x470   : > { %4173 = vst [vmem:[%s5714_s8 + $0x1b0] sm:$0xff] %v4045_v27  ;;  %4174 = vst [vmem:[%s5714_s8 + $0x1b8] sm:$0xff] %v4046_v28  ;;  %v4069_v51 = vld [vmem:[#allocation3 + $0x190] sm:$0xff]  ;;  %v4070_v52 = vld [vmem:[#allocation3 + $0x198] sm:$0xff] }
 0x471   : > { %4175 = vst [vmem:[%s5714_s8 + $0x1d0] sm:$0xff] %v4047_v29  ;;  %4176 = vst [vmem:[%s5714_s8 + $0x1d8] sm:$0xff] %v4048_v30  ;;  %v4071_v53 = vld [vmem:[#allocation3 + $0x1a0] sm:$0xff]  ;;  %v4072_v54 = vld [vmem:[#allocation3 + $0x1a8] sm:$0xff] }
 0x472   : > { %4177 = vst [vmem:[%s5714_s8 + $0x1f0] sm:$0xff] %v4049_v31  ;;  %4178 = vst [vmem:[%s5714_s8 + $0x1f8] sm:$0xff] %v4050_v32  ;;  %v4073_v55 = vld [vmem:[#allocation3 + $0x1b0] sm:$0xff]  ;;  %v4074_v56 = vld [vmem:[#allocation3 + $0x1b8] sm:$0xff] }
 0x473   : > { %4179 = vst [vmem:[%s5714_s8 + $0x210] sm:$0xff] %v4051_v33  ;;  %4180 = vst [vmem:[%s5714_s8 + $0x218] sm:$0xff] %v4052_v34  ;;  %v4075_v57 = vld [vmem:[#allocation3 + $0x1c0] sm:$0xff]  ;;  %v4076_v58 = vld [vmem:[#allocation3 + $0x1c8] sm:$0xff] }
 0x474   : > { %4181 = vst [vmem:[%s5714_s8 + $0x230] sm:$0xff] %v4053_v35  ;;  %4182 = vst [vmem:[%s5714_s8 + $0x238] sm:$0xff] %v4054_v36  ;;  %v4077_v59 = vld [vmem:[#allocation3 + $0x1d0] sm:$0xff]  ;;  %v4078_v60 = vld [vmem:[#allocation3 + $0x1d8] sm:$0xff] }
 0x475   : > { %4183 = vst [vmem:[%s5714_s8 + $0x250] sm:$0xff] %v4055_v37  ;;  %4184 = vst [vmem:[%s5714_s8 + $0x258] sm:$0xff] %v4056_v38  ;;  %v4079_v61 = vld [vmem:[#allocation3 + $0x1e0] sm:$0xff]  ;;  %v4080_v62 = vld [vmem:[#allocation3 + $0x1e8] sm:$0xff] }
 0x476   : > { %4185 = vst [vmem:[%s5714_s8 + $0x270] sm:$0xff] %v4057_v39  ;;  %4186 = vst [vmem:[%s5714_s8 + $0x278] sm:$0xff] %v4058_v40  ;;  %v4081_v63 = vld [vmem:[#allocation3 + $0x1f0] sm:$0xff]  ;;  %v4082_v0 = vld [vmem:[#allocation3 + $0x1f8] sm:$0xff] }
 0x477   : > { %4187 = vst [vmem:[%s5714_s8 + $0x290] sm:$0xff] %v4059_v41  ;;  %4188 = vst [vmem:[%s5714_s8 + $0x298] sm:$0xff] %v4060_v42  ;;  %v4083_v1 = vld [vmem:[#allocation3 + $0x200] sm:$0xff]  ;;  %v4084_v2 = vld [vmem:[#allocation3 + $0x208] sm:$0xff] }
 0x478   : > { %4189 = vst [vmem:[%s5714_s8 + $0x2b0] sm:$0xff] %v4061_v43  ;;  %4190 = vst [vmem:[%s5714_s8 + $0x2b8] sm:$0xff] %v4062_v44  ;;  %v4085_v3 = vld [vmem:[#allocation3 + $0x210] sm:$0xff]  ;;  %v4086_v4 = vld [vmem:[#allocation3 + $0x218] sm:$0xff] }
 0x479   : > { %4191 = vst [vmem:[%s5714_s8 + $0x2d0] sm:$0xff] %v4063_v45  ;;  %4192 = vst [vmem:[%s5714_s8 + $0x2d8] sm:$0xff] %v4064_v46  ;;  %v4087_v5 = vld [vmem:[#allocation3 + $0x220] sm:$0xff]  ;;  %v4088_v6 = vld [vmem:[#allocation3 + $0x228] sm:$0xff] }
 0x47a   : > { %4193 = vst [vmem:[%s5714_s8 + $0x2f0] sm:$0xff] %v4065_v47  ;;  %4194 = vst [vmem:[%s5714_s8 + $0x2f8] sm:$0xff] %v4066_v48  ;;  %v4089_v7 = vld [vmem:[#allocation3 + $0x230] sm:$0xff]  ;;  %v4090_v8 = vld [vmem:[#allocation3 + $0x238] sm:$0xff] }
 0x47b   : > { %4195 = vst [vmem:[%s5714_s8 + $0x310] sm:$0xff] %v4067_v49  ;;  %4196 = vst [vmem:[%s5714_s8 + $0x318] sm:$0xff] %v4068_v50  ;;  %v4091_v9 = vld [vmem:[#allocation3 + $0x240] sm:$0xff]  ;;  %v4092_v10 = vld [vmem:[#allocation3 + $0x248] sm:$0xff] }
 0x47c   : > { %4197 = vst [vmem:[%s5714_s8 + $0x330] sm:$0xff] %v4069_v51  ;;  %4198 = vst [vmem:[%s5714_s8 + $0x338] sm:$0xff] %v4070_v52  ;;  %v4093_v11 = vld [vmem:[#allocation3 + $0x250] sm:$0xff]  ;;  %v4094_v12 = vld [vmem:[#allocation3 + $0x258] sm:$0xff] }
 0x47d   : > { %4199 = vst [vmem:[%s5714_s8 + $0x350] sm:$0xff] %v4071_v53  ;;  %4200 = vst [vmem:[%s5714_s8 + $0x358] sm:$0xff] %v4072_v54  ;;  %v4095_v13 = vld [vmem:[#allocation3 + $0x260] sm:$0xff]  ;;  %v4096_v14 = vld [vmem:[#allocation3 + $0x268] sm:$0xff] }
 0x47e   : > { %4201 = vst [vmem:[%s5714_s8 + $0x370] sm:$0xff] %v4073_v55  ;;  %4202 = vst [vmem:[%s5714_s8 + $0x378] sm:$0xff] %v4074_v56  ;;  %v4097_v15 = vld [vmem:[#allocation3 + $0x270] sm:$0xff]  ;;  %v4098_v16 = vld [vmem:[#allocation3 + $0x278] sm:$0xff] }
 0x47f   : > { %4203 = vst [vmem:[%s5714_s8 + $0x390] sm:$0xff] %v4075_v57  ;;  %4204 = vst [vmem:[%s5714_s8 + $0x398] sm:$0xff] %v4076_v58  ;;  %v4099_v17 = vld [vmem:[#allocation3 + $0x280] sm:$0xff]  ;;  %v4100_v18 = vld [vmem:[#allocation3 + $0x288] sm:$0xff] }
 0x480   : > { %4205 = vst [vmem:[%s5714_s8 + $0x3b0] sm:$0xff] %v4077_v59  ;;  %4206 = vst [vmem:[%s5714_s8 + $0x3b8] sm:$0xff] %v4078_v60  ;;  %v4101_v19 = vld [vmem:[#allocation3 + $0x290] sm:$0xff]  ;;  %v4102_v20 = vld [vmem:[#allocation3 + $0x298] sm:$0xff] }
 0x481   : > { %4207 = vst [vmem:[%s5714_s8 + $0x3d0] sm:$0xff] %v4079_v61  ;;  %4208 = vst [vmem:[%s5714_s8 + $0x3d8] sm:$0xff] %v4080_v62  ;;  %v4103_v21 = vld [vmem:[#allocation3 + $0x2a0] sm:$0xff]  ;;  %v4104_v22 = vld [vmem:[#allocation3 + $0x2a8] sm:$0xff] }
 0x482   : > { %4209 = vst [vmem:[%s5714_s8 + $0x3f0] sm:$0xff] %v4081_v63  ;;  %4210 = vst [vmem:[%s5714_s8 + $0x3f8] sm:$0xff] %v4082_v0  ;;  %v4105_v23 = vld [vmem:[#allocation3 + $0x2b0] sm:$0xff]  ;;  %v4106_v24 = vld [vmem:[#allocation3 + $0x2b8] sm:$0xff] }
 0x483   : > { %4211 = vst [vmem:[%s5714_s8 + $0x410] sm:$0xff] %v4083_v1  ;;  %4212 = vst [vmem:[%s5714_s8 + $0x418] sm:$0xff] %v4084_v2  ;;  %v4107_v25 = vld [vmem:[#allocation3 + $0x2c0] sm:$0xff]  ;;  %v4108_v26 = vld [vmem:[#allocation3 + $0x2c8] sm:$0xff] }
 0x484   : > { %4213 = vst [vmem:[%s5714_s8 + $0x430] sm:$0xff] %v4085_v3  ;;  %4214 = vst [vmem:[%s5714_s8 + $0x438] sm:$0xff] %v4086_v4  ;;  %v4109_v27 = vld [vmem:[#allocation3 + $0x2d0] sm:$0xff]  ;;  %v4110_v28 = vld [vmem:[#allocation3 + $0x2d8] sm:$0xff] }
 0x485   : > { %4215 = vst [vmem:[%s5714_s8 + $0x450] sm:$0xff] %v4087_v5  ;;  %4216 = vst [vmem:[%s5714_s8 + $0x458] sm:$0xff] %v4088_v6  ;;  %v4111_v29 = vld [vmem:[#allocation3 + $0x2e0] sm:$0xff]  ;;  %v4112_v30 = vld [vmem:[#allocation3 + $0x2e8] sm:$0xff] }
 0x486   : > { %4217 = vst [vmem:[%s5714_s8 + $0x470] sm:$0xff] %v4089_v7  ;;  %4218 = vst [vmem:[%s5714_s8 + $0x478] sm:$0xff] %v4090_v8  ;;  %v4113_v31 = vld [vmem:[#allocation3 + $0x2f0] sm:$0xff]  ;;  %v4114_v32 = vld [vmem:[#allocation3 + $0x2f8] sm:$0xff] }
 0x487   : > { %4219 = vst [vmem:[%s5714_s8 + $0x490] sm:$0xff] %v4091_v9  ;;  %4220 = vst [vmem:[%s5714_s8 + $0x498] sm:$0xff] %v4092_v10  ;;  %v4115_v33 = vld [vmem:[#allocation3 + $0x300] sm:$0xff]  ;;  %v4116_v34 = vld [vmem:[#allocation3 + $0x308] sm:$0xff] }
 0x488   : > { %4221 = vst [vmem:[%s5714_s8 + $0x4b0] sm:$0xff] %v4093_v11  ;;  %4222 = vst [vmem:[%s5714_s8 + $0x4b8] sm:$0xff] %v4094_v12  ;;  %v4117_v35 = vld [vmem:[#allocation3 + $0x310] sm:$0xff]  ;;  %v4118_v36 = vld [vmem:[#allocation3 + $0x318] sm:$0xff] }
 0x489   : > { %4223 = vst [vmem:[%s5714_s8 + $0x4d0] sm:$0xff] %v4095_v13  ;;  %4224 = vst [vmem:[%s5714_s8 + $0x4d8] sm:$0xff] %v4096_v14  ;;  %v4119_v37 = vld [vmem:[#allocation3 + $0x320] sm:$0xff]  ;;  %v4120_v38 = vld [vmem:[#allocation3 + $0x328] sm:$0xff] }
 0x48a   : > { %4225 = vst [vmem:[%s5714_s8 + $0x4f0] sm:$0xff] %v4097_v15  ;;  %4226 = vst [vmem:[%s5714_s8 + $0x4f8] sm:$0xff] %v4098_v16  ;;  %v4121_v39 = vld [vmem:[#allocation3 + $0x330] sm:$0xff]  ;;  %v4122_v40 = vld [vmem:[#allocation3 + $0x338] sm:$0xff] }
 0x48b   : > { %4227 = vst [vmem:[%s5714_s8 + $0x510] sm:$0xff] %v4099_v17  ;;  %4228 = vst [vmem:[%s5714_s8 + $0x518] sm:$0xff] %v4100_v18  ;;  %v4123_v41 = vld [vmem:[#allocation3 + $0x340] sm:$0xff]  ;;  %v4124_v42 = vld [vmem:[#allocation3 + $0x348] sm:$0xff] }
 0x48c   : > { %4229 = vst [vmem:[%s5714_s8 + $0x530] sm:$0xff] %v4101_v19  ;;  %4230 = vst [vmem:[%s5714_s8 + $0x538] sm:$0xff] %v4102_v20  ;;  %v4125_v43 = vld [vmem:[#allocation3 + $0x350] sm:$0xff]  ;;  %v4126_v44 = vld [vmem:[#allocation3 + $0x358] sm:$0xff] }
 0x48d   : > { %4231 = vst [vmem:[%s5714_s8 + $0x550] sm:$0xff] %v4103_v21  ;;  %4232 = vst [vmem:[%s5714_s8 + $0x558] sm:$0xff] %v4104_v22  ;;  %v4127_v45 = vld [vmem:[#allocation3 + $0x360] sm:$0xff]  ;;  %v4128_v46 = vld [vmem:[#allocation3 + $0x368] sm:$0xff] }
 0x48e   : > { %4233 = vst [vmem:[%s5714_s8 + $0x570] sm:$0xff] %v4105_v23  ;;  %4234 = vst [vmem:[%s5714_s8 + $0x578] sm:$0xff] %v4106_v24  ;;  %v4129_v47 = vld [vmem:[#allocation3 + $0x370] sm:$0xff]  ;;  %v4130_v48 = vld [vmem:[#allocation3 + $0x378] sm:$0xff] }
 0x48f   : > { %4235 = vst [vmem:[%s5714_s8 + $0x590] sm:$0xff] %v4107_v25  ;;  %4236 = vst [vmem:[%s5714_s8 + $0x598] sm:$0xff] %v4108_v26  ;;  %v4131_v49 = vld [vmem:[#allocation3 + $0x380] sm:$0xff]  ;;  %v4132_v50 = vld [vmem:[#allocation3 + $0x388] sm:$0xff] }
 0x490   : > { %4237 = vst [vmem:[%s5714_s8 + $0x5b0] sm:$0xff] %v4109_v27  ;;  %4238 = vst [vmem:[%s5714_s8 + $0x5b8] sm:$0xff] %v4110_v28  ;;  %v4133_v51 = vld [vmem:[#allocation3 + $0x390] sm:$0xff]  ;;  %v4134_v52 = vld [vmem:[#allocation3 + $0x398] sm:$0xff] }
 0x491   : > { %4239 = vst [vmem:[%s5714_s8 + $0x5d0] sm:$0xff] %v4111_v29  ;;  %4240 = vst [vmem:[%s5714_s8 + $0x5d8] sm:$0xff] %v4112_v30  ;;  %v4135_v53 = vld [vmem:[#allocation3 + $0x3a0] sm:$0xff]  ;;  %v4136_v54 = vld [vmem:[#allocation3 + $0x3a8] sm:$0xff] }
 0x492   : > { %4241 = vst [vmem:[%s5714_s8 + $0x5f0] sm:$0xff] %v4113_v31  ;;  %4242 = vst [vmem:[%s5714_s8 + $0x5f8] sm:$0xff] %v4114_v32  ;;  %v4137_v55 = vld [vmem:[#allocation3 + $0x3b0] sm:$0xff]  ;;  %v4138_v56 = vld [vmem:[#allocation3 + $0x3b8] sm:$0xff] }
 0x493   : > { %4243 = vst [vmem:[%s5714_s8 + $0x610] sm:$0xff] %v4115_v33  ;;  %4244 = vst [vmem:[%s5714_s8 + $0x618] sm:$0xff] %v4116_v34  ;;  %v4139_v57 = vld [vmem:[#allocation3 + $0x3c0] sm:$0xff]  ;;  %v4140_v58 = vld [vmem:[#allocation3 + $0x3c8] sm:$0xff] }
 0x494   : > { %4245 = vst [vmem:[%s5714_s8 + $0x630] sm:$0xff] %v4117_v35  ;;  %4246 = vst [vmem:[%s5714_s8 + $0x638] sm:$0xff] %v4118_v36  ;;  %v4141_v59 = vld [vmem:[#allocation3 + $0x3d0] sm:$0xff]  ;;  %v4142_v60 = vld [vmem:[#allocation3 + $0x3d8] sm:$0xff] }
 0x495   : > { %4247 = vst [vmem:[%s5714_s8 + $0x650] sm:$0xff] %v4119_v37  ;;  %4248 = vst [vmem:[%s5714_s8 + $0x658] sm:$0xff] %v4120_v38  ;;  %v4143_v61 = vld [vmem:[#allocation3 + $0x3e0] sm:$0xff]  ;;  %v4144_v62 = vld [vmem:[#allocation3 + $0x3e8] sm:$0xff] }
 0x496   : > { %4249 = vst [vmem:[%s5714_s8 + $0x670] sm:$0xff] %v4121_v39  ;;  %4250 = vst [vmem:[%s5714_s8 + $0x678] sm:$0xff] %v4122_v40  ;;  %v4145_v63 = vld [vmem:[#allocation3 + $0x3f0] sm:$0xff]  ;;  %v4146_v0 = vld [vmem:[#allocation3 + $0x3f8] sm:$0xff] }
 0x497   : > { %4251 = vst [vmem:[%s5714_s8 + $0x690] sm:$0xff] %v4123_v41  ;;  %4252 = vst [vmem:[%s5714_s8 + $0x698] sm:$0xff] %v4124_v42 }
 0x498   : > { %4253 = vst [vmem:[%s5714_s8 + $0x6b0] sm:$0xff] %v4125_v43  ;;  %4254 = vst [vmem:[%s5714_s8 + $0x6b8] sm:$0xff] %v4126_v44 }
 0x499   : > { %4255 = vst [vmem:[%s5714_s8 + $0x6d0] sm:$0xff] %v4127_v45  ;;  %4256 = vst [vmem:[%s5714_s8 + $0x6d8] sm:$0xff] %v4128_v46 }
 0x49a   : > { %4257 = vst [vmem:[%s5714_s8 + $0x6f0] sm:$0xff] %v4129_v47  ;;  %4258 = vst [vmem:[%s5714_s8 + $0x6f8] sm:$0xff] %v4130_v48 }
 0x49b   : > { %4259 = vst [vmem:[%s5714_s8 + $0x710] sm:$0xff] %v4131_v49  ;;  %4260 = vst [vmem:[%s5714_s8 + $0x718] sm:$0xff] %v4132_v50 }
 0x49c   : > { %4261 = vst [vmem:[%s5714_s8 + $0x730] sm:$0xff] %v4133_v51  ;;  %4262 = vst [vmem:[%s5714_s8 + $0x738] sm:$0xff] %v4134_v52 }
 0x49d   : > { %4263 = vst [vmem:[%s5714_s8 + $0x750] sm:$0xff] %v4135_v53  ;;  %4264 = vst [vmem:[%s5714_s8 + $0x758] sm:$0xff] %v4136_v54 }
 0x49e   : > { %4265 = vst [vmem:[%s5714_s8 + $0x770] sm:$0xff] %v4137_v55  ;;  %4266 = vst [vmem:[%s5714_s8 + $0x778] sm:$0xff] %v4138_v56 }
 0x49f   : > { %4267 = vst [vmem:[%s5714_s8 + $0x790] sm:$0xff] %v4139_v57  ;;  %4268 = vst [vmem:[%s5714_s8 + $0x798] sm:$0xff] %v4140_v58 }
 0x4a0   : > { %4269 = vst [vmem:[%s5714_s8 + $0x7b0] sm:$0xff] %v4141_v59  ;;  %4270 = vst [vmem:[%s5714_s8 + $0x7b8] sm:$0xff] %v4142_v60 }
 0x4a1   : > { %4271 = vst [vmem:[%s5714_s8 + $0x7d0] sm:$0xff] %v4143_v61  ;;  %4272 = vst [vmem:[%s5714_s8 + $0x7d8] sm:$0xff] %v4144_v62 }
 0x4a2   : > { %4273 = vst [vmem:[%s5714_s8 + $0x7f0] sm:$0xff] %v4145_v63  ;;  %4274 = vst [vmem:[%s5714_s8 + $0x7f8] sm:$0xff] %v4146_v0 }
 0x4a3 PF: > { %s7011_s21 = sld [smem:[#allocation22_spill]]  ;;  %s4459_s6 = sshll.u32 %s5348_s22, 15 }
 0x4a4   : > { %s7012_s24 = sld [smem:[#allocation25_spill]]  ;;  %s4290_s7 = sshll.u32 %s5714_s8, 4  ;;  %s6877_s7 = int_to_ptr.vmem [resolvable:$true] %s4290_s7 }
 0x4a5   : > { %s6881_s12 = scalar_lea.sflag [#allocation6], %s286_s26  ;;  %s5206_s9 = scalar_lea.vmem %s6877_s7, 32768 }
 0x4a6   : > { %p5207_p4 = scmp.ne.s32.totalorder %s6877_s7, %s5206_s9  ;;  %s5371_s22 = smov [#allocation10]  }
 0x4a7   : > { %s5210_s27 = sshll.u32 %s5371_s22, 4  ;;  %s5211_s27 = int_to_ptr.vmem [resolvable:$false] %s5210_s27 }
 0x4a8   : > { %s5212_s5 = scalar_lea.vmem %s5211_s27, 65536  ;;  %p5213_p9 = scmp.lt.s32.totalorder %s6877_s7, %s5211_s27 }
 0x4a9   : > { %p7014_p1 = scmp.ne.s32.totalorder %s7011_s21, 0  ;;  %p5214_p3 = scmp.lt.s32.totalorder %s5212_s5, %s5206_s9 }
 0x4aa   : > { %s7013_s4 = smov %s7012_s24  ;;  %s6874_s3 = scalar_lea.hbm %s7012_s24, %s4459_s6 }
 0x4ab   : > { %p5208_p2 = pnand %p5207_p4, %p7014_p1  ;;  %p5215_p12 = por %p5214_p3, %p5213_p9 }
 0x4ad   : > { %p5209_p6 = pneg %p5208_p2 }
 0x4af   : > { %p5216_p8 = pnand %p5215_p12, %p5209_p6 }
 0x4b1   : > { %5219 = shalt.err (!%p5216_p8)
}
 0x4b2   : > { %s5220_s15 = scalar_lea.hbm %s6874_s3, 32768  ;;  %s5224_s18 = scalar_lea.hbm %s7013_s4, 65536 }
 0x4b3   : > { %p5221_p11 = scmp.ne.s32.totalorder %s6874_s3, %s5220_s15  ;;  %p5225_p13 = scmp.lt.u32.totalorder %s6874_s3, %s7013_s4 }
 0x4b4   : > { %p5226_p5 = scmp.lt.u32.totalorder %s5224_s18, %s5220_s15  ;;  %p5228_p4 = scmp.lt.u32.totalorder %s5220_s15, %s6874_s3 }
 0x4b5   : > { %p5222_p0 = pnand %p5221_p11, %p7014_p1 }
 0x4b6   : > { %p5227_p10 = por %p5226_p5, %p5225_p13 }
 0x4b7   : > { %p5223_p7 = pneg %p5222_p0 }
 0x4b8   : > { %p5229_p2 = por %p5228_p4, %p5227_p10 }
 0x4ba   : > { %p5230_p6 = pnand %p5229_p2, %p5223_p7 }
 0x4bc   : > { %5233 = shalt.err (!%p5230_p6)
}
 0x4bd   : > { %s5372_s14 = smov 512   ;;  %s5373_s8 = smov 32  }
 0x4be   : > { %4978 = dma.vmem_to_hbm [thread:$0]  (%p7014_p1), %s6877_s7, 32768, %s6874_s3, %s6881_s12, %s5372_s14, %s5372_s14, %s5373_s8  }
 0x4bf PF: > { %s7015_s6 = sld [smem:[#allocation15_spill]]  ;;  %s7016_s1 = sld [smem:[#allocation23_spill]] }
 0x4c0   : > { %p4995_p9 = scmp.ge.s32.totalorder %s5360_s25, 2 }
 0x4c5   : > { %s4305_s28 = sand.u32 1, %s7015_s6   ;;  %p7017_p3 = scmp.ne.s32.totalorder %s7016_s1, 0 }
 0x4c6   : > { %s4306_s24 = scalar_lea.sflag [#allocation6], %s4305_s28 }
 0x4c7   : > { %p4991_p12 = pnand %p4995_p9, %p7017_p3 }
 0x4c9   : > { %5303 = dma.done.wait (!%p4991_p12), %s4306_s24, 32768  }
 0x4ca   : > { %5305 = vsyncadd (!%p4991_p12), %s4306_s24, 4294934528  ;;  %s22_s25 = sadd.s32 1, %s5360_s25   ;;  %s7019_s21 = sld [smem:[#allocation16_spill]] }
 0x4cb   : > { %p6910_p8 = scmp.ge.s32.totalorder %s22_s25, 6   ;;  %s7020_s14 = sld [smem:[#allocation20_spill]] }
 0x4cc   : > { %s7021_s3 = sld [smem:[#allocation21_spill]]  ;;  %s7022_s22 = sld [smem:[#allocation17_spill]] }
 0x4cd   : > { %s7023_s7 = sld [smem:[#allocation18_spill]]  ;;  %s7024_s24 = sld [smem:[#allocation19_spill]] }
 0x4ce   : > { %s7025_s12 = smov %s5312_s13  ;;  %s7027_s15 = smov %s5324_s16 }
 0x4cf   : > { %s7028_s16 = smov %s5328_s17  ;;  %s7029_s17 = smov %s5633_s10 }
 0x4d0   : > { %s7026_s13 = smov %s7019_s21  ;;  %s7030_s18 = smov %s5336_s19 }
 0x4d1   : > { %s7031_s19 = smov %s5340_s20  ;;  %s7033_s21 = smov %s5352_s23 }
 0x4d2   : > { %s7032_s20 = smov %s7021_s3  ;;  %21 = sbr.rel (!%p6910_p8) target bundleno = 15 (0xf), region = 109 }
 0x4d3   : > { %s7034_s23 = smov %s7023_s7 }
 0x4d9   :  { %4311 = vsyncpa [#allocation5], 1 }
 0x4da   :  { %4313 = vsyncpa [#allocation5 + $0x1], 1 }
 0x4db   :  { %4314 = vsyncpa [#allocation8], 1 }
 0x4dc   :  { %4316 = vsyncpa [#allocation8 + $0x1], 1 }
 0x4dd   :  { %4317 = vsyncpa [#allocation6], 1 }
 0x4de   :  { %4319 = vsyncpa [#allocation6 + $0x1], 1 }

</bundles_post_ra>
